<compile_context>
chip_gen: v5e
topology: v5e:2x2
jax: 0.10.0
libtpu: 0.0.40
codegen_flags: <defaults>
</compile_context>

<pallas_src>
import functools

import jax
import jax.numpy as jnp
from jax.experimental import pallas as pl
from jax.experimental.pallas import tpu as pltpu

N_EMBED = 384
HIDDEN = 4 * N_EMBED          # 1536
MAX_TILE_M = 1024             # rows of x per grid step (multiple of 256, VMEM-safe everywhere)


# ---------------------------------------------------------------------------
# Kernel: one (tm, N_EMBED) row tile -> (tm, N_EMBED) output tile.
# Weights / biases are full blocks with a constant index_map (VMEM-resident).
# ---------------------------------------------------------------------------
def _ffn_kernel(x_ref, w1_ref, b1_ref, w2_ref, b2_ref, o_ref, *, bf16_epilogue):
    x = x_ref[...]
    if x.dtype != jnp.bfloat16:          # no-op for the bf16 fast path
        x = x.astype(jnp.bfloat16)
    # Matmul 1: (tm, C) @ (C, 4C) -> f32 accumulation on the MXU.
    h = jnp.dot(x, w1_ref[...], preferred_element_type=jnp.float32)
    if bf16_epilogue:
        # bf16-native VALU (v6e / v7x): bias add + ReLU in bf16 (half the VPU work,
        # half the hidden-tile footprint).  relu commutes with the rounding, so the
        # numerics match the f32-epilogue path for practical purposes.
        h = h.astype(jnp.bfloat16)
        h = jnp.maximum(h + b1_ref[...].astype(jnp.bfloat16), 0.0)
    else:
        # v5e and earlier: keep the epilogue in f32 (no bf16 VALU), then cast once.
        h = jnp.maximum(h + b1_ref[...], 0.0).astype(jnp.bfloat16)
    # Matmul 2: (tm, 4C) @ (4C, C) -> f32 accumulation, bias, store in output dtype.
    o = jnp.dot(h, w2_ref[...], preferred_element_type=jnp.float32)
    o_ref[...] = (o + b2_ref[...]).astype(o_ref.dtype)
    # TODO(synk): training-mode Dropout(p=0.2) omitted (eval-mode identity); would
    # need pltpu.prng_seed / pltpu.prng_random_bits and a mask in this epilogue.


def _round_up(n, m):
    return ((n + m - 1) // m) * m


def _default_bf16_epilogue():
    """bf16 VALU is native on v6e / v7x; keep the f32 epilogue on older parts."""
    try:
        kind = jax.devices()[0].device_kind.lower()
    except Exception:
        return False
    return not any(g in kind for g in ("v2", "v3", "v4", "v5"))


def _choose_tile_m(m, max_tile=MAX_TILE_M):
    """Pick the row-tile size.

    Tiny M: one step covering all rows (rounded up to a sublane multiple of 8).
    Large M: prefer an even number of grid steps (balances v7x's 2 TensorCores on the
    'parallel' axis), then minimal last-tile waste; candidates are multiples of 256 so
    the M dimension stays aligned to the 256-wide MXU on v6e/v7x.
    """
    if m <= max_tile:
        return _round_up(m, 8)
    best_key, best_tm = None, max_tile
    for tm in (1024, 768, 512, 256):
        if tm > max_tile:
            continue
        steps = -(-m // tm)
        waste = steps * tm - m
        key = (steps % 2, waste, steps)   # even step count first, then least waste
        if best_key is None or key < best_key:
            best_key, best_tm = key, tm
    return best_tm


def _const_spec(shape):
    """Grid-invariant operand (weights / biases): resident block, single-buffered."""
    idx = lambda i: (0, 0)
    try:
        # One buffer is enough for a block whose index never changes; saves ~2.25 MB.
        return pl.BlockSpec(shape, idx, pipeline_mode=pl.Buffered(1))
    except Exception:  # pragma: no cover - older jax without pipeline_mode kwarg
        return pl.BlockSpec(shape, idx)


# ---------------------------------------------------------------------------
# Wrapper: flattens leading dims and launches a 1-D row-tiled pallas_call.
# Ragged M is handled by Pallas's masked partial last block (no pad / slice).
# ---------------------------------------------------------------------------
def feedforward(x, w1, b1, w2, b2, *, max_tile_m=MAX_TILE_M, bf16_epilogue=None):
    """x: (..., C) bf16 (or f32).  w1: (C, 4C) bf16, w2: (4C, C) bf16, b1/b2: f32."""
    orig_shape = x.shape
    c = orig_shape[-1]
    h = w1.shape[1]
    b1 = b1.reshape(1, h)      # defensive: accept 1-D nn.Linear-style biases
    b2 = b2.reshape(1, c)
    x2 = x.reshape(-1, c)
    m = x2.shape[0]

    if bf16_epilogue is None:
        bf16_epilogue = _default_bf16_epilogue()

    tm = _choose_tile_m(m, max_tile_m)
    grid = (pl.cdiv(m, tm),)
    out_dtype = x.dtype

    # Advisory cost hint for XLA scheduling around the custom call.
    bytes_accessed = (
        x2.size * x2.dtype.itemsize
        + m * c * x.dtype.itemsize
        + w1.size * w1.dtype.itemsize + w2.size * w2.dtype.itemsize
        + b1.size * b1.dtype.itemsize + b2.size * b2.dtype.itemsize)
    cost = pl.CostEstimate(flops=4 * m * c * h, transcendentals=0,
                           bytes_accessed=bytes_accessed)

    out = pl.pallas_call(
        functools.partial(_ffn_kernel, bf16_epilogue=bf16_epilogue),
        grid=grid,
        in_specs=[
            pl.BlockSpec((tm, c), lambda i: (i, 0)),   # x row tile (streamed, bf16)
            _const_spec((c, h)),                       # W1 resident
            _const_spec((1, h)),                       # b1 resident
            _const_spec((h, c)),                       # W2 resident
            _const_spec((1, c)),                       # b2 resident
        ],
        out_specs=pl.BlockSpec((tm, c), lambda i: (i, 0)),
        out_shape=jax.ShapeDtypeStruct((m, c), out_dtype),
        compiler_params=pltpu.CompilerParams(
            dimension_semantics=("parallel",),         # shards rows across v7x's 2 TCs
            vmem_limit_bytes=32 * 1024 * 1024,         # explicit, safe on v5e/v6e/v7x
        ),
        cost_estimate=cost,
    )(x2, w1, b1, w2, b2)

    return out.reshape(orig_shape)


# Pure-JAX reference (same bf16-weight / f32-accumulation numerics) for checking.
def feedforward_ref(x, w1, b1, w2, b2):
    c = x.shape[-1]
    x2 = x.reshape(-1, c).astype(jnp.bfloat16)
    hid = jnp.dot(x2, w1, preferred_element_type=jnp.float32) + b1.reshape(1, -1)
    hid = jnp.maximum(hid, 0.0).astype(jnp.bfloat16)
    out = jnp.dot(hid, w2, preferred_element_type=jnp.float32) + b2.reshape(1, -1)
    return out.reshape(x.shape).astype(x.dtype)


if __name__ == "__main__":
    key = jax.random.PRNGKey(0)
    k_x, k_w1, k_b1, k_w2, k_b2, k_x2 = jax.random.split(key, 6)

    # Parameters: weights stored bf16 (nn.Linear shapes transposed to (in, out)),
    # biases f32 and deliberately 1-D to exercise the defensive reshape.
    w1 = (0.02 * jax.random.normal(k_w1, (N_EMBED, HIDDEN))).astype(jnp.bfloat16)
    b1 = 0.01 * jax.random.normal(k_b1, (HIDDEN,), dtype=jnp.float32)
    w2 = (0.02 * jax.random.normal(k_w2, (HIDDEN, N_EMBED))).astype(jnp.bfloat16)
    b2 = 0.01 * jax.random.normal(k_b2, (N_EMBED,), dtype=jnp.float32)

    ffn = jax.jit(feedforward)

    # Small case consistent with the module: batch=2, seq=8, n_embed=384 (bf16 activations).
    x_small = jax.random.normal(k_x, (2, 8, N_EMBED), dtype=jnp.float32).astype(jnp.bfloat16)
    y_small = jax.block_until_ready(ffn(x_small, w1, b1, w2, b2))
    r_small = feedforward_ref(x_small, w1, b1, w2, b2)
    assert y_small.shape == x_small.shape and y_small.dtype == x_small.dtype
    assert bool(jnp.all(jnp.isfinite(y_small.astype(jnp.float32))))
    assert bool(jnp.allclose(y_small.astype(jnp.float32), r_small.astype(jnp.float32),
                             atol=5e-2, rtol=5e-2))

    # Larger ragged case (M = 4*300 = 1200): multi-step grid with a masked partial
    # last block and an even step count (tm=768 -> 2 steps).
    x_big = jax.random.normal(k_x2, (4, 300, N_EMBED), dtype=jnp.float32).astype(jnp.bfloat16)
    y_big = jax.block_until_ready(ffn(x_big, w1, b1, w2, b2))
    r_big = feedforward_ref(x_big, w1, b1, w2, b2)
    assert y_big.shape == x_big.shape and y_big.dtype == x_big.dtype
    assert bool(jnp.all(jnp.isfinite(y_big.astype(jnp.float32))))
    assert bool(jnp.allclose(y_big.astype(jnp.float32), r_big.astype(jnp.float32),
                             atol=5e-2, rtol=5e-2))

    print("KERNEL_OK")
</pallas_src>

<mosaic_0001>
module attributes {stable_mosaic.version = 11 : i64} {
  func.func @_ffn_kernel(%arg0: i32, %arg1: memref<16x384xbf16, #tpu.memory_space<vmem>>, %arg2: memref<384x1536xbf16, #tpu.memory_space<vmem>>, %arg3: memref<1x1536xf32, #tpu.memory_space<vmem>>, %arg4: memref<1536x384xbf16, #tpu.memory_space<vmem>>, %arg5: memref<1x384xf32, #tpu.memory_space<vmem>>, %arg6: memref<16x384xbf16, #tpu.memory_space<vmem>>) attributes {dimension_semantics = [#tpu.dimension_semantics<parallel>], iteration_bounds = array<i64: 1>, scalar_prefetch = 0 : i64, scratch_operands = 0 : i64, tpu.core_type = #tpu.core_type<tc>, window_params = [{transform_indices = @transform_0, window_bounds = array<i64: 16, 384>}, {pipeline_mode = #tpu.pipeline_mode<synchronous>, transform_indices = @transform_1, window_bounds = array<i64: 384, 1536>}, {pipeline_mode = #tpu.pipeline_mode<synchronous>, transform_indices = @transform_2, window_bounds = array<i64: 1, 1536>}, {pipeline_mode = #tpu.pipeline_mode<synchronous>, transform_indices = @transform_3, window_bounds = array<i64: 1536, 384>}, {pipeline_mode = #tpu.pipeline_mode<synchronous>, transform_indices = @transform_4, window_bounds = array<i64: 1, 384>}, {transform_indices = @transform_5, window_bounds = array<i64: 16, 384>}]} {
    %c0 = arith.constant 0 : index
    %c0_0 = arith.constant 0 : index
    %0 = vector.load %arg1[%c0, %c0_0] : memref<16x384xbf16, #tpu.memory_space<vmem>>, vector<16x384xbf16>
    %c0_1 = arith.constant 0 : index
    %c0_2 = arith.constant 0 : index
    %1 = vector.load %arg2[%c0_1, %c0_2] : memref<384x1536xbf16, #tpu.memory_space<vmem>>, vector<384x1536xbf16>
    %cst = arith.constant dense<0.000000e+00> : vector<16x1536xf32>
    %2 = tpu.matmul %0, %1, %cst {dimension_numbers = #tpu.dot_dimension_numbers<[1], [0], [0], [1], [0, 0, 1, 1], [], []>} : vector<16x384xbf16>, vector<384x1536xbf16>, vector<16x1536xf32> -> vector<16x1536xf32>
    %3 = arith.truncf %2 : vector<16x1536xf32> to vector<16x1536xbf16>
    %c0_3 = arith.constant 0 : index
    %c0_4 = arith.constant 0 : index
    %4 = vector.load %arg3[%c0_3, %c0_4] : memref<1x1536xf32, #tpu.memory_space<vmem>>, vector<1x1536xf32>
    %5 = arith.truncf %4 : vector<1x1536xf32> to vector<1x1536xbf16>
    %6 = vector.broadcast %5 : vector<1x1536xbf16> to vector<16x1536xbf16>
    %7 = arith.addf %3, %6 : vector<16x1536xbf16>
    %cst_5 = arith.constant 0.000000e+00 : bf16
    %8 = vector.broadcast %cst_5 : bf16 to vector<16x1536xbf16>
    %9 = arith.maximumf %7, %8 : vector<16x1536xbf16>
    %c0_6 = arith.constant 0 : index
    %c0_7 = arith.constant 0 : index
    %10 = vector.load %arg4[%c0_6, %c0_7] : memref<1536x384xbf16, #tpu.memory_space<vmem>>, vector<1536x384xbf16>
    %cst_8 = arith.constant dense<0.000000e+00> : vector<16x384xf32>
    %11 = tpu.matmul %9, %10, %cst_8 {dimension_numbers = #tpu.dot_dimension_numbers<[1], [0], [0], [1], [0, 0, 1, 1], [], []>} : vector<16x1536xbf16>, vector<1536x384xbf16>, vector<16x384xf32> -> vector<16x384xf32>
    %c0_9 = arith.constant 0 : index
    %c0_10 = arith.constant 0 : index
    %12 = vector.load %arg5[%c0_9, %c0_10] : memref<1x384xf32, #tpu.memory_space<vmem>>, vector<1x384xf32>
    %13 = vector.broadcast %12 : vector<1x384xf32> to vector<16x384xf32>
    %14 = arith.addf %11, %13 : vector<16x384xf32>
    %15 = arith.truncf %14 : vector<16x384xf32> to vector<16x384xbf16>
    %c0_11 = arith.constant 0 : index
    %c0_12 = arith.constant 0 : index
    %16 = vector.load %arg6[%c0_11, %c0_12] : memref<16x384xbf16, #tpu.memory_space<vmem>>, vector<16x384xbf16>
    tpu.vector_store %arg6[%c0_11, %c0_12], %15 {strides = array<i32>} : memref<16x384xbf16, #tpu.memory_space<vmem>>, vector<16x384xbf16>,
    return
  }
  func.func @transform_0(%arg0: i32) -> (i32, i32) {
    %c0_i32 = arith.constant 0 : i32
    %c0_i32_0 = arith.constant 0 : i32
    return %arg0, %c0_i32 : i32, i32
  }
  func.func @transform_1(%arg0: i32) -> (i32, i32) {
    %c0_i32 = arith.constant 0 : i32
    %c0_i32_0 = arith.constant 0 : i32
    %c0_i32_1 = arith.constant 0 : i32
    return %c0_i32, %c0_i32_0 : i32, i32
  }
  func.func @transform_2(%arg0: i32) -> (i32, i32) {
    %c0_i32 = arith.constant 0 : i32
    %c0_i32_0 = arith.constant 0 : i32
    %c0_i32_1 = arith.constant 0 : i32
    return %c0_i32, %c0_i32_0 : i32, i32
  }
  func.func @transform_3(%arg0: i32) -> (i32, i32) {
    %c0_i32 = arith.constant 0 : i32
    %c0_i32_0 = arith.constant 0 : i32
    %c0_i32_1 = arith.constant 0 : i32
    return %c0_i32, %c0_i32_0 : i32, i32
  }
  func.func @transform_4(%arg0: i32) -> (i32, i32) {
    %c0_i32 = arith.constant 0 : i32
    %c0_i32_0 = arith.constant 0 : i32
    %c0_i32_1 = arith.constant 0 : i32
    return %c0_i32, %c0_i32_0 : i32, i32
  }
  func.func @transform_5(%arg0: i32) -> (i32, i32) {
    %c0_i32 = arith.constant 0 : i32
    %c0_i32_0 = arith.constant 0 : i32
    return %arg0, %c0_i32 : i32, i32
  }
}

</mosaic_0001>

<bundles_post_ra>
// kernel: feedforward.1
= control target key start
LH: loop header
LB: loop body
LE: loop exit
PB: predicated region body
PF: predicated region fallthrough
CT: control target
= control target key end

     0   :  { %10 = vsyncpa [#allocation3], 0  ;;  %s8511_s0 = inlined_call_operand.hbm [shape: bf16[16,384], index: 0, kind: input, shape index: {}]   ;;  %s8512_s1 = inlined_call_operand.hbm [shape: bf16[384,1536], index: 1, kind: input, shape index: {}]   ;;  %s8513_s2 = inlined_call_operand.vmem [shape: f32[1,1536], index: 2, kind: input, shape index: {}]   ;;  %s8514_s3 = inlined_call_operand.hbm [shape: bf16[1536,384], index: 3, kind: input, shape index: {}]   ;;  %s8515_s4 = inlined_call_operand.vmem [shape: f32[1,384], index: 4, kind: input, shape index: {}]   ;;  %s8516_s5 = inlined_call_operand.hbm [shape: bf16[16,384], index: 5, kind: output, shape index: {}]  }
   0x1   :  { %11 = vsyncpa [#allocation6], 0  ;;  %s30_s20 = sshll.u32 %s8512_s1, 4  ;;  %s31_s20 = int_to_ptr.hbm [resolvable:$true] %s30_s20 }
   0x2   :  { %12 = vsyncpa [#allocation4], 0  ;;  %s8042_s21 = smov [#allocation5]   ;;  %s17_s25 = sshll.u32 %s8511_s0, 4  ;;  %s18_s25 = int_to_ptr.hbm [resolvable:$true] %s17_s25 }
   0x3   :  { %s32_s22 = sshll.u32 %s8042_s21, 4  ;;  %s8043_s26 = smov 768   ;;  %s33_s22 = int_to_ptr.vmem [resolvable:$true] %s32_s22 }
   0x4   :  { %s8044_s27 = smov 48   ;;  %s8045_s28 = smov [#allocation2]  }
   0x5   :  { %38 = dma.hbm_to_vmem [thread:$0]  %s31_s20, 36864, %s33_s22, [#allocation6], %s8043_s26, %s8043_s26, %s8044_s27  }
   0x6   :  { %s19_s29 = sshll.u32 %s8045_s28, 4  ;;  %s8046_s30 = smov 192   ;;  %s20_s29 = int_to_ptr.vmem [resolvable:$true] %s19_s29 }
   0x7   :  { %s8047_s6 = smov 12   ;;  %s45_s8 = sshll.u32 %s8514_s3, 4  ;;  %s46_s8 = int_to_ptr.hbm [resolvable:$true] %s45_s8 }
   0x8   :  { %25 = dma.hbm_to_vmem [thread:$0]  %s18_s25, 384, %s20_s29, [#allocation3], %s8046_s30, %s8046_s30, %s8047_s6  }
   0x9   :  { %s8048_s9 = smov [#allocation7]  }
   0xa   :  { %s47_s0 = sshll.u32 %s8048_s9, 4  ;;  %s48_s0 = int_to_ptr.vmem [resolvable:$true] %s47_s0 }
   0xb   :  { %53 = dma.hbm_to_vmem [thread:$0]  %s46_s8, 36864, %s48_s0, [#allocation6], %s8046_s30, %s8046_s30, %s8047_s6  }
   0xc   :  { %8036 = dma.done.wait [#allocation3], 384  }
   0xd   :  { %8037 = vsyncadd [#allocation3], 4294966912 }
   0xe   :  { %8038 = dma.done.wait [#allocation6], 73728  }
   0xf   :  { %8039 = vsyncadd [#allocation6], 4294893568  ;;  %v5386_v0 = vld [vmem:[#allocation5 + $0x2a0] sm:$0xf]  ;;  %v7445_v1 = vld [vmem:[#allocation5 + $0x2cc] sm:$0xf0] }
  0x10   :  { %v5770_v2 = vld [vmem:[#allocation5 + $0x5a0] sm:$0xf]  ;;  %v5387_v3 = vor.u32 %v7445_v1, %v5386_v0  ;;  %v7541_v4 = vld [vmem:[#allocation5 + $0x5cc] sm:$0xf0]  ;;  %v7439_v9 = vld [vmem:[#allocation5 + $0x2a4] sm:$0xf] }
  0x11   :  { %v6154_v5 = vld [vmem:[#allocation5 + $0x8a0] sm:$0xf]  ;;  %v7637_v6 = vld [vmem:[#allocation5 + $0x8cc] sm:$0xf0]  ;;  %v5771_v7 = vor.u32 %v7541_v4, %v5770_v2  ;;  %v5388_v10 = vld [vmem:[#allocation5 + $0x2d0] sm:$0xf0] }
  0x12   :  { %v6155_v8 = vor.u32 %v7637_v6, %v6154_v5  ;;  %v5338_v11 = vld [vmem:[#allocation5 + $0x240] sm:$0xf]  ;;  %1816 = vmatpush.bf16.msra.mxu0 %v5387_v3  ;;  %v5391_v12 = vor.u32 %v7439_v9, %v5388_v10  ;;  %v7433_v13 = vld [vmem:[#allocation5 + $0x26c] sm:$0xf0]  ;;  %v7427_v20 = vld [vmem:[#allocation5 + $0x244] sm:$0xf] }
  0x13   :  { %v5722_v14 = vld [vmem:[#allocation5 + $0x540] sm:$0xf]  ;;  %v7529_v15 = vld [vmem:[#allocation5 + $0x56c] sm:$0xf0]  ;;  %1830 = vmatpush.bf16.msra.mxu1 %v5771_v7  ;;  %v5339_v16 = vor.u32 %v7433_v13, %v5338_v11  ;;  %v5340_v22 = vld [vmem:[#allocation5 + $0x270] sm:$0xf0] }
  0x14   :  { %1844 = vmatpush.bf16.msra.mxu2 %v6155_v8  ;;  %v5723_v17 = vor.u32 %v7529_v15, %v5722_v14  ;;  %v6106_v18 = vld [vmem:[#allocation5 + $0x840] sm:$0xf]  ;;  %v7625_v19 = vld [vmem:[#allocation5 + $0x86c] sm:$0xf0]  ;;  %1858 = vmatpush.bf16.msra.mxu3 %v5391_v12  ;;  %v5343_v25 = vor.u32 %v7427_v20, %v5340_v22  ;;  %v7415_v31 = vld [vmem:[#allocation5 + $0x1e4] sm:$0xf] }
  0x15   :  { %v6107_v21 = vor.u32 %v7625_v19, %v6106_v18  ;;  %v5290_v23 = vld [vmem:[#allocation5 + $0x1e0] sm:$0xf]  ;;  %v7421_v24 = vld [vmem:[#allocation5 + $0x20c] sm:$0xf0]  ;;  %v5292_v32 = vld [vmem:[#allocation5 + $0x210] sm:$0xf0] }
  0x16   :  { %v5674_v26 = vld [vmem:[#allocation5 + $0x4e0] sm:$0xf]  ;;  %v7517_v27 = vld [vmem:[#allocation5 + $0x50c] sm:$0xf0]  ;;  %1817 = vmatpush.bf16.msra.mxu0 %v5339_v16  ;;  %v5291_v29 = vor.u32 %v7421_v24, %v5290_v23  ;;  %v5295_v38 = vor.u32 %v7415_v31, %v5292_v32  ;;  %v7403_v42 = vld [vmem:[#allocation5 + $0x184] sm:$0xf] }
  0x17   :  { %v6058_v28 = vld [vmem:[#allocation5 + $0x7e0] sm:$0xf]  ;;  %v7613_v30 = vld [vmem:[#allocation5 + $0x80c] sm:$0xf0]  ;;  %1831 = vmatpush.bf16.msra.mxu1 %v5723_v17  ;;  %v5675_v33 = vor.u32 %v7517_v27, %v5674_v26  ;;  %v5244_v43 = vld [vmem:[#allocation5 + $0x1b0] sm:$0xf0] }
  0x18   :  { %1845 = vmatpush.bf16.msra.mxu2 %v6107_v21  ;;  %v6059_v34 = vor.u32 %v7613_v30, %v6058_v28  ;;  %v5242_v35 = vld [vmem:[#allocation5 + $0x180] sm:$0xf]  ;;  %v7409_v36 = vld [vmem:[#allocation5 + $0x1ac] sm:$0xf0]  ;;  %1859 = vmatpush.bf16.msra.mxu3 %v5343_v25  ;;  %v5247_v50 = vor.u32 %v7403_v42, %v5244_v43  ;;  %v7391_v54 = vld [vmem:[#allocation5 + $0x124] sm:$0xf] }
  0x19   :  { %v5626_v37 = vld [vmem:[#allocation5 + $0x480] sm:$0xf]  ;;  %v7505_v39 = vld [vmem:[#allocation5 + $0x4ac] sm:$0xf0]  ;;  %v5243_v44 = vor.u32 %v7409_v36, %v5242_v35  ;;  %v5196_v55 = vld [vmem:[#allocation5 + $0x150] sm:$0xf0] }
  0x1a   :  { %v6010_v40 = vld [vmem:[#allocation5 + $0x780] sm:$0xf]  ;;  %v7601_v41 = vld [vmem:[#allocation5 + $0x7ac] sm:$0xf0]  ;;  %1818 = vmatpush.bf16.msra.mxu0 %v5291_v29  ;;  %v5627_v45 = vor.u32 %v7505_v39, %v5626_v37  ;;  %v5199_v62 = vor.u32 %v7391_v54, %v5196_v55  ;;  %v7379_v2 = vld [vmem:[#allocation5 + $0xc4] sm:$0xf] }
  0x1b   :  { %1832 = vmatpush.bf16.msra.mxu1 %v5675_v33  ;;  %v6011_v46 = vor.u32 %v7601_v41, %v6010_v40  ;;  %v5194_v47 = vld [vmem:[#allocation5 + $0x120] sm:$0xf]  ;;  %v7397_v48 = vld [vmem:[#allocation5 + $0x14c] sm:$0xf0]  ;;  %v5148_v3 = vld [vmem:[#allocation5 + $0xf0] sm:$0xf0] }
  0x1c   :  { %1846 = vmatpush.bf16.msra.mxu2 %v6059_v34  ;;  %v5578_v49 = vld [vmem:[#allocation5 + $0x420] sm:$0xf]  ;;  %1860 = vmatpush.bf16.msra.mxu3 %v5295_v38  ;;  %v7493_v51 = vld [vmem:[#allocation5 + $0x44c] sm:$0xf0]  ;;  %v5195_v56 = vor.u32 %v7397_v48, %v5194_v47  ;;  %v5151_v10 = vor.u32 %v7379_v2, %v5148_v3  ;;  %v7367_v14 = vld [vmem:[#allocation5 + $0x64] sm:$0xf] }
  0x1d   :  { %v5962_v52 = vld [vmem:[#allocation5 + $0x720] sm:$0xf]  ;;  %v7589_v53 = vld [vmem:[#allocation5 + $0x74c] sm:$0xf0]  ;;  %v5579_v57 = vor.u32 %v7493_v51, %v5578_v49  ;;  %v5100_v15 = vld [vmem:[#allocation5 + $0x90] sm:$0xf0] }
  0x1e   :  { %1819 = vmatpush.bf16.msra.mxu0 %v5243_v44  ;;  %v5963_v58 = vor.u32 %v7589_v53, %v5962_v52  ;;  %v5146_v59 = vld [vmem:[#allocation5 + $0xc0] sm:$0xf]  ;;  %v7385_v60 = vld [vmem:[#allocation5 + $0xec] sm:$0xf0]  ;;  %v5103_v24 = vor.u32 %v7367_v14, %v5100_v15  ;;  %v7355_v26 = vld [vmem:[#allocation5 + $0x4] sm:$0xf] }
  0x1f   :  { %1833 = vmatpush.bf16.msra.mxu1 %v5627_v45  ;;  %v5530_v61 = vld [vmem:[#allocation5 + $0x3c0] sm:$0xf]  ;;  %v7481_v63 = vld [vmem:[#allocation5 + $0x3ec] sm:$0xf0]  ;;  %v5147_v4 = vor.u32 %v7385_v60, %v5146_v59  ;;  %v5052_v27 = vld [vmem:[#allocation5 + $0x30] sm:$0xf0] }
  0x20   :  { %1847 = vmatpush.bf16.msra.mxu2 %v6011_v46  ;;  %1861 = vmatpush.bf16.msra.mxu3 %v5247_v50  ;;  %v5914_v0 = vld [vmem:[#allocation5 + $0x6c0] sm:$0xf]  ;;  %v7577_v1 = vld [vmem:[#allocation5 + $0x6ec] sm:$0xf0]  ;;  %v5531_v5 = vor.u32 %v7481_v63, %v5530_v61  ;;  %v7535_v28 = vld [vmem:[#allocation5 + $0x5a4] sm:$0xf]  ;;  %v5055_v39 = vor.u32 %v7355_v26, %v5052_v27 }
  0x21   :  { %v5915_v6 = vor.u32 %v7577_v1, %v5914_v0  ;;  %v5098_v7 = vld [vmem:[#allocation5 + $0x60] sm:$0xf]  ;;  %v7373_v8 = vld [vmem:[#allocation5 + $0x8c] sm:$0xf0]  ;;  %v5772_v29 = vld [vmem:[#allocation5 + $0x5d0] sm:$0xf0] }
  0x22   :  { %1820 = vmatpush.bf16.msra.mxu0 %v5195_v56  ;;  %v5482_v9 = vld [vmem:[#allocation5 + $0x360] sm:$0xf]  ;;  %v7469_v11 = vld [vmem:[#allocation5 + $0x38c] sm:$0xf0]  ;;  %v5099_v16 = vor.u32 %v7373_v8, %v5098_v7  ;;  %v7631_v30 = vld [vmem:[#allocation5 + $0x8a4] sm:$0xf]  ;;  %v5775_v40 = vor.u32 %v7535_v28, %v5772_v29 }
  0x23   :  { %1834 = vmatpush.bf16.msra.mxu1 %v5579_v57  ;;  %v5866_v12 = vld [vmem:[#allocation5 + $0x660] sm:$0xf]  ;;  %v7565_v13 = vld [vmem:[#allocation5 + $0x68c] sm:$0xf0]  ;;  %v5483_v19 = vor.u32 %v7469_v11, %v5482_v9  ;;  %v6156_v32 = vld [vmem:[#allocation5 + $0x8d0] sm:$0xf0] }
  0x24   :  { %1848 = vmatpush.bf16.msra.mxu2 %v5963_v58  ;;  %1862 = vmatpush.bf16.msra.mxu3 %v5199_v62  ;;  %v5050_v17 = vld [vmem:[#allocation5] sm:$0xf]  ;;  %v7361_v18 = vld [vmem:[#allocation5 + $0x2c] sm:$0xf0]  ;;  %v5867_v20 = vor.u32 %v7565_v13, %v5866_v12  ;;  %v5394_v33 = vld [vmem:[#allocation5 + $0x2a8] sm:$0xf]  ;;  %v6159_v42 = vor.u32 %v7631_v30, %v6156_v32 }
  0x25   :  { %v5434_v21 = vld [vmem:[#allocation5 + $0x300] sm:$0xf]  ;;  %v7457_v22 = vld [vmem:[#allocation5 + $0x32c] sm:$0xf0]  ;;  %v5051_v31 = vor.u32 %v7361_v18, %v5050_v17  ;;  %v7446_v34 = vld [vmem:[#allocation5 + $0x2d4] sm:$0xf0] }
  0x26   :  { %1821 = vmatpush.bf16.msra.mxu0 %v5147_v4  ;;  %v5818_v23 = vld [vmem:[#allocation5 + $0x600] sm:$0xf]  ;;  %v7553_v25 = vld [vmem:[#allocation5 + $0x62c] sm:$0xf0]  ;;  %v5435_v35 = vor.u32 %v7457_v22, %v5434_v21  ;;  %v5778_v37 = vld [vmem:[#allocation5 + $0x5a8] sm:$0xf]  ;;  %v5395_v43 = vor.u32 %v7446_v34, %v5394_v33 }
  0x27   :  { %1835 = vmatpush.bf16.msra.mxu1 %v5531_v5  ;;  %v5819_v36 = vor.u32 %v7553_v25, %v5818_v23  ;;  %v7542_v38 = vld [vmem:[#allocation5 + $0x5d4] sm:$0xf0]  ;;  %v7523_v41 = vld [vmem:[#allocation5 + $0x544] sm:$0xf]  ;;  %v5724_v44 = vld [vmem:[#allocation5 + $0x570] sm:$0xf0] }
  0x28   :  { %1849 = vmatpush.bf16.msra.mxu2 %v5915_v6  ;;  %1863 = vmatpush.bf16.msra.mxu3 %v5151_v10  ;;  %v7619_v45 = vld [vmem:[#allocation5 + $0x844] sm:$0xf]  ;;  %v6108_v46 = vld [vmem:[#allocation5 + $0x870] sm:$0xf0]  ;;  %v5779_v47 = vor.u32 %v7542_v38, %v5778_v37  ;;  %v5346_v48 = vld [vmem:[#allocation5 + $0x248] sm:$0xf]  ;;  %v5727_v54 = vor.u32 %v7523_v41, %v5724_v44 }
  0x29   :  { %v7434_v49 = vld [vmem:[#allocation5 + $0x274] sm:$0xf0]  ;;  %v5730_v50 = vld [vmem:[#allocation5 + $0x548] sm:$0xf]  ;;  %v7353_v53 = vld [vmem:[#allocation2 + $0x8] sm:$0xf0]  ;;  %v6111_v58 = vor.u32 %v7619_v45, %v6108_v46 }
  0x2a   :  { %1822 = vmatpush.bf16.msra.mxu0 %v5099_v16  ;;  %v7530_v51 = vld [vmem:[#allocation5 + $0x574] sm:$0xf0]  ;;  %v5038_v52 = vld [vmem:[#allocation2] sm:$0xf]  ;;  %v7511_v55 = vld [vmem:[#allocation5 + $0x4e4] sm:$0xf]  ;;  %v5347_v59 = vor.u32 %v7434_v49, %v5346_v48 }
  0x2b   :  { %1836 = vmatpush.bf16.msra.mxu1 %v5483_v19  ;;  %v5676_v56 = vld [vmem:[#allocation5 + $0x510] sm:$0xf0]  ;;  %v8095_v57 = vor.u32 %v7353_v53, %v5038_v52  ;;  %v7607_v60 = vld [vmem:[#allocation5 + $0x7e4] sm:$0xf]  ;;  %v5298_v62 = vld [vmem:[#allocation5 + $0x1e8] sm:$0xf]  ;;  %v5731_v63 = vor.u32 %v7530_v51, %v5730_v50 }
  0x2c   :  { %1850 = vmatpush.bf16.msra.mxu2 %v5867_v20  ;;  %1864 = vmatpush.bf16.msra.mxu3 %v5103_v24  ;;  %v6060_v61 = vld [vmem:[#allocation5 + $0x810] sm:$0xf0]  ;;  %v7422_v0 = vld [vmem:[#allocation5 + $0x214] sm:$0xf0]  ;;  %v7352_v1 = vld [vmem:[#allocation2 + $0x4] sm:$0xf]  ;;  %v5679_v6 = vor.u32 %v7511_v55, %v5676_v56 }
  0x2d   :  { %v5040_v2 = vld [vmem:[#allocation2 + $0xc] sm:$0xf0]  ;;  %v5682_v3 = vld [vmem:[#allocation5 + $0x4e8] sm:$0xf]  ;;  %v7499_v7 = vld [vmem:[#allocation5 + $0x484] sm:$0xf]  ;;  %v6063_v9 = vor.u32 %v7607_v60, %v6060_v61  ;;  %v5299_v10 = vor.u32 %v7422_v0, %v5298_v62 }
  0x2e   :  { %1823 = vmatpush.bf16.msra.mxu0 %v5051_v31  ;;  %v7518_v4 = vld [vmem:[#allocation5 + $0x514] sm:$0xf0]  ;;  %v8098_v5 = vor.u32 %v7352_v1, %v5040_v2  ;;  %v5628_v8 = vld [vmem:[#allocation5 + $0x4b0] sm:$0xf0]  ;;  %v7595_v11 = vld [vmem:[#allocation5 + $0x784] sm:$0xf] }
  0x2f   :  { %1837 = vmatpush.bf16.msra.mxu1 %v5435_v35  ;;  %v6012_v12 = vld [vmem:[#allocation5 + $0x7b0] sm:$0xf0]  ;;  %v5046_v13 = vld [vmem:[#allocation2 + $0x8] sm:$0xf]  ;;  %v5683_v14 = vor.u32 %v7518_v4, %v5682_v3  ;;  %v5250_v15 = vld [vmem:[#allocation5 + $0x188] sm:$0xf]  ;;  %v5631_v21 = vor.u32 %v7499_v7, %v5628_v8 }
  0x30   :  { %1851 = vmatpush.bf16.msra.mxu2 %v5819_v36  ;;  %1865 = vmatpush.bf16.msra.mxu3 %v5055_v39  ;;  %v7410_v16 = vld [vmem:[#allocation5 + $0x1b4] sm:$0xf0]  ;;  %v7354_v17 = vld [vmem:[#allocation2 + $0x10] sm:$0xf0]  ;;  %v5634_v18 = vld [vmem:[#allocation5 + $0x488] sm:$0xf]  ;;  %v6015_v22 = vor.u32 %v7595_v11, %v6012_v12 }
  0x31   :  { %1824 = vmatmul.bf16.vlgmr.msra.gmra.mxu0 %v8095_v57  ;;  %v7506_v19 = vld [vmem:[#allocation5 + $0x4b4] sm:$0xf0]  ;;  %v8102_v20 = vor.u32 %v7354_v17, %v5046_v13  ;;  %v5251_v23 = vor.u32 %v7410_v16, %v5250_v15  ;;  %v7487_v24 = vld [vmem:[#allocation5 + $0x424] sm:$0xf]  ;;  %v5580_v25 = vld [vmem:[#allocation5 + $0x450] sm:$0xf0] }
  0x32   :  { %1872 = vmatpush.bf16.msrb.mxu0 %v5775_v40  ;;  %1838 = vmatmul.bf16.vlgmr.msra.gmra.mxu1 %v8098_v5  ;;  %v7583_v26 = vld [vmem:[#allocation5 + $0x724] sm:$0xf]  ;;  %v5635_v27 = vor.u32 %v7506_v19, %v5634_v18  ;;  %v5964_v28 = vld [vmem:[#allocation5 + $0x750] sm:$0xf0]  ;;  %v5202_v29 = vld [vmem:[#allocation5 + $0x128] sm:$0xf]  ;;  %v5583_v33 = vor.u32 %v7487_v24, %v5580_v25 }
  0x33   :  { %1886 = vmatpush.bf16.msrb.mxu1 %v6159_v42  ;;  %1866 = vmatmul.bf16.vlgmr.msra.gmra.mxu3 %v8095_v57  ;;  %v7398_v30 = vld [vmem:[#allocation5 + $0x154] sm:$0xf0]  ;;  %v5586_v31 = vld [vmem:[#allocation5 + $0x428] sm:$0xf]  ;;  %v5967_v34 = vor.u32 %v7583_v26, %v5964_v28  ;;  %v7475_v36 = vld [vmem:[#allocation5 + $0x3c4] sm:$0xf] }
  0x34   :  { %1900 = vmatpush.bf16.msrb.mxu2 %v5395_v43  ;;  %1914 = vmatpush.bf16.msrb.mxu3 %v5779_v47  ;;  %v7494_v32 = vld [vmem:[#allocation5 + $0x454] sm:$0xf0]  ;;  %v5203_v35 = vor.u32 %v7398_v30, %v5202_v29  ;;  %v5532_v37 = vld [vmem:[#allocation5 + $0x3f0] sm:$0xf0]  ;;  %v7571_v38 = vld [vmem:[#allocation5 + $0x6c4] sm:$0xf] }
  0x35   :  { %1852 = vmatmul.bf16.vlgmr.msra.gmra.mxu2 %v8102_v20  ;;  %v5587_v39 = vor.u32 %v7494_v32, %v5586_v31  ;;  %v5916_v40 = vld [vmem:[#allocation5 + $0x6f0] sm:$0xf0]  ;;  %v5154_v41 = vld [vmem:[#allocation5 + $0xc8] sm:$0xf]  ;;  %v7386_v42 = vld [vmem:[#allocation5 + $0xf4] sm:$0xf0]  ;;  %v5535_v45 = vor.u32 %v7475_v36, %v5532_v37 }
  0x36   :  { %1873 = vmatpush.bf16.msrb.mxu0 %v5727_v54  ;;  %v5538_v43 = vld [vmem:[#allocation5 + $0x3c8] sm:$0xf]  ;;  %v7482_v44 = vld [vmem:[#allocation5 + $0x3f4] sm:$0xf0]  ;;  %v5919_v46 = vor.u32 %v7571_v38, %v5916_v40  ;;  %v5155_v47 = vor.u32 %v7386_v42, %v5154_v41  ;;  %v7463_v48 = vld [vmem:[#allocation5 + $0x364] sm:$0xf] }
  0x37   :  { %1887 = vmatpush.bf16.msrb.mxu1 %v6111_v58  ;;  %v5484_v49 = vld [vmem:[#allocation5 + $0x390] sm:$0xf0]  ;;  %v7559_v50 = vld [vmem:[#allocation5 + $0x664] sm:$0xf]  ;;  %v5539_v51 = vor.u32 %v7482_v44, %v5538_v43  ;;  %v5106_v53 = vld [vmem:[#allocation5 + $0x68] sm:$0xf] }
  0x38   :  { %1901 = vmatpush.bf16.msrb.mxu2 %v5347_v59  ;;  %1915 = vmatpush.bf16.msrb.mxu3 %v5731_v63  ;;  %v5868_v52 = vld [vmem:[#allocation5 + $0x690] sm:$0xf0]  ;;  %v7374_v54 = vld [vmem:[#allocation5 + $0x94] sm:$0xf0]  ;;  %v5490_v55 = vld [vmem:[#allocation5 + $0x368] sm:$0xf]  ;;  %v5487_v58 = vor.u32 %v7463_v48, %v5484_v49 }
  0x39   :  { %v7470_v56 = vld [vmem:[#allocation5 + $0x394] sm:$0xf0]  ;;  %v7451_v59 = vld [vmem:[#allocation5 + $0x304] sm:$0xf]  ;;  %v5436_v60 = vld [vmem:[#allocation5 + $0x330] sm:$0xf0]  ;;  %v5871_v61 = vor.u32 %v7559_v50, %v5868_v52  ;;  %v5107_v62 = vor.u32 %v7374_v54, %v5106_v53 }
  0x3a   :  { %1874 = vmatpush.bf16.msrb.mxu0 %v5679_v6  ;;  %v7547_v63 = vld [vmem:[#allocation5 + $0x604] sm:$0xf]  ;;  %v5820_v0 = vld [vmem:[#allocation5 + $0x630] sm:$0xf0]  ;;  %v5058_v1 = vld [vmem:[#allocation5 + $0x8] sm:$0xf]  ;;  %v5491_v2 = vor.u32 %v7470_v56, %v5490_v55 }
  0x3b   :  { %1888 = vmatpush.bf16.msrb.mxu1 %v6063_v9  ;;  %v7362_v3 = vld [vmem:[#allocation5 + $0x34] sm:$0xf0]  ;;  %v5442_v4 = vld [vmem:[#allocation5 + $0x308] sm:$0xf]  ;;  %v7440_v9 = vld [vmem:[#allocation5 + $0x2ac] sm:$0xf] }
  0x3c   :  { %1902 = vmatpush.bf16.msrb.mxu2 %v5299_v10  ;;  %1916 = vmatpush.bf16.msrb.mxu3 %v5683_v14  ;;  %v7458_v6 = vld [vmem:[#allocation5 + $0x334] sm:$0xf0]  ;;  %v6162_v7 = vld [vmem:[#allocation5 + $0x8a8] sm:$0xf]  ;;  %v5439_v10 = vor.u32 %v7451_v59, %v5436_v60  ;;  %v5396_v11 = vld [vmem:[#allocation5 + $0x2d8] sm:$0xf0]  ;;  %v5823_v14 = vor.u32 %v7547_v63, %v5820_v0  ;;  %v5059_v15 = vor.u32 %v7362_v3, %v5058_v1 }
  0x3d   :  { %v7638_v8 = vld [vmem:[#allocation5 + $0x8d4] sm:$0xf0]  ;;  %v7536_v12 = vld [vmem:[#allocation5 + $0x5ac] sm:$0xf]  ;;  %v5780_v13 = vld [vmem:[#allocation5 + $0x5d8] sm:$0xf0]  ;;  %v5443_v18 = vor.u32 %v7458_v6, %v5442_v4 }
  0x3e   :  { %1875 = vmatpush.bf16.msrb.mxu0 %v5631_v21  ;;  %v7632_v16 = vld [vmem:[#allocation5 + $0x8ac] sm:$0xf]  ;;  %v6164_v17 = vld [vmem:[#allocation5 + $0x8d8] sm:$0xf0]  ;;  %v6163_v19 = vor.u32 %v7638_v8, %v6162_v7  ;;  %v5399_v21 = vor.u32 %v7440_v9, %v5396_v11  ;;  %v7626_v24 = vld [vmem:[#allocation5 + $0x874] sm:$0xf0] }
  0x3f   :  { %1889 = vmatpush.bf16.msrb.mxu1 %v6015_v22  ;;  %v5783_v22 = vor.u32 %v7536_v12, %v5780_v13  ;;  %v7428_v25 = vld [vmem:[#allocation5 + $0x24c] sm:$0xf]  ;;  %v6167_v26 = vor.u32 %v7632_v16, %v6164_v17  ;;  %v5732_v29 = vld [vmem:[#allocation5 + $0x578] sm:$0xf0]  ;;  %v7614_v36 = vld [vmem:[#allocation5 + $0x814] sm:$0xf0] }
  0x40   :  { %1903 = vmatpush.bf16.msrb.mxu2 %v5251_v23  ;;  %1917 = vmatpush.bf16.msrb.mxu3 %v5635_v27  ;;  %v6114_v23 = vld [vmem:[#allocation5 + $0x848] sm:$0xf]  ;;  %v5348_v27 = vld [vmem:[#allocation5 + $0x278] sm:$0xf0]  ;;  %v7524_v28 = vld [vmem:[#allocation5 + $0x54c] sm:$0xf] }
  0x41   :  { %v7620_v30 = vld [vmem:[#allocation5 + $0x84c] sm:$0xf]  ;;  %v6116_v31 = vld [vmem:[#allocation5 + $0x878] sm:$0xf0]  ;;  %v6115_v32 = vor.u32 %v7626_v24, %v6114_v23  ;;  %v7602_v48 = vld [vmem:[#allocation5 + $0x7b4] sm:$0xf0] }
  0x42   :  { %1876 = vmatpush.bf16.msrb.mxu0 %v5583_v33  ;;  %v5351_v33 = vor.u32 %v7428_v25, %v5348_v27  ;;  %v7416_v37 = vld [vmem:[#allocation5 + $0x1ec] sm:$0xf]  ;;  %v6119_v38 = vor.u32 %v7620_v30, %v6116_v31  ;;  %v5684_v41 = vld [vmem:[#allocation5 + $0x518] sm:$0xf0]  ;;  %v5970_v60 = vld [vmem:[#allocation5 + $0x728] sm:$0xf] }
  0x43   :  { %1890 = vmatpush.bf16.msrb.mxu1 %v5967_v34  ;;  %v5735_v34 = vor.u32 %v7524_v28, %v5732_v29  ;;  %v7512_v40 = vld [vmem:[#allocation5 + $0x4ec] sm:$0xf]  ;;  %v6068_v43 = vld [vmem:[#allocation5 + $0x818] sm:$0xf0]  ;;  %v5922_v9 = vld [vmem:[#allocation5 + $0x6c8] sm:$0xf] }
  0x44   :  { %1904 = vmatpush.bf16.msrb.mxu2 %v5203_v35  ;;  %1918 = vmatpush.bf16.msrb.mxu3 %v5587_v39  ;;  %v6066_v35 = vld [vmem:[#allocation5 + $0x7e8] sm:$0xf]  ;;  %v5300_v39 = vld [vmem:[#allocation5 + $0x218] sm:$0xf0]  ;;  %v7608_v42 = vld [vmem:[#allocation5 + $0x7ec] sm:$0xf] }
  0x45   :  { %v6067_v44 = vor.u32 %v7614_v36, %v6066_v35  ;;  %v7404_v49 = vld [vmem:[#allocation5 + $0x18c] sm:$0xf]  ;;  %v6071_v50 = vor.u32 %v7608_v42, %v6068_v43  ;;  %v5636_v53 = vld [vmem:[#allocation5 + $0x4b8] sm:$0xf0]  ;;  %v7566_v23 = vld [vmem:[#allocation5 + $0x694] sm:$0xf0] }
  0x46   :  { %1877 = vmatpush.bf16.msrb.mxu0 %v5535_v45  ;;  %v5303_v45 = vor.u32 %v7416_v37, %v5300_v39  ;;  %v7500_v52 = vld [vmem:[#allocation5 + $0x48c] sm:$0xf]  ;;  %v6020_v55 = vld [vmem:[#allocation5 + $0x7b8] sm:$0xf0]  ;;  %v5402_v43 = vld [vmem:[#allocation5 + $0x2b0] sm:$0xf] }
  0x47   :  { %1891 = vmatpush.bf16.msrb.mxu1 %v5919_v46  ;;  %v5687_v46 = vor.u32 %v7512_v40, %v5684_v41  ;;  %v7596_v54 = vld [vmem:[#allocation5 + $0x78c] sm:$0xf]  ;;  %v5639_v59 = vor.u32 %v7500_v52, %v5636_v53  ;;  %v5204_v0 = vld [vmem:[#allocation5 + $0x158] sm:$0xf0]  ;;  %v7441_v52 = vld [vmem:[#allocation5 + $0x2b4] sm:$0xf] }
  0x48   :  { %1905 = vmatpush.bf16.msrb.mxu2 %v5155_v47  ;;  %1919 = vmatpush.bf16.msrb.mxu3 %v5539_v51  ;;  %v6018_v47 = vld [vmem:[#allocation5 + $0x788] sm:$0xf]  ;;  %v5252_v51 = vld [vmem:[#allocation5 + $0x1b8] sm:$0xf0]  ;;  %v6023_v63 = vor.u32 %v7596_v54, %v6020_v55  ;;  %v7488_v1 = vld [vmem:[#allocation5 + $0x42c] sm:$0xf] }
  0x49   :  { %v6019_v56 = vor.u32 %v7602_v48, %v6018_v47  ;;  %v7584_v3 = vld [vmem:[#allocation5 + $0x72c] sm:$0xf]  ;;  %v5972_v4 = vld [vmem:[#allocation5 + $0x758] sm:$0xf0]  ;;  %v7543_v47 = vld [vmem:[#allocation5 + $0x5dc] sm:$0xf0] }
  0x4a   :  { %1878 = vmatpush.bf16.msrb.mxu0 %v5487_v58  ;;  %v5255_v58 = vor.u32 %v7404_v49, %v5252_v51  ;;  %v7380_v11 = vld [vmem:[#allocation5 + $0xcc] sm:$0xf]  ;;  %v5975_v12 = vor.u32 %v7584_v3, %v5972_v4  ;;  %v5156_v13 = vld [vmem:[#allocation5 + $0xf8] sm:$0xf0]  ;;  %v6170_v48 = vld [vmem:[#allocation5 + $0x8b0] sm:$0xf] }
  0x4b   :  { %1892 = vmatpush.bf16.msrb.mxu1 %v5871_v61  ;;  %v7590_v61 = vld [vmem:[#allocation5 + $0x754] sm:$0xf0]  ;;  %v7572_v16 = vld [vmem:[#allocation5 + $0x6cc] sm:$0xf]  ;;  %v5924_v17 = vld [vmem:[#allocation5 + $0x6f8] sm:$0xf0] }
  0x4c   :  { %1906 = vmatpush.bf16.msrb.mxu2 %v5107_v62  ;;  %1920 = vmatpush.bf16.msrb.mxu3 %v5491_v2  ;;  %v7392_v62 = vld [vmem:[#allocation5 + $0x12c] sm:$0xf]  ;;  %v5588_v2 = vld [vmem:[#allocation5 + $0x458] sm:$0xf0]  ;;  %v5971_v6 = vor.u32 %v7590_v61, %v5970_v60  ;;  %v5927_v25 = vor.u32 %v7572_v16, %v5924_v17  ;;  %v7639_v49 = vld [vmem:[#allocation5 + $0x8dc] sm:$0xf0] }
  0x4d   :  { %v5207_v7 = vor.u32 %v7392_v62, %v5204_v0  ;;  %v5591_v8 = vor.u32 %v7488_v1, %v5588_v2  ;;  %v7368_v24 = vld [vmem:[#allocation5 + $0x6c] sm:$0xf]  ;;  %v5492_v28 = vld [vmem:[#allocation5 + $0x398] sm:$0xf0]  ;;  %v5404_v53 = vld [vmem:[#allocation5 + $0x2e0] sm:$0xf0] }
  0x4e   :  { %1879 = vmatpush.bf16.msrb.mxu0 %v5439_v10  ;;  %v7578_v10 = vld [vmem:[#allocation5 + $0x6f4] sm:$0xf0]  ;;  %v7464_v27 = vld [vmem:[#allocation5 + $0x36c] sm:$0xf]  ;;  %v5876_v30 = vld [vmem:[#allocation5 + $0x698] sm:$0xf0]  ;;  %v5407_v62 = vor.u32 %v7441_v52, %v5404_v53 }
  0x4f   :  { %1893 = vmatpush.bf16.msrb.mxu1 %v5823_v14  ;;  %v7476_v14 = vld [vmem:[#allocation5 + $0x3cc] sm:$0xf]  ;;  %v5495_v35 = vor.u32 %v7464_v27, %v5492_v28  ;;  %v5060_v37 = vld [vmem:[#allocation5 + $0x38] sm:$0xf0]  ;;  %v7435_v60 = vld [vmem:[#allocation5 + $0x27c] sm:$0xf0] }
  0x50   :  { %1907 = vmatpush.bf16.msrb.mxu2 %v5059_v15  ;;  %1921 = vmatpush.bf16.msrb.mxu3 %v5443_v18  ;;  %v5540_v15 = vld [vmem:[#allocation5 + $0x3f8] sm:$0xf0]  ;;  %v5923_v18 = vor.u32 %v7578_v10, %v5922_v9  ;;  %v7560_v29 = vld [vmem:[#allocation5 + $0x66c] sm:$0xf]  ;;  %v5738_v61 = vld [vmem:[#allocation5 + $0x550] sm:$0xf] }
  0x51   :  { %1880 = vmatmul.bf16.vlgmr.msrb.gmra.mxu0 %v8098_v5  ;;  %v7356_v36 = vld [vmem:[#allocation5 + $0xc] sm:$0xf]  ;;  %v5879_v39 = vor.u32 %v7560_v29, %v5876_v30  ;;  %v5444_v40 = vld [vmem:[#allocation5 + $0x338] sm:$0xf0]  ;;  %v6122_v0 = vld [vmem:[#allocation5 + $0x850] sm:$0xf] }
  0x52   :  { %1928 = vmatpush.bf16.msra.mxu0 %v6163_v19  ;;  %1894 = vmatmul.bf16.vlgmr.msrb.gmra.mxu1 %v8102_v20  ;;  %v5159_v19 = vor.u32 %v7380_v11, %v5156_v13  ;;  %v7548_v41 = vld [vmem:[#allocation5 + $0x60c] sm:$0xf]  ;;  %v5828_v42 = vld [vmem:[#allocation5 + $0x638] sm:$0xf0]  ;;  %v7627_v1 = vld [vmem:[#allocation5 + $0x87c] sm:$0xf0] }
  0x53   :  { %1942 = vmatpush.bf16.msra.mxu1 %v5399_v21  ;;  %1908 = vmatmul.bf16.vlgmr.msrb.gmra.mxu2 %v8095_v57  ;;  %v5543_v21 = vor.u32 %v7476_v14, %v5540_v15  ;;  %v5831_v54 = vor.u32 %v7548_v41, %v5828_v42  ;;  %v7429_v2 = vld [vmem:[#allocation5 + $0x254] sm:$0xf]  ;;  %v5356_v3 = vld [vmem:[#allocation5 + $0x280] sm:$0xf0]  ;;  %v7423_v9 = vld [vmem:[#allocation5 + $0x21c] sm:$0xf0] }
  0x54   :  { %1956 = vmatpush.bf16.msra.mxu2 %v5783_v22  ;;  %1970 = vmatpush.bf16.msra.mxu3 %v6167_v26  ;;  %v5874_v22 = vld [vmem:[#allocation5 + $0x668] sm:$0xf]  ;;  %v5108_v26 = vld [vmem:[#allocation5 + $0x98] sm:$0xf0]  ;;  %v5690_v10 = vld [vmem:[#allocation5 + $0x4f0] sm:$0xf]  ;;  %v5359_v11 = vor.u32 %v7429_v2, %v5356_v3 }
  0x55   :  { %1922 = vmatmul.bf16.vlgmr.msrb.gmra.mxu3 %v8098_v5  ;;  %v5875_v31 = vor.u32 %v7566_v23, %v5874_v22  ;;  %v6074_v13 = vld [vmem:[#allocation5 + $0x7f0] sm:$0xf]  ;;  %v7615_v14 = vld [vmem:[#allocation5 + $0x81c] sm:$0xf0]  ;;  %v7417_v15 = vld [vmem:[#allocation5 + $0x1f4] sm:$0xf] }
  0x56   :  { %1929 = vmatpush.bf16.msra.mxu0 %v6115_v32  ;;  %v5826_v32 = vld [vmem:[#allocation5 + $0x608] sm:$0xf]  ;;  %v5308_v16 = vld [vmem:[#allocation5 + $0x220] sm:$0xf0]  ;;  %v7411_v22 = vld [vmem:[#allocation5 + $0x1bc] sm:$0xf0] }
  0x57   :  { %1943 = vmatpush.bf16.msra.mxu1 %v5351_v33  ;;  %v7554_v33 = vld [vmem:[#allocation5 + $0x634] sm:$0xf0]  ;;  %v5642_v23 = vld [vmem:[#allocation5 + $0x490] sm:$0xf]  ;;  %v7603_v27 = vld [vmem:[#allocation5 + $0x7bc] sm:$0xf0] }
  0x58   :  { %1957 = vmatpush.bf16.msra.mxu2 %v5735_v34  ;;  %1971 = vmatpush.bf16.msra.mxu3 %v6119_v38  ;;  %v5111_v34 = vor.u32 %v7368_v24, %v5108_v26  ;;  %v7452_v38 = vld [vmem:[#allocation5 + $0x30c] sm:$0xf]  ;;  %v5311_v24 = vor.u32 %v7417_v15, %v5308_v16  ;;  %v6026_v26 = vld [vmem:[#allocation5 + $0x790] sm:$0xf]  ;;  %v7405_v28 = vld [vmem:[#allocation5 + $0x194] sm:$0xf] }
  0x59   :  { %v5447_v51 = vor.u32 %v7452_v38, %v5444_v40  ;;  %v5260_v29 = vld [vmem:[#allocation5 + $0x1c0] sm:$0xf0]  ;;  %v5978_v38 = vld [vmem:[#allocation5 + $0x730] sm:$0xf]  ;;  %v7393_v40 = vld [vmem:[#allocation5 + $0x134] sm:$0xf] }
  0x5a   :  { %1930 = vmatpush.bf16.msra.mxu0 %v6067_v44  ;;  %v7447_v44 = vld [vmem:[#allocation5 + $0x2dc] sm:$0xf0]  ;;  %v5212_v41 = vld [vmem:[#allocation5 + $0x160] sm:$0xf0]  ;;  %v7381_v52 = vld [vmem:[#allocation5 + $0xd4] sm:$0xf] }
  0x5b   :  { %1944 = vmatpush.bf16.msra.mxu1 %v5303_v45  ;;  %v5786_v45 = vld [vmem:[#allocation5 + $0x5b0] sm:$0xf]  ;;  %v5403_v55 = vor.u32 %v7447_v44, %v5402_v43  ;;  %v5164_v53 = vld [vmem:[#allocation5 + $0x100] sm:$0xf0]  ;;  %v7537_v16 = vld [vmem:[#allocation5 + $0x5b4] sm:$0xf] }
  0x5c   :  { %1958 = vmatpush.bf16.msra.mxu2 %v5687_v46  ;;  %1972 = vmatpush.bf16.msra.mxu3 %v6071_v50  ;;  %v5827_v46 = vor.u32 %v7554_v33, %v5826_v32  ;;  %v5063_v50 = vor.u32 %v7356_v36, %v5060_v37  ;;  %v6027_v32 = vor.u32 %v7603_v27, %v6026_v26  ;;  %v5210_v33 = vld [vmem:[#allocation5 + $0x130] sm:$0xf]  ;;  %v7495_v37 = vld [vmem:[#allocation5 + $0x45c] sm:$0xf0]  ;;  %v5116_v2 = vld [vmem:[#allocation5 + $0xa0] sm:$0xf0] }
  0x5d   :  { %v5263_v36 = vor.u32 %v7405_v28, %v5260_v29  ;;  %v5068_v15 = vld [vmem:[#allocation5 + $0x40] sm:$0xf0]  ;;  %v5794_v26 = vld [vmem:[#allocation5 + $0x5b8] sm:$0xf]  ;;  %v7544_v27 = vld [vmem:[#allocation5 + $0x5e4] sm:$0xf0] }
  0x5e   :  { %1931 = vmatpush.bf16.msra.mxu0 %v6019_v56  ;;  %v5787_v56 = vor.u32 %v7543_v47, %v5786_v45  ;;  %v5162_v45 = vld [vmem:[#allocation5 + $0xd0] sm:$0xf]  ;;  %s5022_s19 = sshll.u32 %s8516_s5, 4  ;;  %s5023_s19 = int_to_ptr.hbm [resolvable:$true] %s5022_s19 }
  0x5f   :  { %1945 = vmatpush.bf16.msra.mxu1 %v5255_v58  ;;  %v6171_v58 = vor.u32 %v7639_v49, %v6170_v48  ;;  %v5546_v47 = vld [vmem:[#allocation5 + $0x3d0] sm:$0xf]  ;;  %v5215_v48 = vor.u32 %v7393_v40, %v5212_v41  ;;  %v7483_v49 = vld [vmem:[#allocation5 + $0x3fc] sm:$0xf0]  ;;  %v7532_v40 = vld [vmem:[#allocation5 + $0x584] sm:$0xf0] }
  0x60   :  { %1959 = vmatpush.bf16.msra.mxu2 %v5639_v59  ;;  %1973 = vmatpush.bf16.msra.mxu3 %v6023_v63  ;;  %v5354_v59 = vld [vmem:[#allocation5 + $0x250] sm:$0xf]  ;;  %v7531_v63 = vld [vmem:[#allocation5 + $0x57c] sm:$0xf0] }
  0x61   :  { %v5355_v4 = vor.u32 %v7435_v60, %v5354_v59  ;;  %v7375_v59 = vld [vmem:[#allocation5 + $0x9c] sm:$0xf0]  ;;  %v5498_v60 = vld [vmem:[#allocation5 + $0x370] sm:$0xf] }
  0x62   :  { %1932 = vmatpush.bf16.msra.mxu0 %v5971_v6  ;;  %v5739_v6 = vor.u32 %v7531_v63, %v5738_v61  ;;  %v5167_v61 = vor.u32 %v7381_v52, %v5164_v53  ;;  %v5882_v63 = vld [vmem:[#allocation5 + $0x670] sm:$0xf]  ;;  %v7520_v52 = vld [vmem:[#allocation5 + $0x524] sm:$0xf0] }
  0x63   :  { %1946 = vmatpush.bf16.msra.mxu1 %v5207_v7  ;;  %v6123_v7 = vor.u32 %v7627_v1, %v6122_v0  ;;  %v7567_v0 = vld [vmem:[#allocation5 + $0x69c] sm:$0xf0]  ;;  %v7369_v1 = vld [vmem:[#allocation5 + $0x74] sm:$0xf] }
  0x64   :  { %1960 = vmatpush.bf16.msra.mxu2 %v5591_v8  ;;  %1974 = vmatpush.bf16.msra.mxu3 %v5975_v12  ;;  %v5306_v8 = vld [vmem:[#allocation5 + $0x1f0] sm:$0xf]  ;;  %v7519_v12 = vld [vmem:[#allocation5 + $0x51c] sm:$0xf0] }
  0x65   :  { %v5307_v17 = vor.u32 %v7423_v9, %v5306_v8  ;;  %v5883_v8 = vor.u32 %v7567_v0, %v5882_v63  ;;  %v5450_v9 = vld [vmem:[#allocation5 + $0x310] sm:$0xf]  ;;  %v7412_v63 = vld [vmem:[#allocation5 + $0x1c4] sm:$0xf0]  ;;  %v5650_v0 = vld [vmem:[#allocation5 + $0x498] sm:$0xf] }
  0x66   :  { %1933 = vmatpush.bf16.msra.mxu0 %v5923_v18  ;;  %v5691_v18 = vor.u32 %v7519_v12, %v5690_v10  ;;  %v7459_v10 = vld [vmem:[#allocation5 + $0x33c] sm:$0xf0]  ;;  %v5119_v12 = vor.u32 %v7369_v1, %v5116_v2  ;;  %v7508_v1 = vld [vmem:[#allocation5 + $0x4c4] sm:$0xf0] }
  0x67   :  { %1947 = vmatpush.bf16.msra.mxu1 %v5159_v19  ;;  %v6075_v19 = vor.u32 %v7615_v14, %v6074_v13  ;;  %v7555_v13 = vld [vmem:[#allocation5 + $0x63c] sm:$0xf0]  ;;  %v7357_v14 = vld [vmem:[#allocation5 + $0x14] sm:$0xf] }
  0x68   :  { %1961 = vmatpush.bf16.msra.mxu2 %v5543_v21  ;;  %1975 = vmatpush.bf16.msra.mxu3 %v5927_v25  ;;  %v5258_v21 = vld [vmem:[#allocation5 + $0x190] sm:$0xf]  ;;  %v7507_v25 = vld [vmem:[#allocation5 + $0x4bc] sm:$0xf0]  ;;  %v5071_v28 = vor.u32 %v7357_v14, %v5068_v15  ;;  %v7496_v14 = vld [vmem:[#allocation5 + $0x464] sm:$0xf0] }
  0x69   :  { %v5259_v30 = vor.u32 %v7411_v22, %v5258_v21  ;;  %v6172_v21 = vld [vmem:[#allocation5 + $0x8e0] sm:$0xf0]  ;;  %v5410_v22 = vld [vmem:[#allocation5 + $0x2b8] sm:$0xf] }
  0x6a   :  { %1934 = vmatpush.bf16.msra.mxu0 %v5875_v31  ;;  %v5643_v31 = vor.u32 %v7507_v25, %v5642_v23  ;;  %v7448_v23 = vld [vmem:[#allocation5 + $0x2e4] sm:$0xf0] }
  0x6b   :  { %1948 = vmatpush.bf16.msra.mxu1 %v5111_v34  ;;  %v7399_v34 = vld [vmem:[#allocation5 + $0x15c] sm:$0xf0] }
  0x6c   :  { %1962 = vmatpush.bf16.msra.mxu2 %v5495_v35  ;;  %1976 = vmatpush.bf16.msra.mxu3 %v5879_v39  ;;  %v5594_v35 = vld [vmem:[#allocation5 + $0x430] sm:$0xf]  ;;  %v7591_v39 = vld [vmem:[#allocation5 + $0x75c] sm:$0xf0]  ;;  %v5211_v42 = vor.u32 %v7399_v34, %v5210_v33  ;;  %v5740_v33 = vld [vmem:[#allocation5 + $0x580] sm:$0xf0] }
  0x6d   :  { %v5595_v43 = vor.u32 %v7495_v37, %v5594_v35  ;;  %v5979_v44 = vor.u32 %v7591_v39, %v5978_v38  ;;  %v7621_v34 = vld [vmem:[#allocation5 + $0x854] sm:$0xf]  ;;  %v5795_v35 = vor.u32 %v7544_v27, %v5794_v26  ;;  %v5362_v37 = vld [vmem:[#allocation5 + $0x258] sm:$0xf]  ;;  %v7436_v38 = vld [vmem:[#allocation5 + $0x284] sm:$0xf0] }
  0x6e   :  { %1935 = vmatpush.bf16.msra.mxu0 %v5827_v46  ;;  %v7387_v46 = vld [vmem:[#allocation5 + $0xfc] sm:$0xf0]  ;;  %v5746_v39 = vld [vmem:[#allocation5 + $0x558] sm:$0xf]  ;;  %v7484_v27 = vld [vmem:[#allocation5 + $0x404] sm:$0xf0] }
  0x6f   :  { %1949 = vmatpush.bf16.msra.mxu1 %v5063_v50  ;;  %v5930_v50 = vld [vmem:[#allocation5 + $0x6d0] sm:$0xf]  ;;  %v5554_v26 = vld [vmem:[#allocation5 + $0x3d8] sm:$0xf] }
  0x70   :  { %1963 = vmatpush.bf16.msra.mxu2 %v5447_v51  ;;  %1977 = vmatpush.bf16.msra.mxu3 %v5831_v54  ;;  %v7579_v51 = vld [vmem:[#allocation5 + $0x6fc] sm:$0xf0]  ;;  %v5163_v54 = vor.u32 %v7387_v46, %v5162_v45  ;;  %v5692_v45 = vld [vmem:[#allocation5 + $0x520] sm:$0xf0]  ;;  %v7609_v46 = vld [vmem:[#allocation5 + $0x7f4] sm:$0xf] }
  0x71   :  { %1936 = vmatmul.bf16.vlgmr.msra.gmra.mxu0 %v8102_v20 }
  0x72   :  { %1984 = vmatpush.bf16.msrb.mxu0 %v5403_v55  ;;  %1950 = vmatmul.bf16.vlgmr.msra.gmra.mxu1 %v8095_v57  ;;  %v5547_v55 = vor.u32 %v7483_v49, %v5546_v47  ;;  %v5747_v47 = vor.u32 %v7532_v40, %v5746_v39  ;;  %v5314_v49 = vld [vmem:[#allocation5 + $0x1f8] sm:$0xf]  ;;  %v7472_v39 = vld [vmem:[#allocation5 + $0x3a4] sm:$0xf0] }
  0x73   :  { %1998 = vmatpush.bf16.msrb.mxu1 %v5787_v56  ;;  %1964 = vmatmul.bf16.vlgmr.msra.gmra.mxu2 %v8098_v5  ;;  %v5931_v56 = vor.u32 %v7579_v51, %v5930_v50  ;;  %v7424_v50 = vld [vmem:[#allocation5 + $0x224] sm:$0xf0]  ;;  %v5698_v51 = vld [vmem:[#allocation5 + $0x4f8] sm:$0xf] }
  0x74   :  { %2012 = vmatpush.bf16.msrb.mxu2 %v6171_v58  ;;  %2026 = vmatpush.bf16.msrb.mxu3 %v5407_v62  ;;  %v5114_v58 = vld [vmem:[#allocation5 + $0x70] sm:$0xf]  ;;  %v7471_v62 = vld [vmem:[#allocation5 + $0x39c] sm:$0xf0] }
  0x75   :  { %1978 = vmatmul.bf16.vlgmr.msra.gmra.mxu3 %v8102_v20  ;;  %v5115_v3 = vor.u32 %v7375_v59, %v5114_v58  ;;  %v5644_v58 = vld [vmem:[#allocation5 + $0x4c0] sm:$0xf0]  ;;  %v7597_v59 = vld [vmem:[#allocation5 + $0x794] sm:$0xf] }
  0x76   :  { %1985 = vmatpush.bf16.msrb.mxu0 %v5355_v4  ;;  %v5066_v4 = vld [vmem:[#allocation5 + $0x10] sm:$0xf] }
  0x77   :  { %1999 = vmatpush.bf16.msrb.mxu1 %v5739_v6  ;;  %v7363_v6 = vld [vmem:[#allocation5 + $0x3c] sm:$0xf0] }
  0x78   :  { %2013 = vmatpush.bf16.msrb.mxu2 %v6123_v7  ;;  %2027 = vmatpush.bf16.msrb.mxu3 %v5359_v11  ;;  %v5499_v7 = vor.u32 %v7471_v62, %v5498_v60  ;;  %v5834_v11 = vld [vmem:[#allocation5 + $0x610] sm:$0xf]  ;;  %v5699_v60 = vor.u32 %v7520_v52, %v5698_v51  ;;  %v5266_v62 = vld [vmem:[#allocation5 + $0x198] sm:$0xf]  ;;  %v7460_v51 = vld [vmem:[#allocation5 + $0x344] sm:$0xf0] }
  0x79   :  { %v5835_v25 = vor.u32 %v7555_v13, %v5834_v11  ;;  %v5218_v11 = vld [vmem:[#allocation5 + $0x138] sm:$0xf] }
  0x7a   :  { %1986 = vmatpush.bf16.msrb.mxu0 %v5307_v17  ;;  %v5788_v17 = vld [vmem:[#allocation5 + $0x5e0] sm:$0xf0]  ;;  %v5602_v13 = vld [vmem:[#allocation5 + $0x438] sm:$0xf] }
  0x7b   :  { %2000 = vmatpush.bf16.msrb.mxu1 %v5691_v18  ;;  %v7633_v18 = vld [vmem:[#allocation5 + $0x8b4] sm:$0xf]  ;;  %v5791_v29 = vor.u32 %v7537_v16, %v5788_v17  ;;  %v6178_v52 = vld [vmem:[#allocation5 + $0x8b8] sm:$0xf] }
  0x7c   :  { %2014 = vmatpush.bf16.msrb.mxu2 %v6075_v19  ;;  %2028 = vmatpush.bf16.msrb.mxu3 %v5311_v24  ;;  %v5067_v19 = vor.u32 %v7363_v6, %v5066_v4  ;;  %v5451_v24 = vor.u32 %v7459_v10, %v5450_v9  ;;  %v5267_v4 = vor.u32 %v7412_v63, %v5266_v62  ;;  %v7489_v6 = vld [vmem:[#allocation5 + $0x434] sm:$0xf]  ;;  %v5980_v10 = vld [vmem:[#allocation5 + $0x760] sm:$0xf0]  ;;  %v7634_v62 = vld [vmem:[#allocation5 + $0x8bc] sm:$0xf] }
  0x7d   :  { %v5651_v9 = vor.u32 %v7508_v1, %v5650_v0  ;;  %v6180_v63 = vld [vmem:[#allocation5 + $0x8e8] sm:$0xf0] }
  0x7e   :  { %1987 = vmatpush.bf16.msrb.mxu0 %v5259_v30  ;;  %v6175_v30 = vor.u32 %v7633_v18, %v6172_v21  ;;  %v7477_v18 = vld [vmem:[#allocation5 + $0x3d4] sm:$0xf] }
  0x7f   :  { %2001 = vmatpush.bf16.msrb.mxu1 %v5643_v31  ;;  %v5411_v31 = vor.u32 %v7448_v23, %v5410_v22  ;;  %v7573_v21 = vld [vmem:[#allocation5 + $0x6d4] sm:$0xf]  ;;  %v5603_v22 = vor.u32 %v7496_v14, %v5602_v13  ;;  %v5932_v23 = vld [vmem:[#allocation5 + $0x700] sm:$0xf0]  ;;  %v6132_v13 = vld [vmem:[#allocation5 + $0x888] sm:$0xf0] }
  0x80   :  { %2015 = vmatpush.bf16.msrb.mxu2 %v6027_v32  ;;  %2029 = vmatpush.bf16.msrb.mxu3 %v5263_v36  ;;  %v7525_v32 = vld [vmem:[#allocation5 + $0x554] sm:$0xf]  ;;  %v6124_v36 = vld [vmem:[#allocation5 + $0x880] sm:$0xf0] }
  0x81   :  { %v5743_v41 = vor.u32 %v7525_v32, %v5740_v33  ;;  %v5500_v32 = vld [vmem:[#allocation5 + $0x3a0] sm:$0xf0]  ;;  %v7561_v33 = vld [vmem:[#allocation5 + $0x674] sm:$0xf] }
  0x82   :  { %1988 = vmatpush.bf16.msrb.mxu0 %v5211_v42  ;;  %v6127_v42 = vor.u32 %v7621_v34, %v6124_v36  ;;  %v5555_v34 = vor.u32 %v7484_v27, %v5554_v26  ;;  %v5122_v36 = vld [vmem:[#allocation5 + $0x78] sm:$0xf]  ;;  %v6084_v26 = vld [vmem:[#allocation5 + $0x828] sm:$0xf0] }
  0x83   :  { %2002 = vmatpush.bf16.msrb.mxu1 %v5595_v43  ;;  %v5363_v43 = vor.u32 %v7436_v38, %v5362_v37  ;;  %v7376_v37 = vld [vmem:[#allocation5 + $0xa4] sm:$0xf0]  ;;  %v5506_v38 = vld [vmem:[#allocation5 + $0x378] sm:$0xf] }
  0x84   :  { %2016 = vmatpush.bf16.msrb.mxu2 %v5979_v44  ;;  %2030 = vmatpush.bf16.msrb.mxu3 %v5215_v48  ;;  %v7513_v44 = vld [vmem:[#allocation5 + $0x4f4] sm:$0xf]  ;;  %v6076_v48 = vld [vmem:[#allocation5 + $0x820] sm:$0xf0] }
  0x85   :  { %v5695_v53 = vor.u32 %v7513_v44, %v5692_v45  ;;  %v5123_v44 = vor.u32 %v7376_v37, %v5122_v36  ;;  %v7549_v45 = vld [vmem:[#allocation5 + $0x614] sm:$0xf]  ;;  %v5652_v36 = vld [vmem:[#allocation5 + $0x4c8] sm:$0xf0]  ;;  %v7598_v37 = vld [vmem:[#allocation5 + $0x79c] sm:$0xf] }
  0x86   :  { %1989 = vmatpush.bf16.msrb.mxu0 %v5163_v54  ;;  %v6079_v54 = vor.u32 %v7609_v46, %v6076_v48  ;;  %v5836_v46 = vld [vmem:[#allocation5 + $0x640] sm:$0xf0]  ;;  %v5507_v48 = vor.u32 %v7472_v39, %v5506_v38  ;;  %v6036_v38 = vld [vmem:[#allocation5 + $0x7c8] sm:$0xf0] }
  0x87   :  { %2003 = vmatpush.bf16.msrb.mxu1 %v5547_v55  ;;  %v5315_v55 = vor.u32 %v7424_v50, %v5314_v49  ;;  %v7364_v49 = vld [vmem:[#allocation5 + $0x44] sm:$0xf0]  ;;  %v5458_v50 = vld [vmem:[#allocation5 + $0x318] sm:$0xf] }
  0x88   :  { %2017 = vmatpush.bf16.msrb.mxu2 %v5931_v56  ;;  %2031 = vmatpush.bf16.msrb.mxu3 %v5167_v61  ;;  %v7501_v56 = vld [vmem:[#allocation5 + $0x494] sm:$0xf]  ;;  %v6028_v61 = vld [vmem:[#allocation5 + $0x7c0] sm:$0xf0]  ;;  %v5459_v0 = vor.u32 %v7460_v51, %v5458_v50  ;;  %v5988_v50 = vld [vmem:[#allocation5 + $0x768] sm:$0xf0] }
  0x89   :  { %v5647_v2 = vor.u32 %v7501_v56, %v5644_v58  ;;  %v5412_v56 = vld [vmem:[#allocation5 + $0x2e8] sm:$0xf0]  ;;  %v7538_v58 = vld [vmem:[#allocation5 + $0x5bc] sm:$0xf] }
  0x8a   :  { %1990 = vmatpush.bf16.msrb.mxu0 %v5115_v3  ;;  %v6031_v3 = vor.u32 %v7597_v59, %v6028_v61  ;;  %v5796_v59 = vld [vmem:[#allocation5 + $0x5e8] sm:$0xf0] }
  0x8b   :  { %2004 = vmatpush.bf16.msrb.mxu1 %v5499_v7  ;;  %v5596_v7 = vld [vmem:[#allocation5 + $0x460] sm:$0xf0] }
  0x8c   :  { %2018 = vmatpush.bf16.msrb.mxu2 %v5883_v8  ;;  %2032 = vmatpush.bf16.msrb.mxu3 %v5119_v12  ;;  %v7585_v8 = vld [vmem:[#allocation5 + $0x734] sm:$0xf]  ;;  %v7400_v12 = vld [vmem:[#allocation5 + $0x164] sm:$0xf0]  ;;  %v5599_v15 = vor.u32 %v7489_v6, %v5596_v7  ;;  %v7430_v7 = vld [vmem:[#allocation5 + $0x25c] sm:$0xf] }
  0x8d   :  { %v5983_v16 = vor.u32 %v7585_v8, %v5980_v10  ;;  %v5219_v17 = vor.u32 %v7400_v12, %v5218_v11  ;;  %v7628_v6 = vld [vmem:[#allocation5 + $0x884] sm:$0xf0]  ;;  %v6183_v8 = vor.u32 %v7634_v62, %v6180_v63  ;;  %v7526_v10 = vld [vmem:[#allocation5 + $0x55c] sm:$0xf]  ;;  %v5748_v11 = vld [vmem:[#allocation5 + $0x588] sm:$0xf0] }
  0x8e   :  { %1991 = vmatpush.bf16.msrb.mxu0 %v5067_v19  ;;  %v5548_v19 = vld [vmem:[#allocation5 + $0x400] sm:$0xf0]  ;;  %v7622_v12 = vld [vmem:[#allocation5 + $0x85c] sm:$0xf]  ;;  %v5940_v63 = vld [vmem:[#allocation5 + $0x708] sm:$0xf0] }
  0x8f   :  { %2005 = vmatpush.bf16.msrb.mxu1 %v5451_v24  ;;  %v5170_v24 = vld [vmem:[#allocation5 + $0xd8] sm:$0xf]  ;;  %v7574_v62 = vld [vmem:[#allocation5 + $0x6dc] sm:$0xf] }
  0x90   :  { %2019 = vmatpush.bf16.msrb.mxu2 %v5835_v25  ;;  %2033 = vmatpush.bf16.msrb.mxu3 %v5071_v28  ;;  %v7388_v25 = vld [vmem:[#allocation5 + $0x104] sm:$0xf0]  ;;  %v5551_v28 = vor.u32 %v7477_v18, %v5548_v19  ;;  %v7418_v19 = vld [vmem:[#allocation5 + $0x1fc] sm:$0xf] }
  0x91   :  { %1992 = vmatmul.bf16.vlgmr.msrb.gmra.mxu0 %v8095_v57  ;;  %v7616_v18 = vld [vmem:[#allocation5 + $0x824] sm:$0xf0] }
  0x92   :  { %2040 = vmatpush.bf16.msra.mxu0 %v5791_v29  ;;  %2006 = vmatmul.bf16.vlgmr.msrb.gmra.mxu1 %v8098_v5  ;;  %v5935_v29 = vor.u32 %v7573_v21, %v5932_v23  ;;  %v6135_v21 = vor.u32 %v7622_v12, %v6132_v13  ;;  %v7514_v23 = vld [vmem:[#allocation5 + $0x4fc] sm:$0xf]  ;;  %v5892_v12 = vld [vmem:[#allocation5 + $0x6a8] sm:$0xf0] }
  0x93   :  { %2054 = vmatpush.bf16.msra.mxu1 %v6175_v30  ;;  %2020 = vmatmul.bf16.vlgmr.msrb.gmra.mxu2 %v8102_v20  ;;  %v5171_v30 = vor.u32 %v7388_v25, %v5170_v24  ;;  %v5700_v24 = vld [vmem:[#allocation5 + $0x528] sm:$0xf0]  ;;  %v7610_v25 = vld [vmem:[#allocation5 + $0x7fc] sm:$0xf] }
  0x94   :  { %2068 = vmatpush.bf16.msra.mxu2 %v5411_v31  ;;  %2082 = vmatpush.bf16.msra.mxu3 %v5795_v35  ;;  %v7465_v31 = vld [vmem:[#allocation5 + $0x374] sm:$0xf]  ;;  %v5884_v35 = vld [vmem:[#allocation5 + $0x6a0] sm:$0xf0] }
  0x95   :  { %2034 = vmatmul.bf16.vlgmr.msrb.gmra.mxu3 %v8095_v57  ;;  %v5503_v40 = vor.u32 %v7465_v31, %v5500_v32  ;;  %v7604_v31 = vld [vmem:[#allocation5 + $0x7c4] sm:$0xf0]  ;;  %v7406_v32 = vld [vmem:[#allocation5 + $0x19c] sm:$0xf] }
  0x96   :  { %2041 = vmatpush.bf16.msra.mxu0 %v5743_v41  ;;  %v7453_v41 = vld [vmem:[#allocation5 + $0x314] sm:$0xf] }
  0x97   :  { %2055 = vmatpush.bf16.msra.mxu1 %v6127_v42  ;;  %v5452_v42 = vld [vmem:[#allocation5 + $0x340] sm:$0xf0] }
  0x98   :  { %2069 = vmatpush.bf16.msra.mxu2 %v5363_v43  ;;  %2083 = vmatpush.bf16.msra.mxu3 %v5747_v47  ;;  %v5887_v43 = vor.u32 %v7561_v33, %v5884_v35  ;;  %v5074_v47 = vld [vmem:[#allocation5 + $0x18] sm:$0xf]  ;;  %v6087_v33 = vor.u32 %v7610_v25, %v6084_v26  ;;  %v7502_v35 = vld [vmem:[#allocation5 + $0x49c] sm:$0xf]  ;;  %v5844_v25 = vld [vmem:[#allocation5 + $0x648] sm:$0xf0] }
  0x99   :  { %v5075_v61 = vor.u32 %v7364_v49, %v5074_v47  ;;  %v7490_v47 = vld [vmem:[#allocation5 + $0x43c] sm:$0xf]  ;;  %v5418_v26 = vld [vmem:[#allocation5 + $0x2c0] sm:$0xf] }
  0x9a   :  { %2042 = vmatpush.bf16.msra.mxu0 %v5695_v53  ;;  %v7640_v53 = vld [vmem:[#allocation5 + $0x8e4] sm:$0xf0]  ;;  %v7586_v49 = vld [vmem:[#allocation5 + $0x73c] sm:$0xf] }
  0x9b   :  { %2056 = vmatpush.bf16.msra.mxu1 %v6079_v54  ;;  %v7442_v54 = vld [vmem:[#allocation5 + $0x2bc] sm:$0xf]  ;;  %v6179_v1 = vor.u32 %v7640_v53, %v6178_v52 }
  0x9c   :  { %2070 = vmatpush.bf16.msra.mxu2 %v5315_v55  ;;  %2084 = vmatpush.bf16.msra.mxu3 %v5699_v60  ;;  %v5455_v55 = vor.u32 %v7453_v41, %v5452_v42  ;;  %v5839_v60 = vor.u32 %v7549_v45, %v5836_v46  ;;  %v5655_v41 = vor.u32 %v7502_v35, %v5652_v36  ;;  %v5986_v42 = vld [vmem:[#allocation5 + $0x738] sm:$0xf]  ;;  %v5220_v46 = vld [vmem:[#allocation5 + $0x168] sm:$0xf0]  ;;  %v7443_v35 = vld [vmem:[#allocation5 + $0x2c4] sm:$0xf] }
  0x9d   :  { %v6039_v45 = vor.u32 %v7598_v37, %v6036_v38  ;;  %v5420_v36 = vld [vmem:[#allocation5 + $0x2f0] sm:$0xf0] }
  0x9e   :  { %2043 = vmatpush.bf16.msra.mxu0 %v5647_v2  ;;  %v5415_v2 = vor.u32 %v7442_v54, %v5412_v56  ;;  %v5938_v54 = vld [vmem:[#allocation5 + $0x6d8] sm:$0xf]  ;;  %v7382_v56 = vld [vmem:[#allocation5 + $0xdc] sm:$0xf] }
  0x9f   :  { %2057 = vmatpush.bf16.msra.mxu1 %v6031_v3  ;;  %v5799_v3 = vor.u32 %v7538_v58, %v5796_v59  ;;  %v5991_v58 = vor.u32 %v7586_v49, %v5988_v50  ;;  %v5172_v59 = vld [vmem:[#allocation5 + $0x108] sm:$0xf0]  ;;  %v5372_v49 = vld [vmem:[#allocation5 + $0x290] sm:$0xf0] }
  0xa0   :  { %2071 = vmatpush.bf16.msra.mxu2 %v5267_v4  ;;  %2085 = vmatpush.bf16.msra.mxu3 %v5651_v9  ;;  %v6130_v4 = vld [vmem:[#allocation5 + $0x858] sm:$0xf]  ;;  %v5364_v9 = vld [vmem:[#allocation5 + $0x288] sm:$0xf0] }
  0xa1   :  { %v6131_v14 = vor.u32 %v7628_v6, %v6130_v4  ;;  %v7568_v4 = vld [vmem:[#allocation5 + $0x6a4] sm:$0xf0]  ;;  %v7370_v6 = vld [vmem:[#allocation5 + $0x7c] sm:$0xf] }
  0xa2   :  { %2044 = vmatpush.bf16.msra.mxu0 %v5599_v15  ;;  %v5367_v15 = vor.u32 %v7430_v7, %v5364_v9  ;;  %v5943_v7 = vor.u32 %v7574_v62, %v5940_v63  ;;  %v7466_v9 = vld [vmem:[#allocation5 + $0x37c] sm:$0xf]  ;;  %v5324_v62 = vld [vmem:[#allocation5 + $0x230] sm:$0xf0] }
  0xa3   :  { %2058 = vmatpush.bf16.msra.mxu1 %v5983_v16  ;;  %v5751_v16 = vor.u32 %v7526_v10, %v5748_v11  ;;  %v5508_v10 = vld [vmem:[#allocation5 + $0x3a8] sm:$0xf0]  ;;  %v7562_v11 = vld [vmem:[#allocation5 + $0x67c] sm:$0xf] }
  0xa4   :  { %2072 = vmatpush.bf16.msra.mxu2 %v5219_v17  ;;  %2086 = vmatpush.bf16.msra.mxu3 %v5603_v22  ;;  %v6082_v17 = vld [vmem:[#allocation5 + $0x7f8] sm:$0xf]  ;;  %v5316_v22 = vld [vmem:[#allocation5 + $0x228] sm:$0xf0] }
  0xa5   :  { %v6083_v27 = vor.u32 %v7616_v18, %v6082_v17  ;;  %v5511_v17 = vor.u32 %v7466_v9, %v5508_v10  ;;  %v7358_v18 = vld [vmem:[#allocation5 + $0x1c] sm:$0xf]  ;;  %v7605_v9 = vld [vmem:[#allocation5 + $0x7cc] sm:$0xf0]  ;;  %v7407_v10 = vld [vmem:[#allocation5 + $0x1a4] sm:$0xf] }
  0xa6   :  { %2045 = vmatpush.bf16.msra.mxu0 %v5551_v28  ;;  %v5319_v28 = vor.u32 %v7418_v19, %v5316_v22  ;;  %v5076_v19 = vld [vmem:[#allocation5 + $0x48] sm:$0xf0]  ;;  %v5895_v22 = vor.u32 %v7562_v11, %v5892_v12  ;;  %v5276_v11 = vld [vmem:[#allocation5 + $0x1d0] sm:$0xf0] }
  0xa7   :  { %2059 = vmatpush.bf16.msra.mxu1 %v5935_v29  ;;  %v5703_v29 = vor.u32 %v7514_v23, %v5700_v24  ;;  %v5460_v23 = vld [vmem:[#allocation5 + $0x348] sm:$0xf0]  ;;  %v7550_v24 = vld [vmem:[#allocation5 + $0x61c] sm:$0xf] }
  0xa8   :  { %2073 = vmatpush.bf16.msra.mxu2 %v5171_v30  ;;  %2087 = vmatpush.bf16.msra.mxu3 %v5555_v34  ;;  %v6034_v30 = vld [vmem:[#allocation5 + $0x798] sm:$0xf]  ;;  %v5268_v34 = vld [vmem:[#allocation5 + $0x1c8] sm:$0xf0]  ;;  %v5847_v37 = vor.u32 %v7550_v24, %v5844_v25  ;;  %v5228_v24 = vld [vmem:[#allocation5 + $0x170] sm:$0xf0] }
  0xa9   :  { %v6035_v39 = vor.u32 %v7604_v31, %v6034_v30  ;;  %v7545_v30 = vld [vmem:[#allocation5 + $0x5ec] sm:$0xf0]  ;;  %v6186_v31 = vld [vmem:[#allocation5 + $0x8c0] sm:$0xf] }
  0xaa   :  { %2046 = vmatpush.bf16.msra.mxu0 %v5503_v40  ;;  %v5271_v40 = vor.u32 %v7406_v32, %v5268_v34  ;;  %v7641_v32 = vld [vmem:[#allocation5 + $0x8ec] sm:$0xf0] }
  0xab   :  { %2060 = vmatpush.bf16.msra.mxu1 %v5887_v43  ;;  %v7592_v43 = vld [vmem:[#allocation5 + $0x764] sm:$0xf0] }
  0xac   :  { %2074 = vmatpush.bf16.msra.mxu2 %v5123_v44  ;;  %2088 = vmatpush.bf16.msra.mxu3 %v5507_v48  ;;  %v7394_v44 = vld [vmem:[#allocation5 + $0x13c] sm:$0xf]  ;;  %v5604_v48 = vld [vmem:[#allocation5 + $0x468] sm:$0xf0]  ;;  %v5987_v51 = vor.u32 %v7592_v43, %v5986_v42  ;;  %v7437_v42 = vld [vmem:[#allocation5 + $0x28c] sm:$0xf0] }
  0xad   :  { %v5223_v52 = vor.u32 %v7394_v44, %v5220_v46  ;;  %v5607_v53 = vor.u32 %v7490_v47, %v5604_v48  ;;  %v5754_v43 = vld [vmem:[#allocation5 + $0x560] sm:$0xf]  ;;  %v5423_v44 = vor.u32 %v7443_v35, %v5420_v36  ;;  %v7629_v47 = vld [vmem:[#allocation5 + $0x88c] sm:$0xf0]  ;;  %v7431_v48 = vld [vmem:[#allocation5 + $0x264] sm:$0xf] }
  0xae   :  { %2047 = vmatpush.bf16.msra.mxu0 %v5455_v55  ;;  %v7580_v55 = vld [vmem:[#allocation5 + $0x704] sm:$0xf0]  ;;  %v6138_v46 = vld [vmem:[#allocation5 + $0x860] sm:$0xf]  ;;  %v7383_v35 = vld [vmem:[#allocation5 + $0xe4] sm:$0xf] }
  0xaf   :  { %2061 = vmatpush.bf16.msra.mxu1 %v5839_v60  ;;  %v7478_v60 = vld [vmem:[#allocation5 + $0x3dc] sm:$0xf]  ;;  %v5180_v36 = vld [vmem:[#allocation5 + $0x110] sm:$0xf0] }
  0xb0   :  { %2075 = vmatpush.bf16.msra.mxu2 %v5075_v61  ;;  %2089 = vmatpush.bf16.msra.mxu3 %v5459_v0  ;;  %v5556_v61 = vld [vmem:[#allocation5 + $0x408] sm:$0xf0]  ;;  %v5939_v0 = vor.u32 %v7580_v55, %v5938_v54  ;;  %v7425_v54 = vld [vmem:[#allocation5 + $0x22c] sm:$0xf0]  ;;  %v5706_v55 = vld [vmem:[#allocation5 + $0x500] sm:$0xf] }
  0xb1   :  { %2048 = vmatmul.bf16.vlgmr.msra.gmra.mxu0 %v8098_v5 }
  0xb2   :  { %2096 = vmatpush.bf16.msrb.mxu0 %v6179_v1  ;;  %2062 = vmatmul.bf16.vlgmr.msra.gmra.mxu1 %v8102_v20  ;;  %v5175_v1 = vor.u32 %v7382_v56, %v5172_v59  ;;  %v5375_v56 = vor.u32 %v7431_v48, %v5372_v49  ;;  %v6090_v59 = vld [vmem:[#allocation5 + $0x800] sm:$0xf]  ;;  %v5132_v48 = vld [vmem:[#allocation5 + $0xb0] sm:$0xf0] }
  0xb3   :  { %2110 = vmatpush.bf16.msrb.mxu1 %v5415_v2  ;;  %2076 = vmatmul.bf16.vlgmr.msra.gmra.mxu2 %v8095_v57  ;;  %v5559_v2 = vor.u32 %v7478_v60, %v5556_v61  ;;  %v7617_v60 = vld [vmem:[#allocation5 + $0x82c] sm:$0xf0]  ;;  %v7419_v61 = vld [vmem:[#allocation5 + $0x204] sm:$0xf] }
  0xb4   :  { %2124 = vmatpush.bf16.msrb.mxu2 %v5799_v3  ;;  %2138 = vmatpush.bf16.msrb.mxu3 %v6183_v8  ;;  %v5890_v3 = vld [vmem:[#allocation5 + $0x678] sm:$0xf]  ;;  %v5124_v8 = vld [vmem:[#allocation5 + $0xa8] sm:$0xf0] }
  0xb5   :  { %2090 = vmatmul.bf16.vlgmr.msra.gmra.mxu3 %v8098_v5  ;;  %v5891_v13 = vor.u32 %v7568_v4, %v5890_v3  ;;  %v7413_v3 = vld [vmem:[#allocation5 + $0x1cc] sm:$0xf0]  ;;  %v5658_v4 = vld [vmem:[#allocation5 + $0x4a0] sm:$0xf] }
  0xb6   :  { %2097 = vmatpush.bf16.msrb.mxu0 %v6131_v14  ;;  %v5842_v14 = vld [vmem:[#allocation5 + $0x618] sm:$0xf] }
  0xb7   :  { %2111 = vmatpush.bf16.msrb.mxu1 %v5367_v15  ;;  %v7556_v15 = vld [vmem:[#allocation5 + $0x644] sm:$0xf0] }
  0xb8   :  { %2125 = vmatpush.bf16.msrb.mxu2 %v5751_v16  ;;  %2139 = vmatpush.bf16.msrb.mxu3 %v6135_v21  ;;  %v5127_v16 = vor.u32 %v7370_v6, %v5124_v8  ;;  %v7454_v21 = vld [vmem:[#allocation5 + $0x31c] sm:$0xf]  ;;  %v5327_v6 = vor.u32 %v7419_v61, %v5324_v62  ;;  %v6042_v8 = vld [vmem:[#allocation5 + $0x7a0] sm:$0xf]  ;;  %v5084_v61 = vld [vmem:[#allocation5 + $0x50] sm:$0xf0] }
  0xb9   :  { %v5463_v34 = vor.u32 %v7454_v21, %v5460_v23  ;;  %v5994_v21 = vld [vmem:[#allocation5 + $0x740] sm:$0xf]  ;;  %v7395_v23 = vld [vmem:[#allocation5 + $0x144] sm:$0xf] }
  0xba   :  { %2098 = vmatpush.bf16.msrb.mxu0 %v6083_v27  ;;  %v7449_v27 = vld [vmem:[#allocation5 + $0x2ec] sm:$0xf0]  ;;  %v7539_v62 = vld [vmem:[#allocation5 + $0x5c4] sm:$0xf] }
  0xbb   :  { %2112 = vmatpush.bf16.msrb.mxu1 %v5319_v28  ;;  %v5802_v28 = vld [vmem:[#allocation5 + $0x5c0] sm:$0xf]  ;;  %v5419_v38 = vor.u32 %v7449_v27, %v5418_v26 }
  0xbc   :  { %2126 = vmatpush.bf16.msrb.mxu2 %v5703_v29  ;;  %2140 = vmatpush.bf16.msrb.mxu3 %v6087_v33  ;;  %v5843_v29 = vor.u32 %v7556_v15, %v5842_v14  ;;  %v5079_v33 = vor.u32 %v7358_v18, %v5076_v19  ;;  %v6043_v14 = vor.u32 %v7605_v9, %v6042_v8  ;;  %v5226_v15 = vld [vmem:[#allocation5 + $0x140] sm:$0xf]  ;;  %v7497_v19 = vld [vmem:[#allocation5 + $0x46c] sm:$0xf0]  ;;  %v5810_v8 = vld [vmem:[#allocation5 + $0x5c8] sm:$0xf] }
  0xbd   :  { %v5279_v18 = vor.u32 %v7407_v10, %v5276_v11  ;;  %v7546_v9 = vld [vmem:[#allocation5 + $0x5f4] sm:$0xf0] }
  0xbe   :  { %2099 = vmatpush.bf16.msrb.mxu0 %v6035_v39  ;;  %v5803_v39 = vor.u32 %v7545_v30, %v5802_v28  ;;  %v5178_v28 = vld [vmem:[#allocation5 + $0xe0] sm:$0xf] }
  0xbf   :  { %2113 = vmatpush.bf16.msrb.mxu1 %v5271_v40  ;;  %v6187_v40 = vor.u32 %v7641_v32, %v6186_v31  ;;  %v5562_v30 = vld [vmem:[#allocation5 + $0x3e0] sm:$0xf]  ;;  %v5231_v31 = vor.u32 %v7395_v23, %v5228_v24  ;;  %v7485_v32 = vld [vmem:[#allocation5 + $0x40c] sm:$0xf0]  ;;  %v7534_v23 = vld [vmem:[#allocation5 + $0x594] sm:$0xf0] }
  0xc0   :  { %2127 = vmatpush.bf16.msrb.mxu2 %v5655_v41  ;;  %2141 = vmatpush.bf16.msrb.mxu3 %v6039_v45  ;;  %v5370_v41 = vld [vmem:[#allocation5 + $0x260] sm:$0xf]  ;;  %v7533_v45 = vld [vmem:[#allocation5 + $0x58c] sm:$0xf0] }
  0xc1   :  { %v5371_v50 = vor.u32 %v7437_v42, %v5370_v41  ;;  %v7377_v41 = vld [vmem:[#allocation5 + $0xac] sm:$0xf0]  ;;  %v5514_v42 = vld [vmem:[#allocation5 + $0x380] sm:$0xf] }
  0xc2   :  { %2100 = vmatpush.bf16.msrb.mxu0 %v5987_v51  ;;  %v5755_v51 = vor.u32 %v7533_v45, %v5754_v43  ;;  %v5183_v43 = vor.u32 %v7383_v35, %v5180_v36  ;;  %v5898_v45 = vld [vmem:[#allocation5 + $0x680] sm:$0xf]  ;;  %v7522_v35 = vld [vmem:[#allocation5 + $0x534] sm:$0xf0]  ;;  %v8128_v36 = vpop.f32.mrf.mxu0 }
  0xc3   :  { %2114 = vmatpush.bf16.msrb.mxu1 %v5223_v52  ;;  %v6139_v52 = vor.u32 %v7629_v47, %v6138_v46  ;;  %v7569_v46 = vld [vmem:[#allocation5 + $0x6ac] sm:$0xf0]  ;;  %v7371_v47 = vld [vmem:[#allocation5 + $0x84] sm:$0xf] }
  0xc4   :  { %2128 = vmatpush.bf16.msrb.mxu2 %v5607_v53  ;;  %2142 = vmatpush.bf16.msrb.mxu3 %v5991_v58  ;;  %v5322_v53 = vld [vmem:[#allocation5 + $0x200] sm:$0xf]  ;;  %v7521_v58 = vld [vmem:[#allocation5 + $0x52c] sm:$0xf0] }
  0xc5   :  { %v5323_v63 = vor.u32 %v7425_v54, %v5322_v53  ;;  %v5899_v53 = vor.u32 %v7569_v46, %v5898_v45  ;;  %v5466_v54 = vld [vmem:[#allocation5 + $0x320] sm:$0xf]  ;;  %v6044_v45 = vld [vmem:[#allocation5 + $0x7d0] sm:$0xf0]  ;;  %v5282_v46 = vld [vmem:[#allocation5 + $0x1a8] sm:$0xf] }
  0xc6   :  { %2101 = vmatpush.bf16.msrb.mxu0 %v5939_v0  ;;  %v5707_v0 = vor.u32 %v7521_v58, %v5706_v55  ;;  %v7461_v55 = vld [vmem:[#allocation5 + $0x34c] sm:$0xf0]  ;;  %v5135_v58 = vor.u32 %v7371_v47, %v5132_v48  ;;  %v7414_v47 = vld [vmem:[#allocation5 + $0x1d4] sm:$0xf0]  ;;  %v5666_v48 = vld [vmem:[#allocation5 + $0x4a8] sm:$0xf] }
  0xc7   :  { %2115 = vmatpush.bf16.msrb.mxu1 %v5175_v1  ;;  %v6091_v1 = vor.u32 %v7617_v60, %v6090_v59  ;;  %v7557_v59 = vld [vmem:[#allocation5 + $0x64c] sm:$0xf0]  ;;  %v7359_v60 = vld [vmem:[#allocation5 + $0x24] sm:$0xf] }
  0xc8   :  { %2129 = vmatpush.bf16.msrb.mxu2 %v5559_v2  ;;  %2143 = vmatpush.bf16.msrb.mxu3 %v5943_v7  ;;  %v5274_v2 = vld [vmem:[#allocation5 + $0x1a0] sm:$0xf]  ;;  %v7509_v7 = vld [vmem:[#allocation5 + $0x4cc] sm:$0xf0]  ;;  %v5087_v10 = vor.u32 %v7359_v60, %v5084_v61  ;;  %v5996_v60 = vld [vmem:[#allocation5 + $0x770] sm:$0xf0] }
  0xc9   :  { %v5275_v12 = vor.u32 %v7413_v3, %v5274_v2  ;;  %v6188_v2 = vld [vmem:[#allocation5 + $0x8f0] sm:$0xf0]  ;;  %v5426_v3 = vld [vmem:[#allocation5 + $0x2c8] sm:$0xf] }
  0xca   :  { %2102 = vmatpush.bf16.msrb.mxu0 %v5891_v13  ;;  %v5659_v13 = vor.u32 %v7509_v7, %v5658_v4  ;;  %v7450_v4 = vld [vmem:[#allocation5 + $0x2f4] sm:$0xf0]  ;;  %v5234_v61 = vld [vmem:[#allocation5 + $0x148] sm:$0xf] }
  0xcb   :  { %2116 = vmatpush.bf16.msrb.mxu1 %v5127_v16  ;;  %v7401_v16 = vld [vmem:[#allocation5 + $0x16c] sm:$0xf0] }
  0xcc   :  { %2130 = vmatpush.bf16.msrb.mxu2 %v5511_v17  ;;  %2144 = vmatpush.bf16.msrb.mxu3 %v5895_v22  ;;  %v5610_v17 = vld [vmem:[#allocation5 + $0x440] sm:$0xf]  ;;  %v7593_v22 = vld [vmem:[#allocation5 + $0x76c] sm:$0xf0]  ;;  %v5227_v25 = vor.u32 %v7401_v16, %v5226_v15  ;;  %v5756_v15 = vld [vmem:[#allocation5 + $0x590] sm:$0xf0] }
  0xcd   :  { %v5611_v26 = vor.u32 %v7497_v19, %v5610_v17  ;;  %v5995_v27 = vor.u32 %v7593_v22, %v5994_v21  ;;  %v7623_v16 = vld [vmem:[#allocation5 + $0x864] sm:$0xf]  ;;  %v5811_v17 = vor.u32 %v7546_v9, %v5810_v8  ;;  %v5378_v19 = vld [vmem:[#allocation5 + $0x268] sm:$0xf]  ;;  %v7438_v21 = vld [vmem:[#allocation5 + $0x294] sm:$0xf0]  ;;  %v8137_v8 = vpop.f32.mrf.mxu0 }
  0xce   :  { %2103 = vmatpush.bf16.msrb.mxu0 %v5843_v29  ;;  %v7389_v29 = vld [vmem:[#allocation5 + $0x10c] sm:$0xf0]  ;;  %v5762_v22 = vld [vmem:[#allocation5 + $0x568] sm:$0xf] }
  0xcf   :  { %2117 = vmatpush.bf16.msrb.mxu1 %v5079_v33  ;;  %v5946_v33 = vld [vmem:[#allocation5 + $0x6e0] sm:$0xf] }
  0xd0   :  { %2131 = vmatpush.bf16.msrb.mxu2 %v5463_v34  ;;  %2145 = vmatpush.bf16.msrb.mxu3 %v5847_v37  ;;  %v7581_v34 = vld [vmem:[#allocation5 + $0x70c] sm:$0xf0]  ;;  %v5179_v37 = vor.u32 %v7389_v29, %v5178_v28  ;;  %v5708_v28 = vld [vmem:[#allocation5 + $0x530] sm:$0xf0]  ;;  %v7611_v29 = vld [vmem:[#allocation5 + $0x804] sm:$0xf] }
  0xd1   :  { %2104 = vmatmul.bf16.vlgmr.msrb.gmra.mxu0 %v8102_v20 }
  0xd2   :  { %2152 = vmatpush.bf16.msra.mxu0 %v5419_v38  ;;  %2118 = vmatmul.bf16.vlgmr.msrb.gmra.mxu1 %v8095_v57  ;;  %v5563_v38 = vor.u32 %v7485_v32, %v5562_v30  ;;  %v5763_v30 = vor.u32 %v7534_v23, %v5762_v22  ;;  %v5330_v32 = vld [vmem:[#allocation5 + $0x208] sm:$0xf]  ;;  %v7563_v22 = vld [vmem:[#allocation5 + $0x684] sm:$0xf] }
  0xd3   :  { %2166 = vmatpush.bf16.msra.mxu1 %v5803_v39  ;;  %2132 = vmatmul.bf16.vlgmr.msrb.gmra.mxu2 %v8098_v5  ;;  %v5947_v39 = vor.u32 %v7581_v34, %v5946_v33  ;;  %v7426_v33 = vld [vmem:[#allocation5 + $0x234] sm:$0xf0]  ;;  %v5714_v34 = vld [vmem:[#allocation5 + $0x508] sm:$0xf] }
  0xd4   :  { %2180 = vmatpush.bf16.msra.mxu2 %v6187_v40  ;;  %2194 = vmatpush.bf16.msra.mxu3 %v5423_v44  ;;  %v5130_v40 = vld [vmem:[#allocation5 + $0x80] sm:$0xf]  ;;  %v7473_v44 = vld [vmem:[#allocation5 + $0x3ac] sm:$0xf0] }
  0xd5   :  { %2146 = vmatmul.bf16.vlgmr.msrb.gmra.mxu3 %v8102_v20  ;;  %v5131_v49 = vor.u32 %v7377_v41, %v5130_v40  ;;  %v7503_v40 = vld [vmem:[#allocation5 + $0x4a4] sm:$0xf]  ;;  %v5660_v41 = vld [vmem:[#allocation5 + $0x4d0] sm:$0xf0] }
  0xd6   :  { %2153 = vmatpush.bf16.msra.mxu0 %v5371_v50  ;;  %v5082_v50 = vld [vmem:[#allocation5 + $0x20] sm:$0xf] }
  0xd7   :  { %2167 = vmatpush.bf16.msra.mxu1 %v5755_v51  ;;  %v7365_v51 = vld [vmem:[#allocation5 + $0x4c] sm:$0xf0] }
  0xd8   :  { %2181 = vmatpush.bf16.msra.mxu2 %v6139_v52  ;;  %2195 = vmatpush.bf16.msra.mxu3 %v5375_v56  ;;  %v5515_v52 = vor.u32 %v7473_v44, %v5514_v42  ;;  %v5850_v56 = vld [vmem:[#allocation5 + $0x620] sm:$0xf]  ;;  %v7599_v42 = vld [vmem:[#allocation5 + $0x7a4] sm:$0xf]  ;;  %v5715_v44 = vor.u32 %v7522_v35, %v5714_v34 }
  0xd9   :  { %v5851_v7 = vor.u32 %v7557_v59, %v5850_v56  ;;  %v8133_v56 = vpop.f32.mrf.mxu2 }
  0xda   :  { %2154 = vmatpush.bf16.msra.mxu0 %v5323_v63  ;;  %v5804_v63 = vld [vmem:[#allocation5 + $0x5f0] sm:$0xf0] }
  0xdb   :  { %2168 = vmatpush.bf16.msra.mxu1 %v5707_v0  ;;  %v7635_v0 = vld [vmem:[#allocation5 + $0x8c4] sm:$0xf]  ;;  %v5807_v11 = vor.u32 %v7539_v62, %v5804_v63  ;;  %v7402_v62 = vld [vmem:[#allocation5 + $0x174] sm:$0xf0]  ;;  %v5618_v63 = vld [vmem:[#allocation5 + $0x448] sm:$0xf] }
  0xdc   :  { %2182 = vmatpush.bf16.msra.mxu2 %v6091_v1  ;;  %2196 = vmatpush.bf16.msra.mxu3 %v5327_v6  ;;  %v5083_v1 = vor.u32 %v7365_v51, %v5082_v50  ;;  %v5467_v6 = vor.u32 %v7461_v55, %v5466_v54  ;;  %v5663_v50 = vor.u32 %v7503_v40, %v5660_v41  ;;  %v5612_v54 = vld [vmem:[#allocation5 + $0x470] sm:$0xf0]  ;;  %v7587_v55 = vld [vmem:[#allocation5 + $0x744] sm:$0xf]  ;;  %v7366_v41 = vld [vmem:[#allocation5 + $0x54] sm:$0xf0] }
  0xdd   :  { %v6047_v51 = vor.u32 %v7599_v42, %v6044_v45  ;;  %v5474_v42 = vld [vmem:[#allocation5 + $0x328] sm:$0xf] }
  0xde   :  { %2155 = vmatpush.bf16.msra.mxu0 %v5275_v12  ;;  %v6191_v12 = vor.u32 %v7635_v0, %v6188_v2  ;;  %v7498_v0 = vld [vmem:[#allocation5 + $0x474] sm:$0xf0]  ;;  %v5999_v2 = vor.u32 %v7587_v55, %v5996_v60  ;;  %v6194_v45 = vld [vmem:[#allocation5 + $0x8c8] sm:$0xf]  ;;  %v7636_v55 = vld [vmem:[#allocation5 + $0x8cc] sm:$0xf] }
  0xdf   :  { %2169 = vmatpush.bf16.msra.mxu1 %v5659_v13  ;;  %v5427_v13 = vor.u32 %v7450_v4, %v5426_v3  ;;  %v5235_v3 = vor.u32 %v7402_v62, %v5234_v61  ;;  %v7479_v4 = vld [vmem:[#allocation5 + $0x3e4] sm:$0xf]  ;;  %v5619_v9 = vor.u32 %v7498_v0, %v5618_v63 }
  0xe0   :  { %2183 = vmatpush.bf16.msra.mxu2 %v6043_v14  ;;  %2197 = vmatpush.bf16.msra.mxu3 %v5279_v18  ;;  %v7527_v14 = vld [vmem:[#allocation5 + $0x564] sm:$0xf]  ;;  %v6140_v18 = vld [vmem:[#allocation5 + $0x890] sm:$0xf0] }
  0xe1   :  { %v5759_v24 = vor.u32 %v7527_v14, %v5756_v15  ;;  %v7486_v14 = vld [vmem:[#allocation5 + $0x414] sm:$0xf0] }
  0xe2   :  { %2156 = vmatpush.bf16.msra.mxu0 %v5227_v25  ;;  %v6143_v25 = vor.u32 %v7623_v16, %v6140_v18 }
  0xe3   :  { %2170 = vmatpush.bf16.msra.mxu1 %v5611_v26  ;;  %v5379_v26 = vor.u32 %v7438_v21, %v5378_v19  ;;  %v7467_v19 = vld [vmem:[#allocation5 + $0x384] sm:$0xf]  ;;  %v5516_v21 = vld [vmem:[#allocation5 + $0x3b0] sm:$0xf0] }
  0xe4   :  { %2184 = vmatpush.bf16.msra.mxu2 %v5995_v27  ;;  %2198 = vmatpush.bf16.msra.mxu3 %v5231_v31  ;;  %v7515_v27 = vld [vmem:[#allocation5 + $0x504] sm:$0xf]  ;;  %v6092_v31 = vld [vmem:[#allocation5 + $0x830] sm:$0xf0] }
  0xe6   :  { %2157 = vmatpush.bf16.msra.mxu0 %v5179_v37  ;;  %v5711_v37 = vor.u32 %v7515_v27, %v5708_v28  ;;  %v5522_v27 = vld [vmem:[#allocation5 + $0x388] sm:$0xf]  ;;  %v7474_v28 = vld [vmem:[#allocation5 + $0x3b4] sm:$0xf0] }
  0xe7   :  { %2171 = vmatpush.bf16.msra.mxu1 %v5563_v38  ;;  %v6095_v38 = vor.u32 %v7611_v29, %v6092_v31  ;;  %v8141_v29 = vpop.f32.mrf.mxu2  ;;  %v5519_v31 = vor.u32 %v7467_v19, %v5516_v21  ;;  %v5523_v40 = vor.u32 %v7474_v28, %v5522_v27  ;;  %v7618_v19 = vld [vmem:[#allocation5 + $0x834] sm:$0xf0]  ;;  %v7420_v21 = vld [vmem:[#allocation5 + $0x20c] sm:$0xf]  ;;  %v6100_v27 = vld [vmem:[#allocation5 + $0x838] sm:$0xf0] }
  0xe8   :  { %2185 = vmatpush.bf16.msra.mxu2 %v5947_v39  ;;  %2199 = vmatpush.bf16.msra.mxu3 %v5183_v43  ;;  %v5331_v39 = vor.u32 %v7426_v33, %v5330_v32  ;;  %v8131_v43 = vpop.f32.mrf.mxu1  ;;  %v7455_v32 = vld [vmem:[#allocation5 + $0x324] sm:$0xf]  ;;  %v5468_v33 = vld [vmem:[#allocation5 + $0x350] sm:$0xf0]  ;;  %v8159_v28 = vld [vmem:[%s8513_s2] sm:$0xff] }
  0xea   :  { %2158 = vmatpush.bf16.msra.mxu0 %v5131_v49  ;;  %v7510_v49 = vld [vmem:[#allocation5 + $0x4d4] sm:$0xf0] }
  0xeb   :  { %2172 = vmatpush.bf16.msra.mxu1 %v5515_v52  ;;  %v5283_v52 = vor.u32 %v7414_v47, %v5282_v46  ;;  %v5667_v59 = vor.u32 %v7510_v49, %v5666_v48  ;;  %v7642_v46 = vld [vmem:[#allocation5 + $0x8f4] sm:$0xf0]  ;;  %v7444_v47 = vld [vmem:[#allocation5 + $0x2cc] sm:$0xf]  ;;  %v8145_v48 = vpop.f32.mrf.mxu0  ;;  %v5471_v49 = vor.u32 %v7455_v32, %v5468_v33 }
  0xec   :  { %2186 = vmatpush.bf16.msra.mxu2 %v5899_v53  ;;  %2200 = vmatpush.bf16.msra.mxu3 %v5135_v58  ;;  %v7491_v53 = vld [vmem:[#allocation5 + $0x444] sm:$0xf]  ;;  %v8135_v58 = vpop.f32.mrf.mxu3  ;;  %v6195_v62 = vor.u32 %v7642_v46, %v6194_v45  ;;  %v7600_v45 = vld [vmem:[#allocation5 + $0x7ac] sm:$0xf]  ;;  %v6052_v46 = vld [vmem:[#allocation5 + $0x7d8] sm:$0xf0] }
  0xee   :  { %2159 = vmatpush.bf16.msra.mxu0 %v5083_v1  ;;  %v5615_v1 = vor.u32 %v7491_v53, %v5612_v54 }
  0xef   :  { %2173 = vmatpush.bf16.msra.mxu1 %v5467_v6  ;;  %v5564_v6 = vld [vmem:[#allocation5 + $0x410] sm:$0xf0] }
  0xf0   :  { %2187 = vmatpush.bf16.msra.mxu2 %v5851_v7  ;;  %2201 = vmatpush.bf16.msra.mxu3 %v5087_v10  ;;  %v7575_v7 = vld [vmem:[#allocation5 + $0x6e4] sm:$0xf]  ;;  %v5948_v10 = vld [vmem:[#allocation5 + $0x710] sm:$0xf0]  ;;  %v8139_v15 = vpop.f32.mrf.mxu1  ;;  %v5567_v16 = vor.u32 %v7479_v4, %v5564_v6  ;;  %v8149_v4 = vpop.f32.mrf.mxu2 }
  0xf1   :  { %2160 = vmatmul.bf16.vlgmr.msra.gmra.mxu0 %v8095_v57 }
  0xf2   :  { %2208 = vmatpush.bf16.msrb.mxu0 %v5807_v11  ;;  %2174 = vmatmul.bf16.vlgmr.msra.gmra.mxu1 %v8098_v5  ;;  %v5186_v11 = vld [vmem:[#allocation5 + $0xe8] sm:$0xf] }
  0xf3   :  { %2222 = vmatpush.bf16.msrb.mxu1 %v6191_v12  ;;  %2188 = vmatmul.bf16.vlgmr.msra.gmra.mxu2 %v8102_v20  ;;  %v7390_v12 = vld [vmem:[#allocation5 + $0x114] sm:$0xf0] }
  0xf4   :  { %2236 = vmatpush.bf16.msrb.mxu2 %v5427_v13  ;;  %2250 = vmatpush.bf16.msrb.mxu3 %v5811_v17  ;;  %v5570_v13 = vld [vmem:[#allocation5 + $0x3e8] sm:$0xf]  ;;  %v5951_v17 = vor.u32 %v7575_v7, %v5948_v10  ;;  %v5187_v18 = vor.u32 %v7390_v12, %v5186_v11  ;;  %v7528_v10 = vld [vmem:[#allocation5 + $0x56c] sm:$0xf]  ;;  %v5764_v11 = vld [vmem:[#allocation5 + $0x598] sm:$0xf0] }
  0xf5   :  { %2202 = vmatmul.bf16.vlgmr.msra.gmra.mxu3 %v8095_v57  ;;  %v5571_v23 = vor.u32 %v7486_v14, %v5570_v13  ;;  %v7624_v12 = vld [vmem:[#allocation5 + $0x86c] sm:$0xf]  ;;  %v6148_v13 = vld [vmem:[#allocation5 + $0x898] sm:$0xf0] }
  0xf6   :  { %2209 = vmatpush.bf16.msrb.mxu0 %v5759_v24  ;;  %v5900_v24 = vld [vmem:[#allocation5 + $0x6b0] sm:$0xf0] }
  0xf7   :  { %2223 = vmatpush.bf16.msrb.mxu1 %v6143_v25  ;;  %v5138_v25 = vld [vmem:[#allocation5 + $0x88] sm:$0xf]  ;;  %v5903_v34 = vor.u32 %v7563_v22, %v5900_v24  ;;  %v6151_v22 = vor.u32 %v7624_v12, %v6148_v13  ;;  %v7516_v24 = vld [vmem:[#allocation5 + $0x50c] sm:$0xf]  ;;  %v7582_v13 = vld [vmem:[#allocation5 + $0x714] sm:$0xf0] }
  0xf8   :  { %2237 = vmatpush.bf16.msrb.mxu2 %v5379_v26  ;;  %2251 = vmatpush.bf16.msrb.mxu3 %v5763_v30  ;;  %v7378_v26 = vld [vmem:[#allocation5 + $0xb4] sm:$0xf0]  ;;  %v8143_v30 = vpop.f32.mrf.mxu3  ;;  %v8147_v60 = vpop.f32.mrf.mxu1  ;;  %v5954_v12 = vld [vmem:[#allocation5 + $0x6e8] sm:$0xf] }
  0xf9   :  { %v5139_v35 = vor.u32 %v7378_v26, %v5138_v25  ;;  %v5716_v25 = vld [vmem:[#allocation5 + $0x538] sm:$0xf0]  ;;  %v7612_v26 = vld [vmem:[#allocation5 + $0x80c] sm:$0xf] }
  0xfa   :  { %2210 = vmatpush.bf16.msrb.mxu0 %v5711_v37  ;;  %v7551_v37 = vld [vmem:[#allocation5 + $0x624] sm:$0xf] }
  0xfb   :  { %2224 = vmatpush.bf16.msrb.mxu1 %v6095_v38  ;;  %v5852_v38 = vld [vmem:[#allocation5 + $0x650] sm:$0xf0] }
  0xfc   :  { %2238 = vmatpush.bf16.msrb.mxu2 %v5331_v39  ;;  %2252 = vmatpush.bf16.msrb.mxu3 %v5715_v44  ;;  %v5090_v39 = vld [vmem:[#allocation5 + $0x28] sm:$0xf]  ;;  %v7462_v44 = vld [vmem:[#allocation5 + $0x354] sm:$0xf0]  ;;  %v5855_v53 = vor.u32 %v7551_v37, %v5852_v38  ;;  %v7408_v38 = vld [vmem:[#allocation5 + $0x1ac] sm:$0xf] }
  0xfd   :  { %v5091_v54 = vor.u32 %v7366_v41, %v5090_v39  ;;  %v5475_v61 = vor.u32 %v7462_v44, %v5474_v42  ;;  %v7606_v37 = vld [vmem:[#allocation5 + $0x7d4] sm:$0xf0]  ;;  %v5284_v41 = vld [vmem:[#allocation5 + $0x1d8] sm:$0xf0]  ;;  %v7504_v42 = vld [vmem:[#allocation5 + $0x4ac] sm:$0xf] }
  0xfe   :  { %2211 = vmatpush.bf16.msrb.mxu0 %v5663_v50  ;;  %v5428_v50 = vld [vmem:[#allocation5 + $0x2f8] sm:$0xf0] }
  0xff   :  { %2225 = vmatpush.bf16.msrb.mxu1 %v6047_v51  ;;  %v7540_v51 = vld [vmem:[#allocation5 + $0x5cc] sm:$0xf]  ;;  %v5431_v63 = vor.u32 %v7444_v47, %v5428_v50  ;;  %v5668_v44 = vld [vmem:[#allocation5 + $0x4d8] sm:$0xf0]  ;;  %v2336_v47 = vperm.slane %v8159_v28, 0  ;;  %v8168_v50 = vpop.f32.mrf.mxu2 }
 0x100   :  { %2239 = vmatpush.bf16.msrb.mxu2 %v5283_v52  ;;  %2253 = vmatpush.bf16.msrb.mxu3 %v5667_v59  ;;  %v5812_v52 = vld [vmem:[#allocation5 + $0x5f8] sm:$0xf0]  ;;  %v8151_v6 = vpop.f32.mrf.mxu3  ;;  %v8164_v39 = vpop.f32.mrf.mxu1 }
 0x101   :  { %v6196_v59 = vld [vmem:[#allocation5 + $0x8f8] sm:$0xf0]  ;;  %v5815_v0 = vor.u32 %v7540_v51, %v5812_v52 }
 0x102   :  { %2212 = vmatpush.bf16.msrb.mxu0 %v5615_v1  ;;  %v6146_v1 = vld [vmem:[#allocation5 + $0x868] sm:$0xf]  ;;  %v6199_v7 = vor.u32 %v7636_v55, %v6196_v59  ;;  %v7594_v59 = vld [vmem:[#allocation5 + $0x774] sm:$0xf0] }
 0x103   :  { %2226 = vmatpush.bf16.msrb.mxu1 %v5999_v2  ;;  %v7630_v2 = vld [vmem:[#allocation5 + $0x894] sm:$0xf0]  ;;  %v6002_v55 = vld [vmem:[#allocation5 + $0x748] sm:$0xf] }
 0x104   :  { %2240 = vmatpush.bf16.msrb.mxu2 %v5235_v3  ;;  %2254 = vmatpush.bf16.msrb.mxu3 %v5619_v9  ;;  %v7432_v3 = vld [vmem:[#allocation5 + $0x26c] sm:$0xf]  ;;  %v5380_v9 = vld [vmem:[#allocation5 + $0x298] sm:$0xf0]  ;;  %v6147_v14 = vor.u32 %v7630_v2, %v6146_v1 }
 0x105   :  { %v5620_v1 = vld [vmem:[#allocation5 + $0x478] sm:$0xf0]  ;;  %v7588_v2 = vld [vmem:[#allocation5 + $0x74c] sm:$0xf] }
 0x106   :  { %2213 = vmatpush.bf16.msrb.mxu0 %v5567_v16  ;;  %v5383_v16 = vor.u32 %v7432_v3, %v5380_v9  ;;  %v6004_v3 = vld [vmem:[#allocation5 + $0x778] sm:$0xf0]  ;;  %v6003_v9 = vor.u32 %v7594_v59, %v6002_v55  ;;  %v7558_v55 = vld [vmem:[#allocation5 + $0x654] sm:$0xf0] }
 0x107   :  { %2227 = vmatpush.bf16.msrb.mxu1 %v5951_v17  ;;  %v5767_v17 = vor.u32 %v7528_v10, %v5764_v11 }
 0x108   :  { %2241 = vmatpush.bf16.msrb.mxu2 %v5187_v18  ;;  %2255 = vmatpush.bf16.msrb.mxu3 %v5571_v23  ;;  %v6098_v18 = vld [vmem:[#allocation5 + $0x808] sm:$0xf]  ;;  %v5332_v23 = vld [vmem:[#allocation5 + $0x238] sm:$0xf0]  ;;  %v8170_v51 = vpop.f32.mrf.mxu3 }
 0x109   :  { %v6099_v32 = vor.u32 %v7618_v19, %v6098_v18  ;;  %v5335_v33 = vor.u32 %v7420_v21, %v5332_v23  ;;  %v6007_v18 = vor.u32 %v7588_v2, %v6004_v3  ;;  %v5188_v19 = vld [vmem:[#allocation5 + $0x118] sm:$0xf0]  ;;  %v7480_v21 = vld [vmem:[#allocation5 + $0x3ec] sm:$0xf] }
 0x10a   :  { %2214 = vmatpush.bf16.msrb.mxu0 %v5519_v31  ;;  %v8161_v31 = vpop.f32.mrf.mxu0  ;;  %v7576_v23 = vld [vmem:[#allocation5 + $0x6ec] sm:$0xf] }
 0x10b   :  { %2228 = vmatpush.bf16.msrb.mxu1 %v5903_v34  ;;  %v5719_v34 = vor.u32 %v7516_v24, %v5716_v25  ;;  %v5956_v24 = vld [vmem:[#allocation5 + $0x718] sm:$0xf0]  ;;  %v5955_v25 = vor.u32 %v7582_v13, %v5954_v12  ;;  %v6286_v13 = vld [vmem:[#allocation7 + $0xa8] sm:$0xf] }
 0x10c   :  { %2242 = vmatpush.bf16.msrb.mxu2 %v5139_v35  ;;  %2256 = vmatpush.bf16.msrb.mxu3 %v5523_v40  ;;  %v6050_v35 = vld [vmem:[#allocation5 + $0x7a8] sm:$0xf]  ;;  %v6103_v40 = vor.u32 %v7612_v26, %v6100_v27  ;;  %v5860_v12 = vld [vmem:[#allocation5 + $0x658] sm:$0xf0] }
 0x10d   :  { %v6051_v52 = vor.u32 %v7606_v37, %v6050_v35 }
 0x10e   :  { %2215 = vmatpush.bf16.msrb.mxu0 %v5471_v49  ;;  %v2337_v49 = vperm.slane %v8159_v28, 1 }
 0x10f   :  { %2229 = vmatpush.bf16.msrb.mxu1 %v5855_v53  ;;  %v5287_v53 = vor.u32 %v7408_v38, %v5284_v41  ;;  %v8176_v38 = vpop.f32.mrf.mxu2  ;;  %v5959_v41 = vor.u32 %v7576_v23, %v5956_v24  ;;  %v7689_v23 = vld [vmem:[#allocation7 + $0x170] sm:$0xf0]  ;;  %v6478_v24 = vld [vmem:[#allocation7 + $0x228] sm:$0xf] }
 0x110   :  { %2243 = vmatpush.bf16.msrb.mxu2 %v5091_v54  ;;  %2257 = vmatpush.bf16.msrb.mxu3 %v5475_v61  ;;  %v5671_v54 = vor.u32 %v7504_v42, %v5668_v44  ;;  %v7396_v61 = vld [vmem:[#allocation5 + $0x14c] sm:$0xf]  ;;  %v5140_v42 = vld [vmem:[#allocation5 + $0xb8] sm:$0xf0] }
 0x111   :  { %2216 = vmatmul.bf16.vlgmr.msrb.gmra.mxu0 %v8098_v5  ;;  %v7468_v44 = vld [vmem:[#allocation5 + $0x38c] sm:$0xf] }
 0x112   :  { %2264 = vmatpush.bf16.msra.mxu0 %v6195_v62  ;;  %2230 = vmatmul.bf16.vlgmr.msrb.gmra.mxu1 %v8102_v20  ;;  %v6055_v62 = vor.u32 %v7600_v45, %v6052_v46  ;;  %v5524_v45 = vld [vmem:[#allocation5 + $0x3b8] sm:$0xf0]  ;;  %v7564_v46 = vld [vmem:[#allocation5 + $0x68c] sm:$0xf] }
 0x113   :  { %2278 = vmatpush.bf16.msra.mxu1 %v5431_v63  ;;  %2244 = vmatmul.bf16.vlgmr.msrb.gmra.mxu2 %v8095_v57  ;;  %v5236_v63 = vld [vmem:[#allocation5 + $0x178] sm:$0xf0] }
 0x114   :  { %2292 = vmatpush.bf16.msra.mxu2 %v5815_v0  ;;  %2306 = vmatpush.bf16.msra.mxu3 %v6199_v7  ;;  %v7492_v0 = vld [vmem:[#allocation5 + $0x44c] sm:$0xf]  ;;  %v8172_v7 = vpop.f32.mrf.mxu0  ;;  %v5239_v10 = vor.u32 %v7396_v61, %v5236_v63  ;;  %v5527_v61 = vor.u32 %v7468_v44, %v5524_v45  ;;  %v5092_v63 = vld [vmem:[#allocation5 + $0x58] sm:$0xf0]  ;;  %v6370_v44 = vld [vmem:[#allocation7 + $0x150] sm:$0xf]  ;;  %v1842_v45 = vadd.f32 %v8139_v15, %v8137_v8 }
 0x115   :  { %2258 = vmatmul.bf16.vlgmr.msrb.gmra.mxu3 %v8098_v5  ;;  %v5623_v11 = vor.u32 %v7492_v0, %v5620_v1  ;;  %v7456_v0 = vld [vmem:[#allocation5 + $0x32c] sm:$0xf]  ;;  %v6562_v8 = vld [vmem:[#allocation7 + $0x2d0] sm:$0xf]  ;;  %v7734_v15 = vld [vmem:[#allocation7 + $0x2d8] sm:$0xf0] }
 0x116   :  { %2265 = vmatpush.bf16.msra.mxu0 %v6147_v14  ;;  %v7384_v14 = vld [vmem:[#allocation5 + $0xec] sm:$0xf] }
 0x117   :  { %2279 = vmatpush.bf16.msra.mxu1 %v5383_v16  ;;  %v2360_v16 = vpack.c.bf16 %v2337_v49, %v2336_v47  ;;  %v5191_v26 = vor.u32 %v7384_v14, %v5188_v19  ;;  %v5908_v47 = vld [vmem:[#allocation5 + $0x6b8] sm:$0xf0]  ;;  %v2338_v49 = vperm.slane %v8159_v28, 2  ;;  %v7665_v14 = vld [vmem:[#allocation7 + $0xb0] sm:$0xf0]  ;;  %v1882_v19 = vadd.f32 %v8145_v48, %v8135_v58 }
 0x118   :  { %2293 = vmatpush.bf16.msra.mxu2 %v5767_v17  ;;  %2307 = vmatpush.bf16.msra.mxu3 %v6151_v22  ;;  %v8174_v17 = vpop.f32.mrf.mxu1  ;;  %v5572_v22 = vld [vmem:[#allocation5 + $0x418] sm:$0xf0]  ;;  %v6287_v58 = vor.u32 %v7665_v14, %v6286_v13  ;;  %v6563_v14 = vor.u32 %v7734_v15, %v6562_v8 }
 0x119   :  { %v5575_v27 = vor.u32 %v7480_v21, %v5572_v22  ;;  %v2372_v35 = vunpack.c.l.b16 %v2360_v16  ;;  %v2373_v37 = vunpack.c.h.b16 %v2360_v16  ;;  %v6382_v16 = vld [vmem:[#allocation7 + $0x168] sm:$0xf] }
 0x11a   :  { %2266 = vmatpush.bf16.msra.mxu0 %v6099_v32  ;;  %v5906_v32 = vld [vmem:[#allocation5 + $0x688] sm:$0xf]  ;;  %v6383_v48 = vor.u32 %v7689_v23, %v6382_v16  ;;  %v7683_v16 = vld [vmem:[#allocation7 + $0x140] sm:$0xf0]  ;;  %v1966_v23 = vadd.f32 %v8176_v38, %v8174_v17 }
 0x11b   :  { %2280 = vmatpush.bf16.msra.mxu1 %v5335_v33  ;;  %v7570_v33 = vld [vmem:[#allocation5 + $0x6b4] sm:$0xf0]  ;;  %v2384_v1 = vpack.c.b16 %v2372_v35, %v2372_v35  ;;  %v2385_v2 = vpack.c.b16 %v2373_v37, %v2373_v37 }
 0x11c   :  { %2294 = vmatpush.bf16.msra.mxu2 %v5719_v34  ;;  %2308 = vmatpush.bf16.msra.mxu3 %v6103_v40  ;;  %v7372_v34 = vld [vmem:[#allocation5 + $0x8c] sm:$0xf]  ;;  %v8178_v40 = vpop.f32.mrf.mxu3  ;;  %v8182_v3 = vpop.f32.mrf.mxu0 }
 0x11d   :  { %v5143_v59 = vor.u32 %v7372_v34, %v5140_v42  ;;  %v7737_v34 = vld [vmem:[#allocation7 + $0x2f0] sm:$0xf0]  ;;  %v2397_v35 = vpack.i.b16 %v2384_v1, %v2384_v1  ;;  %v7662_v42 = vld [vmem:[#allocation7 + $0x98] sm:$0xf0] }
 0x11e   :  { %2267 = vmatpush.bf16.msra.mxu0 %v6051_v52  ;;  %v2339_v52 = vperm.slane %v8159_v28, 3 }
 0x11f   :  { %2281 = vmatpush.bf16.msra.mxu1 %v5287_v53  ;;  %v5907_v53 = vor.u32 %v7570_v33, %v5906_v32  ;;  %v6574_v33 = vld [vmem:[#allocation7 + $0x2e8] sm:$0xf] }
 0x120   :  { %2295 = vmatpush.bf16.msra.mxu2 %v5671_v54  ;;  %2309 = vmatpush.bf16.msra.mxu3 %v6055_v62  ;;  %v5858_v54 = vld [vmem:[#allocation5 + $0x628] sm:$0xf]  ;;  %v7360_v62 = vld [vmem:[#allocation5 + $0x2c] sm:$0xf]  ;;  %v8188_v21 = vpop.f32.mrf.mxu1 }
 0x121   :  { %v5859_v22 = vor.u32 %v7558_v55, %v5858_v54  ;;  %v7686_v54 = vld [vmem:[#allocation7 + $0x158] sm:$0xf0]  ;;  %v6466_v55 = vld [vmem:[#allocation7 + $0x210] sm:$0xf] }
 0x122   :  { %2268 = vmatpush.bf16.msra.mxu0 %v6003_v9  ;;  %v5911_v9 = vor.u32 %v7564_v46, %v5908_v47  ;;  %v1896_v47 = vadd.f32 %v8147_v60, %v1882_v19  ;;  %v7707_v19 = vld [vmem:[#allocation7 + $0x200] sm:$0xf0] }
 0x123   :  { %2282 = vmatpush.bf16.msra.mxu1 %v5239_v10  ;;  %v5476_v10 = vld [vmem:[#allocation5 + $0x358] sm:$0xf0] }
 0x124   :  { %2296 = vmatpush.bf16.msra.mxu2 %v5623_v11  ;;  %2310 = vmatpush.bf16.msra.mxu3 %v6007_v18  ;;  %v7552_v11 = vld [vmem:[#allocation5 + $0x62c] sm:$0xf]  ;;  %v1840_v18 = vadd.f32 %v8131_v43, %v8128_v36  ;;  %v5479_v32 = vor.u32 %v7456_v0, %v5476_v10  ;;  %v2401_v36 = vpack.i.b16 %v2385_v2, %v2385_v2  ;;  %v8206_v0 = vpop.f32.mrf.mxu0  ;;  %v6262_v2 = vld [vmem:[#allocation7 + $0x78] sm:$0xf] }
 0x125   :  { %v5863_v43 = vor.u32 %v7552_v11, %v5860_v12  ;;  %v6358_v10 = vld [vmem:[#allocation7 + $0x138] sm:$0xf]  ;;  %v1856_v12 = vadd.f32 %v8141_v29, %v1842_v45  ;;  %v7728_v45 = vld [vmem:[#allocation7 + $0x2a8] sm:$0xf0] }
 0x126   :  { %2269 = vmatpush.bf16.msra.mxu0 %v5955_v25  ;;  %v7713_v25 = vld [vmem:[#allocation7 + $0x230] sm:$0xf0]  ;;  %v1854_v46 = vadd.f32 %v8133_v56, %v1840_v18  ;;  %v8201_v56 = vperm.slane %v2397_v35, 0  ;;  %v8203_v60 = vperm.slane %v2401_v36, 0  ;;  %v6454_v18 = vld [vmem:[#allocation7 + $0x1f8] sm:$0xf]  ;;  %v6359_v17 = vor.u32 %v7683_v16, %v6358_v10 }
 0x127   :  { %2283 = vmatpush.bf16.msra.mxu1 %v5191_v26  ;;  %v8190_v26 = vpack.c.bf16 %v2339_v52, %v2338_v49  ;;  %v6479_v37 = vor.u32 %v7713_v25, %v6478_v24  ;;  %v1967_v49 = vpop.f32.mrf.mxu2  ;;  %v8196_v52 = vpop.f32.mrf.mxu3  ;;  %v6550_v29 = vld [vmem:[#allocation7 + $0x2b8] sm:$0xf]  ;;  %v7731_v25 = vld [vmem:[#allocation7 + $0x2c0] sm:$0xf0]  ;;  %v6455_v38 = vor.u32 %v7707_v19, %v6454_v18  ;;  %v6226_v18 = vld [vmem:[#allocation7 + $0x30] sm:$0xf] }
 0x128   :  { %2297 = vmatpush.bf16.msra.mxu2 %v5575_v27  ;;  %2311 = vmatpush.bf16.msra.mxu3 %v5959_v41  ;;  %v5095_v27 = vor.u32 %v7360_v62, %v5092_v63  ;;  %v6274_v41 = vld [vmem:[#allocation7 + $0x90] sm:$0xf]  ;;  %v8208_v11 = vpack.c.bf16 %v1896_v47, %v1854_v46  ;;  %v8211_v13 = vpop.f32.mrf.mxu1  ;;  %v2468_v35 = vunpack.c.l.bf16 %v8201_v56  ;;  %v6551_v36 = vor.u32 %v7731_v25, %v6550_v29  ;;  %v7650_v19 = vld [vmem:[#allocation7 + $0x38] sm:$0xf0] }
 0x129   :  { %v2374_v62 = vunpack.c.l.b16 %v8190_v26  ;;  %v2375_v63 = vunpack.c.h.b16 %v8190_v26  ;;  %v6275_v1 = vor.u32 %v7662_v42, %v6274_v41  ;;  %v1980_v41 = vadd.f32 %v8178_v40, %v1966_v23  ;;  %v6334_v40 = vld [vmem:[#allocation7 + $0x108] sm:$0xf]  ;;  %v6418_v29 = vld [vmem:[#allocation7 + $0x1b0] sm:$0xf]  ;;  %v7698_v25 = vld [vmem:[#allocation7 + $0x1b8] sm:$0xf0] }
 0x12a   :  { %2270 = vmatpush.bf16.msra.mxu0 %v5907_v53  ;;  %v6575_v53 = vor.u32 %v7737_v34, %v6574_v33  ;;  %v6250_v33 = vld [vmem:[#allocation7 + $0x60] sm:$0xf]  ;;  %v1926_v46 = vadd.f32 %v8170_v51, %v8168_v50  ;;  %v7677_v51 = vld [vmem:[#allocation7 + $0x110] sm:$0xf0] }
 0x12b   :  { %2284 = vmatpush.bf16.msra.mxu1 %v5143_v59  ;;  %v7710_v59 = vld [vmem:[#allocation7 + $0x218] sm:$0xf0]  ;;  %v2386_v24 = vpack.c.b16 %v2374_v62, %v2374_v62  ;;  %v2387_v26 = vpack.c.b16 %v2375_v63, %v2375_v63  ;;  %v6346_v34 = vld [vmem:[#allocation7 + $0x120] sm:$0xf]  ;;  %v7653_v62 = vld [vmem:[#allocation7 + $0x50] sm:$0xf0] }
 0x12c   :  { %2298 = vmatpush.bf16.msra.mxu2 %v5527_v61  ;;  %2312 = vmatpush.bf16.msra.mxu3 %v5911_v9  ;;  %v1884_v61 = vadd.f32 %v8161_v31, %v8143_v30  ;;  %v6371_v30 = vor.u32 %v7686_v54, %v6370_v44  ;;  %v6467_v31 = vor.u32 %v7710_v59, %v6466_v55  ;;  %v7659_v9 = vld [vmem:[#allocation7 + $0x80] sm:$0xf0]  ;;  %v6538_v44 = vld [vmem:[#allocation7 + $0x2a0] sm:$0xf]  ;;  %v8239_v56 = vpop.f32.mrf.mxu0 }
 0x12d   :  { %v2405_v42 = vpack.i.b16 %v2386_v24, %v2386_v24  ;;  %v2409_v47 = vpack.i.b16 %v2387_v26, %v2387_v26  ;;  %v1940_v15 = vadd.f32 %v8182_v3, %v1926_v46  ;;  %v6539_v50 = vor.u32 %v7728_v45, %v6538_v44  ;;  %v7674_v24 = vld [vmem:[#allocation7 + $0xf8] sm:$0xf0]  ;;  %v7671_v44 = vld [vmem:[#allocation7 + $0xe0] sm:$0xf0]  ;;  %v6406_v45 = vld [vmem:[#allocation7 + $0x198] sm:$0xf] }
 0x12e   :  { %2271 = vmatpush.bf16.msra.mxu0 %v5859_v22  ;;  %v1898_v22 = vadd.f32 %v8164_v39, %v1884_v61  ;;  %v1924_v39 = vadd.f32 %v8151_v6, %v8149_v4  ;;  %v7680_v4 = vld [vmem:[#allocation7 + $0x128] sm:$0xf0]  ;;  %v6442_v6 = vld [vmem:[#allocation7 + $0x1e0] sm:$0xf]  ;;  %v6238_v61 = vld [vmem:[#allocation7 + $0x48] sm:$0xf] }
 0x12f   :  { %2285 = vmatpush.bf16.msra.mxu1 %v5095_v27  ;;  %v1968_v27 = vadd.f32 %v1967_v49, %v8188_v21  ;;  %v2469_v21 = vunpack.c.l.bf16 %v8203_v60  ;;  %v6347_v55 = vor.u32 %v7680_v4, %v6346_v34  ;;  %v7701_v60 = vld [vmem:[#allocation7 + $0x1d0] sm:$0xf0]  ;;  %v8245_v10 = vperm.slane %v2409_v47, 0  ;;  %v7695_v46 = vld [vmem:[#allocation7 + $0x1a0] sm:$0xf0] }
 0x130   :  { %2299 = vmatpush.bf16.msra.mxu2 %v5479_v32  ;;  %2313 = vmatpush.bf16.msra.mxu3 %v5863_v43  ;;  %v6263_v32 = vor.u32 %v7659_v9, %v6262_v2  ;;  %v8228_v43 = vpop.f32.mrf.mxu3  ;;  %v1938_v54 = vadd.f32 %v8172_v7, %v1924_v39  ;;  %v7725_v2 = vld [vmem:[#allocation7 + $0x290] sm:$0xf0]  ;;  %v8247_v3 = vpop.f32.mrf.mxu1  ;;  %v6227_v4 = vor.u32 %v7650_v19, %v6226_v18 }
 0x131   :  { %2272 = vmatmul.bf16.vlgmr.msra.gmra.mxu0 %v8102_v20  ;;  %v1982_v49 = vadd.f32 %v8196_v52, %v1968_v27  ;;  %v6430_v52 = vld [vmem:[#allocation7 + $0x1c8] sm:$0xf]  ;;  %v7761_v18 = vld [vmem:[#allocation7 + $0x3b0] sm:$0xf0] }
 0x132   :  { %4504 = vmatpush.bf16.msrb.mxu0 %v6287_v58  ;;  %2286 = vmatmul.bf16.vlgmr.msra.gmra.mxu1 %v8095_v57  ;;  %v7656_v57 = vld [vmem:[#allocation7 + $0x68] sm:$0xf0]  ;;  %v6431_v16 = vor.u32 %v7701_v60, %v6430_v52 }
 0x133   :  { %4518 = vmatpush.bf16.msrb.mxu1 %v6383_v48  ;;  %2300 = vmatmul.bf16.vlgmr.msra.gmra.mxu2 %v8098_v5  ;;  %v2444_v5 = vunpack.c.l.bf16 %v8208_v11  ;;  %v7704_v58 = vld [vmem:[#allocation7 + $0x1e8] sm:$0xf0]  ;;  %v2445_v48 = vunpack.c.h.bf16 %v8208_v11  ;;  %v2327_v11 = vpack.c.bf16 %v1982_v49, %v1940_v15  ;;  %v2341_v15 = vperm.slane %v8159_v28, 5 }
 0x134   :  { %4532 = vmatpush.bf16.msrb.mxu2 %v6479_v37  ;;  %4546 = vmatpush.bf16.msrb.mxu3 %v6575_v53  ;;  %v2326_v37 = vpack.c.bf16 %v1898_v22, %v1856_v12  ;;  %v6251_v53 = vor.u32 %v7656_v57, %v6250_v33  ;;  %v6443_v59 = vor.u32 %v7704_v58, %v6442_v6  ;;  %v6322_v22 = vld [vmem:[#allocation7 + $0xf0] sm:$0xf]  ;;  %v6214_v58 = vld [vmem:[#allocation7 + $0x18] sm:$0xf] }
 0x135   :  { %2314 = vmatmul.bf16.vlgmr.msra.gmra.mxu3 %v8102_v20  ;;  %v8226_v20 = vpop.f32.mrf.mxu2  ;;  %v8236_v8 = vadd.f32 %v2468_v35, %v2444_v5  ;;  %v8243_v9 = vadd.f32 %v2469_v21, %v2445_v48  ;;  %v6239_v12 = vor.u32 %v7653_v62, %v6238_v61  ;;  %v2458_v34 = vunpack.c.l.bf16 %v2327_v11  ;;  %v7647_v48 = vld [vmem:[#allocation7 + $0x20] sm:$0xf0]  ;;  %v8268_v62 = vpop.f32.mrf.mxu0 }
 0x136   :  { %4505 = vmatpush.bf16.msrb.mxu0 %v6275_v1  ;;  %v2456_v63 = vunpack.c.l.bf16 %v2326_v37  ;;  %v2457_v7 = vunpack.c.h.bf16 %v2326_v37  ;;  %v8241_v1 = vpack.c.bf16 %v1980_v41, %v1938_v54  ;;  %v6419_v6 = vor.u32 %v7698_v25, %v6418_v29  ;;  %v6310_v37 = vld [vmem:[#allocation7 + $0xd8] sm:$0xf]  ;;  %v6766_v29 = vld [vmem:[#allocation7 + $0x468] sm:$0xf]  ;;  %v7785_v25 = vld [vmem:[#allocation7 + $0x470] sm:$0xf0] }
 0x137   :  { %4519 = vmatpush.bf16.msrb.mxu1 %v6371_v30  ;;  %v2407_v30 = vperm.slane %v2405_v42, 0  ;;  %v2540_v33 = vmax.f32 %v8236_v8, 0.0  ;;  %v2541_v57 = vmax.f32 %v8243_v9, 0.0  ;;  %v2471_v41 = vunpack.c.l.bf16 %v8245_v10  ;;  %v6394_v10 = vld [vmem:[#allocation7 + $0x180] sm:$0xf] }
 0x138   :  { %4533 = vmatpush.bf16.msrb.mxu2 %v6467_v31  ;;  %4547 = vmatpush.bf16.msrb.mxu3 %v6563_v14  ;;  %v6526_v31 = vld [vmem:[#allocation7 + $0x288] sm:$0xf]  ;;  %v6335_v14 = vor.u32 %v7677_v51, %v6334_v40  ;;  %v8249_v26 = vadd.f32 %v2468_v35, %v2456_v63  ;;  %v8251_v27 = vadd.f32 %v2469_v21, %v2457_v7  ;;  %v2459_v35 = vunpack.c.h.bf16 %v2327_v11  ;;  %v6202_v51 = vld [vmem:[#allocation7] sm:$0xf]  ;;  %v7644_v7 = vld [vmem:[#allocation7 + $0x8] sm:$0xf0] }
 0x139   :  { %v6527_v23 = vor.u32 %v7725_v2, %v6526_v31  ;;  %v2470_v39 = vunpack.c.l.bf16 %v2407_v30  ;;  %v6323_v21 = vor.u32 %v7674_v24, %v6322_v22  ;;  %v2340_v40 = vperm.slane %v8159_v28, 4  ;;  %v7668_v30 = vld [vmem:[#allocation7 + $0xc8] sm:$0xf0]  ;;  %v8274_v31 = vpop.f32.mrf.mxu1 }
 0x13a   :  { %4506 = vmatpush.bf16.msrb.mxu0 %v6263_v32  ;;  %v2446_v32 = vunpack.c.l.bf16 %v8241_v1  ;;  %v2552_v47 = vmax.f32 %v8249_v26, 0.0  ;;  %v2553_v49 = vmax.f32 %v8251_v27, 0.0  ;;  %v8272_v52 = vadd.f32 %v2471_v41, %v2459_v35  ;;  %v7692_v11 = vld [vmem:[#allocation7 + $0x188] sm:$0xf0]  ;;  %v7755_v27 = vld [vmem:[#allocation7 + $0x380] sm:$0xf0] }
 0x13b   :  { %4520 = vmatpush.bf16.msrb.mxu1 %v6359_v17  ;;  %v6514_v17 = vld [vmem:[#allocation7 + $0x270] sm:$0xf]  ;;  %v8266_v61 = vadd.f32 %v2470_v39, %v2458_v34  ;;  %v6311_v60 = vor.u32 %v7671_v44, %v6310_v37  ;;  %v6407_v63 = vor.u32 %v7695_v46, %v6406_v45  ;;  %v6203_v24 = vor.u32 %v7644_v7, %v6202_v51  ;;  %v7758_v37 = vld [vmem:[#allocation7 + $0x398] sm:$0xf0] }
 0x13c   :  { %4534 = vmatpush.bf16.msrb.mxu2 %v6455_v38  ;;  %4548 = vmatpush.bf16.msrb.mxu3 %v6551_v36  ;;  %v7722_v38 = vld [vmem:[#allocation7 + $0x278] sm:$0xf0]  ;;  %v8258_v36 = vpop.f32.mrf.mxu3  ;;  %v8264_v54 = vadd.f32 %v2470_v39, %v2446_v32  ;;  %v6395_v34 = vor.u32 %v7692_v11, %v6394_v10  ;;  %v8285_v45 = vpack.c.bf16 %v2552_v47, %v2540_v33  ;;  %v6754_v46 = vld [vmem:[#allocation7 + $0x450] sm:$0xf] }
 0x13d   :  { %v8256_v5 = vpop.f32.mrf.mxu2  ;;  %v6515_v42 = vor.u32 %v7722_v38, %v6514_v17  ;;  %v2554_v39 = vmax.f32 %v8266_v61, 0.0  ;;  %v2555_v17 = vmax.f32 %v8272_v52, 0.0  ;;  %v2051_v8 = vpop.f32.mrf.mxu0  ;;  %v7806_v52 = vld [vmem:[#allocation7 + $0x518] sm:$0xf0] }
 0x13e   :  { %4507 = vmatpush.bf16.msrb.mxu0 %v6251_v53  ;;  %v2447_v53 = vunpack.c.h.bf16 %v8241_v1  ;;  %v6298_v1 = vld [vmem:[#allocation7 + $0xc0] sm:$0xf]  ;;  %v2542_v22 = vmax.f32 %v8264_v54, 0.0  ;;  %v2342_v54 = vperm.slane %v8159_v28, 6  ;;  %v2052_v11 = vadd.f32 %v2051_v8, %v8258_v36 }
 0x13f   :  { %4521 = vmatpush.bf16.msrb.mxu1 %v6347_v55  ;;  %v6502_v55 = vld [vmem:[#allocation7 + $0x258] sm:$0xf]  ;;  %v6299_v38 = vor.u32 %v7668_v30, %v6298_v1  ;;  %v7779_v30 = vld [vmem:[#allocation7 + $0x440] sm:$0xf0]  ;;  %v2010_v36 = vadd.f32 %v8247_v3, %v8239_v56  ;;  %v6622_v56 = vld [vmem:[#allocation7 + $0x348] sm:$0xf] }
 0x140   :  { %4535 = vmatpush.bf16.msrb.mxu2 %v6443_v59  ;;  %4549 = vmatpush.bf16.msrb.mxu3 %v6539_v50  ;;  %v7719_v59 = vld [vmem:[#allocation7 + $0x260] sm:$0xf0]  ;;  %v6215_v50 = vor.u32 %v7647_v48, %v6214_v58  ;;  %v2483_v19 = vadd.f32 %v2471_v41, %v2447_v53  ;;  %v7809_v58 = vld [vmem:[#allocation7 + $0x530] sm:$0xf0]  ;;  %v6767_v48 = vor.u32 %v7785_v25, %v6766_v29  ;;  %v6958_v41 = vld [vmem:[#allocation7 + $0x5e8] sm:$0xf] }
 0x141   :  { %v6503_v2 = vor.u32 %v7719_v59, %v6502_v55  ;;  %v7782_v53 = vld [vmem:[#allocation7 + $0x458] sm:$0xf0]  ;;  %v2343_v55 = vperm.slane %v8159_v28, 7  ;;  %v8295_v33 = vpack.c.bf16 %v2554_v39, %v2542_v22  ;;  %v6850_v28 = vld [vmem:[#allocation7 + $0x510] sm:$0xf]  ;;  %v2065_v7 = vpop.f32.mrf.mxu1  ;;  %v2008_v29 = vadd.f32 %v8211_v13, %v8206_v0 }
 0x142   :  { %4508 = vmatpush.bf16.msrb.mxu0 %v6239_v12  ;;  %v6490_v12 = vld [vmem:[#allocation7 + $0x240] sm:$0xf]  ;;  %v2543_v59 = vmax.f32 %v2483_v19, 0.0  ;;  %v6755_v9 = vor.u32 %v7782_v53, %v6754_v46  ;;  %v6742_v1 = vld [vmem:[#allocation7 + $0x438] sm:$0xf]  ;;  %v2050_v25 = vadd.f32 %v8268_v62, %v8228_v43 }
 0x143   :  { %4522 = vmatpush.bf16.msrb.mxu1 %v6335_v14  ;;  %v7716_v14 = vld [vmem:[#allocation7 + $0x248] sm:$0xf0]  ;;  %v6634_v19 = vld [vmem:[#allocation7 + $0x360] sm:$0xf]  ;;  %v6743_v39 = vor.u32 %v7779_v30, %v6742_v1  ;;  %v7749_v53 = vld [vmem:[#allocation7 + $0x350] sm:$0xf0] }
 0x144   :  { %4536 = vmatpush.bf16.msrb.mxu2 %v6431_v16  ;;  %4550 = vmatpush.bf16.msrb.mxu3 %v6527_v23  ;;  %v6670_v16 = vld [vmem:[#allocation7 + $0x3a8] sm:$0xf]  ;;  %v2362_v23 = vpack.c.bf16 %v2341_v15, %v2340_v40  ;;  %v8279_v32 = vpop.f32.mrf.mxu3  ;;  %v8293_v40 = vpack.c.bf16 %v2553_v49, %v2541_v57  ;;  %v6946_v57 = vld [vmem:[#allocation7 + $0x5d0] sm:$0xf]  ;;  %v7830_v49 = vld [vmem:[#allocation7 + $0x5d8] sm:$0xf0] }
 0x145   :  { %v8277_v26 = vpop.f32.mrf.mxu2  ;;  %v6671_v35 = vor.u32 %v7761_v18, %v6670_v16  ;;  %v6947_v22 = vor.u32 %v7830_v49, %v6946_v57  ;;  %v6826_v43 = vld [vmem:[#allocation7 + $0x4e0] sm:$0xf]  ;;  %v7800_v62 = vld [vmem:[#allocation7 + $0x4e8] sm:$0xf0]  ;;  %v7797_v57 = vld [vmem:[#allocation7 + $0x4d0] sm:$0xf0] }
 0x146   :  { %4509 = vmatpush.bf16.msrb.mxu0 %v6227_v4  ;;  %v6491_v4 = vor.u32 %v7716_v14, %v6490_v12  ;;  %v2376_v44 = vunpack.c.l.b16 %v2362_v23  ;;  %v2377_v61 = vunpack.c.h.b16 %v2362_v23  ;;  %v6851_v12 = vor.u32 %v7806_v52, %v6850_v28  ;;  %v6838_v23 = vld [vmem:[#allocation7 + $0x4f8] sm:$0xf]  ;;  %v6610_v52 = vld [vmem:[#allocation7 + $0x330] sm:$0xf]  ;;  %v6910_v1 = vld [vmem:[#allocation7 + $0x588] sm:$0xf] }
 0x147   :  { %4523 = vmatpush.bf16.msrb.mxu1 %v6323_v21  ;;  %v6658_v21 = vld [vmem:[#allocation7 + $0x390] sm:$0xf]  ;;  %v7821_v30 = vld [vmem:[#allocation7 + $0x590] sm:$0xf0] }
 0x148   :  { %4537 = vmatpush.bf16.msrb.mxu2 %v6419_v6  ;;  %4551 = vmatpush.bf16.msrb.mxu3 %v6515_v42  ;;  %v6862_v6 = vld [vmem:[#allocation7 + $0x528] sm:$0xf]  ;;  %v7833_v42 = vld [vmem:[#allocation7 + $0x5f0] sm:$0xf0]  ;;  %v6659_v47 = vor.u32 %v7758_v37, %v6658_v21  ;;  %v2389_v10 = vpack.c.b16 %v2377_v61, %v2377_v61  ;;  %v2066_v37 = vadd.f32 %v2065_v7, %v2052_v11  ;;  %v7746_v7 = vld [vmem:[#allocation7 + $0x338] sm:$0xf0] }
 0x149   :  { %v6863_v15 = vor.u32 %v7809_v58, %v6862_v6  ;;  %v6959_v51 = vor.u32 %v7833_v42, %v6958_v41  ;;  %v2022_v41 = vadd.f32 %v8226_v20, %v2008_v29  ;;  %v2064_v42 = vadd.f32 %v8274_v31, %v2050_v25  ;;  %v7773_v61 = vld [vmem:[#allocation7 + $0x410] sm:$0xf0]  ;;  %v6598_v29 = vld [vmem:[#allocation7 + $0x318] sm:$0xf] }
 0x14a   :  { %4510 = vmatpush.bf16.msrb.mxu0 %v6215_v50  ;;  %v6646_v50 = vld [vmem:[#allocation7 + $0x378] sm:$0xf]  ;;  %v6827_v31 = vor.u32 %v7800_v62, %v6826_v43  ;;  %v8337_v43 = vld [vmem:[#allocation7 + $0x300] sm:$0xf] }
 0x14b   :  { %4524 = vmatpush.bf16.msrb.mxu1 %v6311_v60  ;;  %v8298_v60 = vpack.c.bf16 %v2555_v17, %v2543_v59  ;;  %v6647_v14 = vor.u32 %v7755_v27, %v6646_v50  ;;  %v7752_v17 = vld [vmem:[#allocation7 + $0x368] sm:$0xf0]  ;;  %v6718_v59 = vld [vmem:[#allocation7 + $0x408] sm:$0xf]  ;;  %v8323_v49 = vpack.c.bf16 %v2064_v42, %v2022_v41 }
 0x14c   :  { %4538 = vmatpush.bf16.msrb.mxu2 %v6407_v63  ;;  %4552 = vmatpush.bf16.msrb.mxu3 %v6503_v2  ;;  %v2388_v63 = vpack.c.b16 %v2376_v44, %v2376_v44  ;;  %v2363_v2 = vpack.c.bf16 %v2343_v55, %v2342_v54  ;;  %v8306_v18 = vpop.f32.mrf.mxu3  ;;  %v6635_v13 = vor.u32 %v7752_v17, %v6634_v19  ;;  %v6922_v54 = vld [vmem:[#allocation7 + $0x5a0] sm:$0xf]  ;;  %v7824_v55 = vld [vmem:[#allocation7 + $0x5a8] sm:$0xf0]  ;;  %v6814_v27 = vld [vmem:[#allocation7 + $0x4c8] sm:$0xf] }
 0x14d   :  { %v8304_v16 = vpop.f32.mrf.mxu2  ;;  %v2024_v44 = vadd.f32 %v8256_v5, %v2010_v36  ;;  %v6623_v5 = vor.u32 %v7749_v53, %v6622_v56  ;;  %v7770_v19 = vld [vmem:[#allocation7 + $0x3f8] sm:$0xf0]  ;;  %v6815_v36 = vor.u32 %v7797_v57, %v6814_v27  ;;  %v7743_v17 = vld [vmem:[#allocation7 + $0x320] sm:$0xf0]  ;;  %v7740_v42 = vld [vmem:[#allocation7 + $0x308] sm:$0xf0] }
 0x14e   :  { %4511 = vmatpush.bf16.msrb.mxu0 %v6203_v24  ;;  %v7803_v24 = vld [vmem:[#allocation7 + $0x500] sm:$0xf0]  ;;  %v2378_v21 = vunpack.c.l.b16 %v2363_v2  ;;  %v2379_v6 = vunpack.c.h.b16 %v2363_v2  ;;  %v2413_v58 = vpack.i.b16 %v2388_v63, %v2388_v63  ;;  %v2105_v20 = vpop.f32.mrf.mxu0  ;;  %v6719_v63 = vor.u32 %v7773_v61, %v6718_v59  ;;  %v6790_v61 = vld [vmem:[#allocation7 + $0x498] sm:$0xf] }
 0x14f   :  { %4525 = vmatpush.bf16.msrb.mxu1 %v6299_v38  ;;  %v6934_v38 = vld [vmem:[#allocation7 + $0x5b8] sm:$0xf]  ;;  %v6839_v0 = vor.u32 %v7803_v24, %v6838_v23  ;;  %v8321_v28 = vpack.c.bf16 %v2066_v37, %v2024_v44  ;;  %v2092_v23 = vadd.f32 %v8279_v32, %v8277_v26  ;;  %v2449_v37 = vunpack.c.h.bf16 %v8323_v49  ;;  %v8341_v44 = vld [vmem:[#allocation7 + $0x3c0] sm:$0xf] }
 0x150   :  { %4539 = vmatpush.bf16.msrb.mxu2 %v6395_v34  ;;  %4553 = vmatpush.bf16.msrb.mxu3 %v6491_v4  ;;  %v7827_v34 = vld [vmem:[#allocation7 + $0x5c0] sm:$0xf0]  ;;  %v6730_v4 = vld [vmem:[#allocation7 + $0x420] sm:$0xf]  ;;  %v2390_v8 = vpack.c.b16 %v2378_v21, %v2378_v21  ;;  %v8317_v50 = vperm.slane %v2413_v58, 0  ;;  %v2094_v27 = vadd.f32 %v8306_v18, %v8304_v16 }
 0x151   :  { %4512 = vmatmul.bf16.vlgmr.msrb.gmra.mxu0 %v8285_v45  ;;  %v6935_v3 = vor.u32 %v7827_v34, %v6934_v38  ;;  %v6911_v38 = vor.u32 %v7821_v30, %v6910_v1  ;;  %v6802_v34 = vld [vmem:[#allocation7 + $0x4b0] sm:$0xf]  ;;  %v6694_v32 = vld [vmem:[#allocation7 + $0x3d8] sm:$0xf]  ;;  %v2106_v41 = vadd.f32 %v2105_v20, %v2092_v23  ;;  %v7815_v20 = vld [vmem:[#allocation7 + $0x560] sm:$0xf0]  ;;  %v6587_v30 = vor.u32 %v7740_v42, %v8337_v43 }
 0x152   :  { %4560 = vmatpush.bf16.msra.mxu0 %v6671_v35  ;;  %4526 = vmatmul.bf16.vlgmr.msrb.gmra.mxu1 %v8293_v40  ;;  %v7776_v35 = vld [vmem:[#allocation7 + $0x428] sm:$0xf0]  ;;  %v2421_v11 = vpack.i.b16 %v2390_v8, %v2390_v8  ;;  %v2472_v25 = vunpack.c.l.bf16 %v8317_v50  ;;  %v6898_v58 = vld [vmem:[#allocation7 + $0x570] sm:$0xf]  ;;  %v6886_v8 = vld [vmem:[#allocation7 + $0x558] sm:$0xf] }
 0x153   :  { %4574 = vmatpush.bf16.msra.mxu1 %v6767_v48  ;;  %4540 = vmatmul.bf16.vlgmr.msrb.gmra.mxu2 %v8295_v33  ;;  %v2417_v48 = vpack.i.b16 %v2389_v10, %v2389_v10  ;;  %v6731_v46 = vor.u32 %v7776_v35, %v6730_v4  ;;  %v7794_v4 = vld [vmem:[#allocation7 + $0x4b8] sm:$0xf0]  ;;  %v2448_v35 = vunpack.c.l.bf16 %v8323_v49  ;;  %v6887_v16 = vor.u32 %v7815_v20, %v6886_v8  ;;  %v6874_v23 = vld [vmem:[#allocation7 + $0x540] sm:$0xf]  ;;  %v7030_v42 = vld [vmem:[#allocation7 + $0x678] sm:$0xf] }
 0x154   :  { %4554 = vmatmul.bf16.vlgmr.msrb.gmra.mxu3 %v8298_v60  ;;  %4588 = vmatpush.bf16.msra.mxu2 %v6863_v15  ;;  %v2119_v15 = vpop.f32.mrf.mxu1  ;;  %v6803_v53 = vor.u32 %v7794_v4, %v6802_v34  ;;  %v7114_v20 = vld [vmem:[#allocation7 + $0x720] sm:$0xf] }
 0x155   :  { %4602 = vmatpush.bf16.msra.mxu3 %v6959_v51  ;;  %v8319_v51 = vperm.slane %v2417_v48, 0  ;;  %v7818_v48 = vld [vmem:[#allocation7 + $0x578] sm:$0xf0] }
 0x156   :  { %4561 = vmatpush.bf16.msra.mxu0 %v6659_v47  ;;  %v2391_v47 = vpack.c.b16 %v2379_v6, %v2379_v6  ;;  %v2133_v2 = vpop.f32.mrf.mxu2  ;;  %v6899_v59 = vor.u32 %v7818_v48, %v6898_v58  ;;  %v2107_v50 = vpop.f32.mrf.mxu0 }
 0x157   :  { %4575 = vmatpush.bf16.msra.mxu1 %v6755_v9  ;;  %v6923_v9 = vor.u32 %v7824_v55, %v6922_v54  ;;  %v2134_v24 = vadd.f32 %v2133_v2, %v2119_v15  ;;  %v2473_v21 = vunpack.c.l.bf16 %v8319_v51  ;;  %v6599_v54 = vor.u32 %v7743_v17, %v6598_v29  ;;  %v7791_v15 = vld [vmem:[#allocation7 + $0x4a0] sm:$0xf0]  ;;  %v7042_v17 = vld [vmem:[#allocation7 + $0x690] sm:$0xf] }
 0x158   :  { %4589 = vmatpush.bf16.msra.mxu2 %v6851_v12  ;;  %v2147_v10 = vpop.f32.mrf.mxu3  ;;  %v2425_v12 = vpack.i.b16 %v2391_v47, %v2391_v47  ;;  %v2484_v47 = vadd.f32 %v2472_v25, %v2448_v35  ;;  %v6791_v2 = vor.u32 %v7791_v15, %v6790_v61 }
 0x159   :  { %4603 = vmatpush.bf16.msra.mxu3 %v6947_v22  ;;  %v2460_v22 = vunpack.c.l.bf16 %v8321_v28  ;;  %v2148_v6 = vadd.f32 %v2147_v10, %v2134_v24  ;;  %v7150_v10 = vld [vmem:[#allocation7 + $0x768] sm:$0xf]  ;;  %v2108_v24 = vadd.f32 %v2107_v50, %v2094_v27  ;;  %v7905_v27 = vld [vmem:[#allocation7 + $0x830] sm:$0xf0] }
 0x15a   :  { %4562 = vmatpush.bf16.msra.mxu0 %v6647_v14  ;;  %v6706_v14 = vld [vmem:[#allocation7 + $0x3f0] sm:$0xf]  ;;  %v8335_v56 = vperm.slane %v2425_v12, 0  ;;  %v2544_v34 = vmax.f32 %v2484_v47, 0.0  ;;  %v7018_v47 = vld [vmem:[#allocation7 + $0x660] sm:$0xf] }
 0x15b   :  { %4576 = vmatpush.bf16.msra.mxu1 %v6743_v39  ;;  %v6611_v39 = vor.u32 %v7746_v7, %v6610_v52  ;;  %v6707_v26 = vor.u32 %v7770_v19, %v6706_v14  ;;  %v8339_v62 = vadd.f32 %v2472_v25, %v2460_v22  ;;  %v2323_v51 = vpack.c.bf16 %v2148_v6, %v2106_v41  ;;  %v6778_v19 = vld [vmem:[#allocation7 + $0x480] sm:$0xf]  ;;  %v7788_v22 = vld [vmem:[#allocation7 + $0x488] sm:$0xf0] }
 0x15c   :  { %4590 = vmatpush.bf16.msra.mxu2 %v6839_v0  ;;  %v2461_v0 = vunpack.c.h.bf16 %v8321_v28  ;;  %v2121_v55 = vpop.f32.mrf.mxu1  ;;  %v2485_v52 = vadd.f32 %v2473_v21, %v2449_v37  ;;  %v2475_v12 = vunpack.c.l.bf16 %v8335_v56  ;;  %v6779_v6 = vor.u32 %v7788_v22, %v6778_v19  ;;  %v7926_v22 = vld [vmem:[#allocation7 + $0x8d8] sm:$0xf0] }
 0x15d   :  { %4604 = vmatpush.bf16.msra.mxu3 %v6935_v3  ;;  %v7767_v3 = vld [vmem:[#allocation7 + $0x3e0] sm:$0xf0]  ;;  %v2556_v7 = vmax.f32 %v8339_v62, 0.0  ;;  %v2450_v29 = vunpack.c.l.bf16 %v2323_v51 }
 0x15e   :  { %4563 = vmatpush.bf16.msra.mxu0 %v6635_v13  ;;  %v8333_v13 = vperm.slane %v2421_v11, 0  ;;  %v6695_v28 = vor.u32 %v7767_v3, %v6694_v32  ;;  %v2135_v49 = vpop.f32.mrf.mxu2  ;;  %v7881_v11 = vld [vmem:[#allocation7 + $0x770] sm:$0xf0]  ;;  %v7878_v32 = vld [vmem:[#allocation7 + $0x758] sm:$0xf0]  ;;  %v2545_v58 = vmax.f32 %v2485_v52, 0.0 }
 0x15f   :  { %4577 = vmatpush.bf16.msra.mxu1 %v6731_v46  ;;  %v8343_v46 = vld [vmem:[#allocation7 + $0x3c8] sm:$0xf0]  ;;  %v2136_v1 = vadd.f32 %v2135_v49, %v2121_v55  ;;  %v7151_v35 = vor.u32 %v7881_v11, %v7150_v10  ;;  %v8353_v48 = vpack.c.bf16 %v2556_v7, %v2544_v34  ;;  %v7875_v55 = vld [vmem:[#allocation7 + $0x740] sm:$0xf0]  ;;  %v7006_v7 = vld [vmem:[#allocation7 + $0x648] sm:$0xf] }
 0x160   :  { %4591 = vmatpush.bf16.msra.mxu2 %v6827_v31  ;;  %v7054_v31 = vld [vmem:[#allocation7 + $0x6a8] sm:$0xf]  ;;  %v2474_v57 = vunpack.c.l.bf16 %v8333_v13  ;;  %v6683_v14 = vor.u32 %v8343_v46, %v8341_v44  ;;  %v7845_v10 = vld [vmem:[#allocation7 + $0x650] sm:$0xf0]  ;;  %v7899_v34 = vld [vmem:[#allocation7 + $0x800] sm:$0xf0] }
 0x161   :  { %4605 = vmatpush.bf16.msra.mxu3 %v6923_v9  ;;  %v2497_v9 = vadd.f32 %v2473_v21, %v2461_v0  ;;  %v7102_v11 = vld [vmem:[#allocation7 + $0x708] sm:$0xf] }
 0x162   :  { %4564 = vmatpush.bf16.msra.mxu0 %v6623_v5  ;;  %v7857_v5 = vld [vmem:[#allocation7 + $0x6b0] sm:$0xf0]  ;;  %v2486_v13 = vadd.f32 %v2474_v57, %v2450_v29  ;;  %v7007_v29 = vor.u32 %v7845_v10, %v7006_v7  ;;  %v7186_v10 = vld [vmem:[#allocation7 + $0x7b0] sm:$0xf] }
 0x163   :  { %4578 = vmatpush.bf16.msra.mxu1 %v6719_v63  ;;  %v2149_v63 = vpop.f32.mrf.mxu3  ;;  %v7055_v18 = vor.u32 %v7857_v5, %v7054_v31  ;;  %v2557_v4 = vmax.f32 %v2497_v9, 0.0  ;;  %v7872_v31 = vld [vmem:[#allocation7 + $0x728] sm:$0xf0]  ;;  %v7246_v9 = vld [vmem:[#allocation7 + $0x828] sm:$0xf] }
 0x164   :  { %4592 = vmatpush.bf16.msra.mxu2 %v6815_v36  ;;  %v2451_v36 = vunpack.c.h.bf16 %v2323_v51  ;;  %v2150_v25 = vadd.f32 %v2149_v63, %v2136_v1  ;;  %v7247_v49 = vor.u32 %v7905_v27, %v7246_v9  ;;  %v7929_v63 = vld [vmem:[#allocation7 + $0x8f0] sm:$0xf0]  ;;  %v7294_v9 = vld [vmem:[#allocation7 + $0x888] sm:$0xf]  ;;  %v6384_v27 = vld [vmem:[#allocation7 + $0x174] sm:$0xf0] }
 0x165   :  { %4606 = vmatpush.bf16.msra.mxu3 %v6911_v38  ;;  %v7854_v38 = vld [vmem:[#allocation7 + $0x698] sm:$0xf0]  ;;  %v8355_v62 = vpack.c.bf16 %v2557_v4, %v2545_v58  ;;  %v7318_v4 = vld [vmem:[#allocation7 + $0x8b8] sm:$0xf]  ;;  %v7917_v7 = vld [vmem:[#allocation7 + $0x890] sm:$0xf0] }
 0x166   :  { %4565 = vmatpush.bf16.msra.mxu0 %v6611_v39  ;;  %v7812_v39 = vld [vmem:[#allocation7 + $0x548] sm:$0xf0]  ;;  %v2329_v21 = vpack.c.bf16 %v2150_v25, %v2108_v24  ;;  %v7043_v0 = vor.u32 %v7854_v38, %v7042_v17  ;;  %v2487_v56 = vadd.f32 %v2475_v12, %v2451_v36  ;;  %v7842_v25 = vld [vmem:[#allocation7 + $0x638] sm:$0xf0]  ;;  %v7222_v38 = vld [vmem:[#allocation7 + $0x7f8] sm:$0xf] }
 0x167   :  { %4579 = vmatpush.bf16.msra.mxu1 %v6707_v26  ;;  %v7138_v26 = vld [vmem:[#allocation7 + $0x750] sm:$0xf]  ;;  %v6875_v37 = vor.u32 %v7812_v39, %v6874_v23  ;;  %v7866_v17 = vld [vmem:[#allocation7 + $0x6f8] sm:$0xf0] }
 0x168   :  { %4593 = vmatpush.bf16.msra.mxu2 %v6803_v53  ;;  %v2462_v3 = vunpack.c.l.bf16 %v2329_v21  ;;  %v2463_v43 = vunpack.c.h.bf16 %v2329_v21  ;;  %v7139_v41 = vor.u32 %v7878_v32, %v7138_v26  ;;  %v7851_v53 = vld [vmem:[#allocation7 + $0x680] sm:$0xf0]  ;;  %v2547_v61 = vmax.f32 %v2487_v56, 0.0  ;;  %v6994_v23 = vld [vmem:[#allocation7 + $0x630] sm:$0xf] }
 0x169   :  { %4607 = vmatpush.bf16.msra.mxu3 %v6899_v59  ;;  %v2546_v59 = vmax.f32 %v2486_v13, 0.0  ;;  %v7031_v50 = vor.u32 %v7851_v53, %v7030_v42  ;;  %v7090_v39 = vld [vmem:[#allocation7 + $0x6f0] sm:$0xf]  ;;  %v7923_v21 = vld [vmem:[#allocation7 + $0x8c0] sm:$0xf0]  ;;  %v6995_v32 = vor.u32 %v7842_v25, %v6994_v23 }
 0x16a   :  { %4566 = vmatpush.bf16.msra.mxu0 %v6599_v54  ;;  %v2498_v44 = vadd.f32 %v2474_v57, %v2462_v3  ;;  %v2499_v46 = vadd.f32 %v2475_v12, %v2463_v43  ;;  %v7126_v54 = vld [vmem:[#allocation7 + $0x738] sm:$0xf]  ;;  %v7342_v57 = vld [vmem:[#allocation7 + $0x8e8] sm:$0xf]  ;;  %v7869_v12 = vld [vmem:[#allocation7 + $0x710] sm:$0xf0]  ;;  %v7319_v26 = vor.u32 %v7923_v21, %v7318_v4  ;;  %v7091_v58 = vor.u32 %v7866_v17, %v7090_v39 }
 0x16b   :  { %4580 = vmatpush.bf16.msra.mxu1 %v6695_v28  ;;  %v7127_v51 = vor.u32 %v7875_v55, %v7126_v54  ;;  %v7848_v28 = vld [vmem:[#allocation7 + $0x668] sm:$0xf0]  ;;  %v7343_v1 = vor.u32 %v7929_v63, %v7342_v57  ;;  %v7103_v36 = vor.u32 %v7869_v12, %v7102_v11  ;;  %v7863_v13 = vld [vmem:[#allocation7 + $0x6e0] sm:$0xf0]  ;;  %v7210_v3 = vld [vmem:[#allocation7 + $0x7e0] sm:$0xf] }
 0x16c   :  { %4594 = vmatpush.bf16.msra.mxu2 %v6791_v2  ;;  %v2558_v15 = vmax.f32 %v2498_v44, 0.0  ;;  %v2559_v8 = vmax.f32 %v2499_v46, 0.0  ;;  %v7115_v2 = vor.u32 %v7872_v31, %v7114_v20  ;;  %v7896_v43 = vld [vmem:[#allocation7 + $0x7e8] sm:$0xf0]  ;;  %v6970_v53 = vld [vmem:[#allocation7 + $0x600] sm:$0xf] }
 0x16d   :  { %4608 = vmatpush.bf16.msra.mxu3 %v6887_v16  ;;  %v7902_v16 = vld [vmem:[#allocation7 + $0x818] sm:$0xf0]  ;;  %v7211_v44 = vor.u32 %v7896_v43, %v7210_v3  ;;  %v7920_v46 = vld [vmem:[#allocation7 + $0x8a8] sm:$0xf0]  ;;  %v7066_v55 = vld [vmem:[#allocation7 + $0x6c0] sm:$0xf] }
 0x16e   :  { %4567 = vmatpush.bf16.msra.mxu0 %v6587_v30  ;;  %v8359_v5 = vpack.c.bf16 %v2558_v15, %v2546_v59  ;;  %v8361_v52 = vpack.c.bf16 %v2559_v8, %v2547_v61  ;;  %v7019_v30 = vor.u32 %v7848_v28, %v7018_v47  ;;  %v8365_v56 = vpop.f32.mrf.mxu0  ;;  %v7836_v54 = vld [vmem:[#allocation7 + $0x608] sm:$0xf0]  ;;  %v8372_v61 = vld [vmem:[%s8513_s2 + $0x8] sm:$0xf]  ;;  %v7198_v20 = vld [vmem:[#allocation7 + $0x7c8] sm:$0xf] }
 0x16f   :  { %4581 = vmatpush.bf16.msra.mxu1 %v6683_v14  ;;  %v7234_v14 = vld [vmem:[#allocation7 + $0x810] sm:$0xf]  ;;  %v8367_v42 = vpop.f32.mrf.mxu1  ;;  %v7860_v59 = vld [vmem:[#allocation7 + $0x6c8] sm:$0xf0]  ;;  %v7893_v31 = vld [vmem:[#allocation7 + $0x7d0] sm:$0xf0] }
 0x170   :  { %4595 = vmatpush.bf16.msra.mxu2 %v6779_v6  ;;  %v7235_v19 = vor.u32 %v7902_v16, %v7234_v14  ;;  %v6982_v6 = vld [vmem:[#allocation7 + $0x618] sm:$0xf]  ;;  %v7688_v28 = vld [vmem:[#allocation7 + $0x16c] sm:$0xf]  ;;  %v2344_v57 = vperm.slane %v8372_v61, 0  ;;  %v7199_v63 = vor.u32 %v7893_v31, %v7198_v20 }
 0x171   :  { %4568 = vmatmul.bf16.vlgmr.msra.gmra.mxu0 %v8353_v48  ;;  %4609 = vmatpush.bf16.msra.mxu3 %v6875_v37  ;;  %v7839_v37 = vld [vmem:[#allocation7 + $0x620] sm:$0xf0]  ;;  %v7890_v11 = vld [vmem:[#allocation7 + $0x7b8] sm:$0xf0]  ;;  %v6387_v14 = vor.u32 %v7688_v28, %v6384_v27  ;;  %v7661_v16 = vld [vmem:[#allocation7 + $0x94] sm:$0xf]  ;;  %v2176_v27 = vadd.f32 %v8367_v42, %v8365_v56 }
 0x172   :  { %4616 = vmatpush.bf16.msrb.mxu0 %v7055_v18  ;;  %4582 = vmatmul.bf16.vlgmr.msra.gmra.mxu1 %v8355_v62  ;;  %v7330_v18 = vld [vmem:[#allocation7 + $0x8d0] sm:$0xf]  ;;  %v6983_v8 = vor.u32 %v7839_v37, %v6982_v6  ;;  %v7685_v23 = vld [vmem:[#allocation7 + $0x154] sm:$0xf]  ;;  %v7682_v21 = vld [vmem:[#allocation7 + $0x13c] sm:$0xf] }
 0x173   :  { %4630 = vmatpush.bf16.msrb.mxu1 %v7151_v35  ;;  %4596 = vmatmul.bf16.vlgmr.msra.gmra.mxu2 %v8359_v5  ;;  %v7331_v24 = vor.u32 %v7926_v22, %v7330_v18  ;;  %v7223_v35 = vor.u32 %v7899_v34, %v7222_v38  ;;  %v7282_v18 = vld [vmem:[#allocation7 + $0x870] sm:$0xf]  ;;  %v6276_v22 = vld [vmem:[#allocation7 + $0x9c] sm:$0xf0]  ;;  %v7658_v38 = vld [vmem:[#allocation7 + $0x7c] sm:$0xf] }
 0x174   :  { %4610 = vmatmul.bf16.vlgmr.msra.gmra.mxu3 %v8361_v52  ;;  %4644 = vmatpush.bf16.msrb.mxu2 %v7247_v49  ;;  %v2345_v49 = vperm.slane %v8372_v61, 1  ;;  %v6264_v34 = vld [vmem:[#allocation7 + $0x84] sm:$0xf0]  ;;  %v6279_v4 = vor.u32 %v7661_v16, %v6276_v22  ;;  %v7174_v6 = vld [vmem:[#allocation7 + $0x798] sm:$0xf] }
 0x175   :  { %4658 = vmatpush.bf16.msrb.mxu3 %v7343_v1  ;;  %v7295_v1 = vor.u32 %v7917_v7, %v7294_v9  ;;  %v6360_v37 = vld [vmem:[#allocation7 + $0x144] sm:$0xf0]  ;;  %v7911_v3 = vld [vmem:[#allocation7 + $0x860] sm:$0xf0]  ;;  %v7908_v20 = vld [vmem:[#allocation7 + $0x848] sm:$0xf0] }
 0x176   :  { %4617 = vmatpush.bf16.msrb.mxu0 %v7043_v0  ;;  %v7078_v0 = vld [vmem:[#allocation7 + $0x6d8] sm:$0xf]  ;;  %v8376_v39 = vpop.f32.mrf.mxu0  ;;  %v7712_v31 = vld [vmem:[#allocation7 + $0x22c] sm:$0xf] }
 0x177   :  { %4631 = vmatpush.bf16.msrb.mxu1 %v7139_v41  ;;  %v7306_v41 = vld [vmem:[#allocation7 + $0x8a0] sm:$0xf]  ;;  %v7079_v47 = vor.u32 %v7863_v13, %v7078_v0  ;;  %v8378_v17 = vpop.f32.mrf.mxu1  ;;  %v7270_v13 = vld [vmem:[#allocation7 + $0x858] sm:$0xf]  ;;  %v7736_v7 = vld [vmem:[#allocation7 + $0x2ec] sm:$0xf] }
 0x178   :  { %4645 = vmatpush.bf16.msrb.mxu2 %v7235_v19  ;;  %v7307_v15 = vor.u32 %v7920_v46, %v7306_v41  ;;  %v7914_v19 = vld [vmem:[#allocation7 + $0x878] sm:$0xf0]  ;;  %v7271_v43 = vor.u32 %v7911_v3, %v7270_v13  ;;  %v7655_v41 = vld [vmem:[#allocation7 + $0x64] sm:$0xf]  ;;  %v6480_v9 = vld [vmem:[#allocation7 + $0x234] sm:$0xf0] }
 0x179   :  { %4659 = vmatpush.bf16.msrb.mxu3 %v7331_v24  ;;  %v6372_v24 = vld [vmem:[#allocation7 + $0x15c] sm:$0xf0]  ;;  %v7283_v25 = vor.u32 %v7914_v19, %v7282_v18  ;;  %v7679_v46 = vld [vmem:[#allocation7 + $0x124] sm:$0xf]  ;;  %v7676_v16 = vld [vmem:[#allocation7 + $0x10c] sm:$0xf] }
 0x17a   :  { %4618 = vmatpush.bf16.msrb.mxu0 %v7031_v50  ;;  %v7664_v50 = vld [vmem:[#allocation7 + $0xac] sm:$0xf]  ;;  %v7709_v18 = vld [vmem:[#allocation7 + $0x214] sm:$0xf]  ;;  %v6468_v19 = vld [vmem:[#allocation7 + $0x21c] sm:$0xf0] }
 0x17b   :  { %4632 = vmatpush.bf16.msrb.mxu1 %v7127_v51  ;;  %v6288_v51 = vld [vmem:[#allocation7 + $0xb4] sm:$0xf0]  ;;  %v7730_v13 = vld [vmem:[#allocation7 + $0x2bc] sm:$0xf] }
 0x17c   :  { %4646 = vmatpush.bf16.msrb.mxu2 %v7223_v35  ;;  %v6291_v12 = vor.u32 %v7664_v50, %v6288_v51  ;;  %v6375_v35 = vor.u32 %v7685_v23, %v6372_v24  ;;  %v6336_v42 = vld [vmem:[#allocation7 + $0x114] sm:$0xf0] }
 0x17d   :  { %4660 = vmatpush.bf16.msrb.mxu3 %v7319_v26  ;;  %v7887_v26 = vld [vmem:[#allocation7 + $0x7a0] sm:$0xf0] }
 0x17e   :  { %4619 = vmatpush.bf16.msrb.mxu0 %v7019_v30  ;;  %v6971_v30 = vor.u32 %v7836_v54, %v6970_v53  ;;  %v7175_v0 = vor.u32 %v7887_v26, %v7174_v6  ;;  %v6348_v53 = vld [vmem:[#allocation7 + $0x12c] sm:$0xf0]  ;;  %v6267_v54 = vor.u32 %v7658_v38, %v6264_v34  ;;  %v6471_v38 = vor.u32 %v7709_v18, %v6468_v19  ;;  %v6228_v26 = vld [vmem:[#allocation7 + $0x3c] sm:$0xf0]  ;;  %v7667_v18 = vld [vmem:[#allocation7 + $0xc4] sm:$0xf] }
 0x17f   :  { %4633 = vmatpush.bf16.msrb.mxu1 %v7115_v2  ;;  %v7067_v2 = vor.u32 %v7860_v59, %v7066_v55  ;;  %v6363_v55 = vor.u32 %v7682_v21, %v6360_v37  ;;  %v7162_v59 = vld [vmem:[#allocation7 + $0x780] sm:$0xf]  ;;  %v6339_v6 = vor.u32 %v7676_v16, %v6336_v42  ;;  %v7706_v37 = vld [vmem:[#allocation7 + $0x1fc] sm:$0xf]  ;;  %v6204_v16 = vld [vmem:[#allocation7 + $0xc] sm:$0xf0] }
 0x180   :  { %4647 = vmatpush.bf16.msrb.mxu2 %v7211_v44  ;;  %v6252_v44 = vld [vmem:[#allocation7 + $0x6c] sm:$0xf0]  ;;  %v7724_v42 = vld [vmem:[#allocation7 + $0x28c] sm:$0xf] }
 0x181   :  { %4661 = vmatpush.bf16.msrb.mxu3 %v7307_v15  ;;  %v7884_v15 = vld [vmem:[#allocation7 + $0x788] sm:$0xf0]  ;;  %v6300_v19 = vld [vmem:[#allocation7 + $0xcc] sm:$0xf0] }
 0x182   :  { %4620 = vmatpush.bf16.msrb.mxu0 %v7007_v29  ;;  %v2364_v29 = vpack.c.bf16 %v2345_v49, %v2344_v57  ;;  %v7163_v28 = vor.u32 %v7884_v15, %v7162_v59  ;;  %v2203_v57 = vpop.f32.mrf.mxu3 }
 0x183   :  { %4634 = vmatpush.bf16.msrb.mxu1 %v7103_v36  ;;  %v7187_v36 = vor.u32 %v7890_v11, %v7186_v10 }
 0x184   :  { %4648 = vmatpush.bf16.msrb.mxu2 %v7199_v63  ;;  %v6483_v63 = vor.u32 %v7712_v31, %v6480_v9 }
 0x185   :  { %4662 = vmatpush.bf16.msrb.mxu3 %v7295_v1  ;;  %v6576_v1 = vld [vmem:[#allocation7 + $0x2f4] sm:$0xf0] }
 0x186   :  { %4621 = vmatpush.bf16.msrb.mxu0 %v6995_v32  ;;  %v2380_v32 = vunpack.c.l.b16 %v2364_v29  ;;  %v6579_v10 = vor.u32 %v7736_v7, %v6576_v1  ;;  %v6540_v7 = vld [vmem:[#allocation7 + $0x2ac] sm:$0xf0] }
 0x187   :  { %4635 = vmatpush.bf16.msrb.mxu1 %v7091_v58  ;;  %v2381_v58 = vunpack.c.h.b16 %v2364_v29  ;;  %v7733_v29 = vld [vmem:[#allocation7 + $0x2d4] sm:$0xf] }
 0x188   :  { %4649 = vmatpush.bf16.msrb.mxu2 %v7187_v36  ;;  %v2392_v50 = vpack.c.b16 %v2380_v32, %v2380_v32  ;;  %v6564_v36 = vld [vmem:[#allocation7 + $0x2dc] sm:$0xf0]  ;;  %v7673_v32 = vld [vmem:[#allocation7 + $0xf4] sm:$0xf] }
 0x189   :  { %4663 = vmatpush.bf16.msrb.mxu3 %v7283_v25  ;;  %v2393_v51 = vpack.c.b16 %v2381_v58, %v2381_v58  ;;  %v6567_v34 = vor.u32 %v7733_v29, %v6564_v36  ;;  %v6324_v58 = vld [vmem:[#allocation7 + $0xfc] sm:$0xf0] }
 0x18a   :  { %4622 = vmatpush.bf16.msrb.mxu0 %v6983_v8  ;;  %v7258_v8 = vld [vmem:[#allocation7 + $0x840] sm:$0xf]  ;;  %v2429_v24 = vpack.i.b16 %v2392_v50, %v2392_v50  ;;  %v2205_v15 = vpop.f32.mrf.mxu3  ;;  %v6327_v50 = vor.u32 %v7673_v32, %v6324_v58  ;;  %v6672_v32 = vld [vmem:[#allocation7 + $0x3b4] sm:$0xf0]  ;;  %v7784_v58 = vld [vmem:[#allocation7 + $0x46c] sm:$0xf] }
 0x18b   :  { %4636 = vmatpush.bf16.msrb.mxu1 %v7079_v47  ;;  %v2189_v47 = vpop.f32.mrf.mxu2  ;;  %v7259_v49 = vor.u32 %v7908_v20, %v7258_v8  ;;  %v2433_v56 = vpack.i.b16 %v2393_v51, %v2393_v51  ;;  %v6216_v51 = vld [vmem:[#allocation7 + $0x24] sm:$0xf0] }
 0x18c   :  { %4650 = vmatpush.bf16.msrb.mxu2 %v7175_v0  ;;  %v2190_v25 = vadd.f32 %v2189_v47, %v2176_v27  ;;  %v6456_v0 = vld [vmem:[#allocation7 + $0x204] sm:$0xf0]  ;;  %v7703_v27 = vld [vmem:[#allocation7 + $0x1e4] sm:$0xf] }
 0x18d   :  { %4664 = vmatpush.bf16.msrb.mxu3 %v7271_v43  ;;  %v8382_v43 = vperm.slane %v2429_v24, 0  ;;  %v6312_v20 = vld [vmem:[#allocation7 + $0xe4] sm:$0xf0]  ;;  %v7700_v24 = vld [vmem:[#allocation7 + $0x1cc] sm:$0xf] }
 0x18e   :  { %4623 = vmatpush.bf16.msrb.mxu0 %v6971_v30  ;;  %v7652_v30 = vld [vmem:[#allocation7 + $0x4c] sm:$0xf]  ;;  %v2217_v11 = vpop.f32.mrf.mxu0 }
 0x18f   :  { %4637 = vmatpush.bf16.msrb.mxu1 %v7067_v2  ;;  %v6240_v2 = vld [vmem:[#allocation7 + $0x54] sm:$0xf0]  ;;  %v2218_v22 = vadd.f32 %v2217_v11, %v2203_v57  ;;  %v2231_v23 = vpop.f32.mrf.mxu1  ;;  %v6444_v57 = vld [vmem:[#allocation7 + $0x1ec] sm:$0xf0] }
 0x190   :  { %4651 = vmatpush.bf16.msrb.mxu2 %v7163_v28  ;;  %v6243_v21 = vor.u32 %v7652_v30, %v6240_v2  ;;  %v7670_v28 = vld [vmem:[#allocation7 + $0xdc] sm:$0xf]  ;;  %v6447_v11 = vor.u32 %v7703_v27, %v6444_v57  ;;  %v7781_v27 = vld [vmem:[#allocation7 + $0x454] sm:$0xf]  ;;  %v6756_v57 = vld [vmem:[#allocation7 + $0x45c] sm:$0xf0] }
 0x191   :  { %4665 = vmatpush.bf16.msrb.mxu3 %v7259_v49  ;;  %v7727_v49 = vld [vmem:[#allocation7 + $0x2a4] sm:$0xf] }
 0x192   :  { %4672 = vmatpush.bf16.msra.mxu0 %v6291_v12  ;;  %v6255_v12 = vor.u32 %v7655_v41, %v6252_v44  ;;  %v8384_v41 = vperm.slane %v2433_v56, 0  ;;  %v6459_v44 = vor.u32 %v7706_v37, %v6456_v0  ;;  %v6432_v56 = vld [vmem:[#allocation7 + $0x1d4] sm:$0xf0] }
 0x193   :  { %4686 = vmatpush.bf16.msra.mxu1 %v6387_v14  ;;  %v6351_v14 = vor.u32 %v7679_v46, %v6348_v53  ;;  %v6552_v46 = vld [vmem:[#allocation7 + $0x2c4] sm:$0xf0]  ;;  %v2178_v53 = vadd.f32 %v8378_v17, %v8376_v39  ;;  %v2476_v39 = vunpack.c.l.bf16 %v8382_v43  ;;  %v6435_v36 = vor.u32 %v7700_v24, %v6432_v56  ;;  %v6768_v37 = vld [vmem:[#allocation7 + $0x474] sm:$0xf0]  ;;  %v6420_v43 = vld [vmem:[#allocation7 + $0x1bc] sm:$0xf0] }
 0x194   :  { %4700 = vmatpush.bf16.msra.mxu2 %v6483_v63  ;;  %v6555_v59 = vor.u32 %v7730_v13, %v6552_v46  ;;  %v2477_v17 = vunpack.c.l.bf16 %v8384_v41  ;;  %v7721_v41 = vld [vmem:[#allocation7 + $0x274] sm:$0xf]  ;;  %v7715_v24 = vld [vmem:[#allocation7 + $0x244] sm:$0xf]  ;;  %v6492_v56 = vld [vmem:[#allocation7 + $0x24c] sm:$0xf0] }
 0x195   :  { %4714 = vmatpush.bf16.msra.mxu3 %v6579_v10  ;;  %v7643_v10 = vld [vmem:[#allocation7 + $0x4] sm:$0xf] }
 0x196   :  { %4673 = vmatpush.bf16.msra.mxu0 %v6279_v4  ;;  %v2232_v4 = vadd.f32 %v2231_v23, %v2218_v22  ;;  %v2219_v8 = vpop.f32.mrf.mxu0  ;;  %v6543_v22 = vor.u32 %v7727_v49, %v6540_v7  ;;  %v7694_v49 = vld [vmem:[#allocation7 + $0x19c] sm:$0xf]  ;;  %v2347_v7 = vperm.slane %v8372_v61, 3 }
 0x197   :  { %4687 = vmatpush.bf16.msra.mxu1 %v6375_v35  ;;  %v7649_v35 = vld [vmem:[#allocation7 + $0x34] sm:$0xf]  ;;  %v2220_v31 = vadd.f32 %v2219_v8, %v2205_v15  ;;  %v2233_v9 = vpop.f32.mrf.mxu1 }
 0x198   :  { %v2324_v3 = vpack.c.bf16 %v2232_v4, %v2190_v25  ;;  %4701 = vmatpush.bf16.msra.mxu2 %v6471_v38  ;;  %v6231_v47 = vor.u32 %v7649_v35, %v6228_v26  ;;  %v6528_v25 = vld [vmem:[#allocation7 + $0x294] sm:$0xf0]  ;;  %v7760_v35 = vld [vmem:[#allocation7 + $0x3ac] sm:$0xf]  ;;  %v6303_v26 = vor.u32 %v7667_v18, %v6300_v19  ;;  %v6744_v18 = vld [vmem:[#allocation7 + $0x444] sm:$0xf0] }
 0x199   :  { %4715 = vmatpush.bf16.msra.mxu3 %v6567_v34  ;;  %v2234_v2 = vadd.f32 %v2233_v9, %v2220_v31  ;;  %v6660_v9 = vld [vmem:[#allocation7 + $0x39c] sm:$0xf0]  ;;  %v7691_v19 = vld [vmem:[#allocation7 + $0x184] sm:$0xf] }
 0x19a   :  { %4674 = vmatpush.bf16.msra.mxu0 %v6267_v54  ;;  %v2191_v54 = vpop.f32.mrf.mxu2  ;;  %v2452_v63 = vunpack.c.l.bf16 %v2324_v3  ;;  %v2453_v1 = vunpack.c.h.bf16 %v2324_v3  ;;  %v7697_v3 = vld [vmem:[#allocation7 + $0x1b4] sm:$0xf] }
 0x19b   :  { %4688 = vmatpush.bf16.msra.mxu1 %v6363_v55  ;;  %v7646_v55 = vld [vmem:[#allocation7 + $0x1c] sm:$0xf]  ;;  %v2192_v30 = vadd.f32 %v2191_v54, %v2178_v53  ;;  %v6423_v46 = vor.u32 %v7697_v3, %v6420_v43  ;;  %v6516_v53 = vld [vmem:[#allocation7 + $0x27c] sm:$0xf0]  ;;  %v6720_v3 = vld [vmem:[#allocation7 + $0x414] sm:$0xf0] }
 0x19c   :  { %4702 = vmatpush.bf16.msra.mxu2 %v6459_v44  ;;  %v2488_v29 = vadd.f32 %v2476_v39, %v2452_v63  ;;  %v2489_v38 = vadd.f32 %v2477_v17, %v2453_v1  ;;  %v6519_v8 = vor.u32 %v7721_v41, %v6516_v53  ;;  %v6408_v63 = vld [vmem:[#allocation7 + $0x1a4] sm:$0xf0] }
 0x19d   :  { %4716 = vmatpush.bf16.msra.mxu3 %v6555_v59  ;;  %v2330_v23 = vpack.c.bf16 %v2234_v2, %v2192_v30  ;;  %v6411_v1 = vor.u32 %v7694_v49, %v6408_v63  ;;  %v6504_v30 = vld [vmem:[#allocation7 + $0x264] sm:$0xf0] }
 0x19e   :  { %4675 = vmatpush.bf16.msra.mxu0 %v6255_v12  ;;  %v6219_v12 = vor.u32 %v7646_v55, %v6216_v51  ;;  %v2548_v44 = vmax.f32 %v2488_v29, 0.0  ;;  %v2549_v54 = vmax.f32 %v2489_v38, 0.0  ;;  %v6771_v51 = vor.u32 %v7784_v58, %v6768_v37  ;;  %v7748_v37 = vld [vmem:[#allocation7 + $0x34c] sm:$0xf] }
 0x19f   :  { %4689 = vmatpush.bf16.msra.mxu1 %v6351_v14  ;;  %v6315_v14 = vor.u32 %v7670_v28, %v6312_v20  ;;  %v2464_v34 = vunpack.c.l.bf16 %v2330_v23  ;;  %v2465_v4 = vunpack.c.h.bf16 %v2330_v23  ;;  %v7757_v28 = vld [vmem:[#allocation7 + $0x394] sm:$0xf] }
 0x1a0   :  { %4703 = vmatpush.bf16.msra.mxu2 %v6447_v11  ;;  %v6663_v2 = vor.u32 %v7757_v28, %v6660_v9  ;;  %v7754_v11 = vld [vmem:[#allocation7 + $0x37c] sm:$0xf] }
 0x1a1   :  { %4717 = vmatpush.bf16.msra.mxu3 %v6543_v22  ;;  %v2500_v0 = vadd.f32 %v2476_v39, %v2464_v34  ;;  %v2501_v13 = vadd.f32 %v2477_v17, %v2465_v4  ;;  %v7718_v39 = vld [vmem:[#allocation7 + $0x25c] sm:$0xf]  ;;  %v2346_v17 = vperm.slane %v8372_v61, 2  ;;  %v6396_v22 = vld [vmem:[#allocation7 + $0x18c] sm:$0xf0]  ;;  %v6495_v61 = vor.u32 %v7715_v24, %v6492_v56 }
 0x1a2   :  { %4676 = vmatpush.bf16.msra.mxu0 %v6243_v21  ;;  %v6531_v21 = vor.u32 %v7724_v42, %v6528_v25  ;;  %v8390_v15 = vpop.f32.mrf.mxu2  ;;  %v6399_v23 = vor.u32 %v7691_v19, %v6396_v22  ;;  %v7751_v25 = vld [vmem:[#allocation7 + $0x364] sm:$0xf]  ;;  %v6636_v34 = vld [vmem:[#allocation7 + $0x36c] sm:$0xf0] }
 0x1a3   :  { %4690 = vmatpush.bf16.msra.mxu1 %v6339_v6  ;;  %v6207_v6 = vor.u32 %v7643_v10, %v6204_v16  ;;  %v2560_v55 = vmax.f32 %v2500_v0, 0.0  ;;  %v2561_v59 = vmax.f32 %v2501_v13, 0.0  ;;  %v6759_v10 = vor.u32 %v7781_v27, %v6756_v57  ;;  %v7775_v4 = vld [vmem:[#allocation7 + $0x424] sm:$0xf]  ;;  %v6624_v0 = vld [vmem:[#allocation7 + $0x354] sm:$0xf0] }
 0x1a4   :  { %4704 = vmatpush.bf16.msra.mxu2 %v6435_v36  ;;  %v6507_v16 = vor.u32 %v7718_v39, %v6504_v30  ;;  %v2365_v42 = vpack.c.bf16 %v2347_v7, %v2346_v17  ;;  %v7772_v13 = vld [vmem:[#allocation7 + $0x40c] sm:$0xf]  ;;  %v6627_v53 = vor.u32 %v7748_v37, %v6624_v0  ;;  %v7742_v7 = vld [vmem:[#allocation7 + $0x31c] sm:$0xf]  ;;  %v6588_v19 = vld [vmem:[#allocation7 + $0x30c] sm:$0xf0] }
 0x1a5   :  { %4718 = vmatpush.bf16.msra.mxu3 %v6531_v21  ;;  %v8394_v20 = vpack.c.bf16 %v2560_v55, %v2548_v44  ;;  %v8396_v31 = vpack.c.bf16 %v2561_v59, %v2549_v54  ;;  %v6723_v54 = vor.u32 %v7772_v13, %v6720_v3  ;;  %v7745_v55 = vld [vmem:[#allocation7 + $0x334] sm:$0xf]  ;;  %v7766_v30 = vld [vmem:[#allocation7 + $0x3dc] sm:$0xf]  ;;  %v7763_v22 = vld [vmem:[#allocation7 + $0x3c4] sm:$0xf] }
 0x1a6   :  { %4677 = vmatpush.bf16.msra.mxu0 %v6231_v47  ;;  %v8392_v47 = vpop.f32.mrf.mxu3 }
 0x1a7   :  { %4691 = vmatpush.bf16.msra.mxu1 %v6327_v50  ;;  %v6675_v50 = vor.u32 %v7760_v35, %v6672_v32  ;;  %4624 = vmatmul.bf16.vlgmr.msrb.gmra.mxu0 %v8394_v20  ;;  %v6732_v35 = vld [vmem:[#allocation7 + $0x42c] sm:$0xf0]  ;;  %v6639_v32 = vor.u32 %v7751_v25, %v6636_v34  ;;  %v2260_v27 = vadd.f32 %v8392_v47, %v8390_v15  ;;  %v7880_v25 = vld [vmem:[#allocation7 + $0x76c] sm:$0xf]  ;;  %v7152_v34 = vld [vmem:[#allocation7 + $0x774] sm:$0xf0] }
 0x1a8   :  { %4705 = vmatpush.bf16.msra.mxu2 %v6423_v46  ;;  %4638 = vmatmul.bf16.vlgmr.msrb.gmra.mxu1 %v8396_v31  ;;  %v6735_v58 = vor.u32 %v7775_v4, %v6732_v35 }
 0x1a9   :  { %4719 = vmatpush.bf16.msra.mxu3 %v6519_v8  ;;  %v6612_v8 = vld [vmem:[#allocation7 + $0x33c] sm:$0xf0] }
 0x1aa   :  { %4678 = vmatpush.bf16.msra.mxu0 %v6219_v12  ;;  %v6648_v12 = vld [vmem:[#allocation7 + $0x384] sm:$0xf0]  ;;  %v2247_v38 = vpop.f32.mrf.mxu2  ;;  %v6615_v39 = vor.u32 %v7745_v55, %v6612_v8 }
 0x1ab   :  { %4692 = vmatpush.bf16.msra.mxu1 %v6315_v14  ;;  %v7778_v14 = vld [vmem:[#allocation7 + $0x43c] sm:$0xf]  ;;  %v6651_v29 = vor.u32 %v7754_v11, %v6648_v12 }
 0x1ac   :  { %4706 = vmatpush.bf16.msra.mxu2 %v6411_v1  ;;  %v6747_v36 = vor.u32 %v7778_v14, %v6744_v18  ;;  %v6600_v1 = vld [vmem:[#allocation7 + $0x324] sm:$0xf0]  ;;  %v7739_v14 = vld [vmem:[#allocation7 + $0x304] sm:$0xf] }
 0x1ad   :  { %4720 = vmatpush.bf16.msra.mxu3 %v6507_v16  ;;  %v6603_v16 = vor.u32 %v7742_v7, %v6600_v1  ;;  %v7032_v7 = vld [vmem:[#allocation7 + $0x684] sm:$0xf0]  ;;  %v7874_v1 = vld [vmem:[#allocation7 + $0x73c] sm:$0xf] }
 0x1ae   :  { %4679 = vmatpush.bf16.msra.mxu0 %v6207_v6  ;;  %v2261_v21 = vpop.f32.mrf.mxu3  ;;  %v2382_v6 = vunpack.c.l.b16 %v2365_v42  ;;  %v2273_v43 = vpop.f32.mrf.mxu0 }
 0x1af   :  { %4693 = vmatpush.bf16.msra.mxu1 %v6303_v26  ;;  %v2383_v26 = vunpack.c.h.b16 %v2365_v42  ;;  %v2287_v41 = vpop.f32.mrf.mxu1  ;;  %v7856_v42 = vld [vmem:[#allocation7 + $0x6ac] sm:$0xf] }
 0x1b0   :  { %4707 = vmatpush.bf16.msra.mxu2 %v6399_v23  ;;  %v2394_v44 = vpack.c.b16 %v2382_v6, %v2382_v6  ;;  %v6684_v23 = vld [vmem:[#allocation7 + $0x3cc] sm:$0xf0] }
 0x1b1   :  { %4721 = vmatpush.bf16.msra.mxu3 %v6495_v61  ;;  %v2395_v46 = vpack.c.b16 %v2383_v26, %v2383_v26  ;;  %v2262_v61 = vadd.f32 %v2261_v21, %v2247_v38  ;;  %v6591_v26 = vor.u32 %v7739_v14, %v6588_v19  ;;  %v7877_v21 = vld [vmem:[#allocation7 + $0x754] sm:$0xf] }
 0x1b2   :  { %4728 = vmatpush.bf16.msrb.mxu0 %v6675_v50  ;;  %v7769_v50 = vld [vmem:[#allocation7 + $0x3f4] sm:$0xf]  ;;  %v2437_v57 = vpack.i.b16 %v2394_v44, %v2394_v44  ;;  %v7044_v44 = vld [vmem:[#allocation7 + $0x69c] sm:$0xf0] }
 0x1b3   :  { %4742 = vmatpush.bf16.msrb.mxu1 %v6771_v51  ;;  %v6708_v51 = vld [vmem:[#allocation7 + $0x3fc] sm:$0xf0]  ;;  %v2441_v49 = vpack.i.b16 %v2395_v46, %v2395_v46 }
 0x1b4   :  { %v6711_v17 = vor.u32 %v7769_v50, %v6708_v51  ;;  %v2439_v11 = vperm.slane %v2437_v57, 0  ;;  %v7140_v46 = vld [vmem:[#allocation7 + $0x75c] sm:$0xf0] }
 0x1b5   :  { %v2443_v12 = vperm.slane %v2441_v49, 0  ;;  %v7143_v51 = vor.u32 %v7877_v21, %v7140_v46 }
 0x1b6   :  { %4729 = vmatpush.bf16.msrb.mxu0 %v6663_v2  ;;  %v2301_v59 = vpop.f32.mrf.mxu2  ;;  %v6696_v2 = vld [vmem:[#allocation7 + $0x3e4] sm:$0xf0]  ;;  %v2275_v47 = vpop.f32.mrf.mxu0  ;;  %v2478_v4 = vunpack.c.l.bf16 %v2439_v11 }
 0x1b7   :  { %4743 = vmatpush.bf16.msrb.mxu1 %v6759_v10  ;;  %v2302_v28 = vadd.f32 %v2301_v59, %v2287_v41  ;;  %4680 = vmatmul.bf16.vlgmr.msra.gmra.mxu0 %v8285_v45  ;;  %v2274_v10 = vadd.f32 %v2273_v43, %v2260_v27  ;;  %v6699_v18 = vor.u32 %v7766_v30, %v6696_v2  ;;  %v2289_v24 = vpop.f32.mrf.mxu1  ;;  %v2479_v35 = vunpack.c.l.bf16 %v2443_v12  ;;  %v7853_v41 = vld [vmem:[#allocation7 + $0x694] sm:$0xf]  ;;  %v6864_v27 = vld [vmem:[#allocation7 + $0x534] sm:$0xf0]  ;;  %v7128_v30 = vld [vmem:[#allocation7 + $0x744] sm:$0xf0] }
 0x1b8   :  { %v2315_v9 = vpop.f32.mrf.mxu3  ;;  %4694 = vmatmul.bf16.vlgmr.msra.gmra.mxu1 %v8293_v40  ;;  %v2276_v0 = vadd.f32 %v2275_v47, %v2262_v61  ;;  %v7155_v43 = vor.u32 %v7880_v25, %v7152_v34  ;;  %v7047_v50 = vor.u32 %v7853_v41, %v7044_v44  ;;  %v7805_v47 = vld [vmem:[#allocation7 + $0x514] sm:$0xf]  ;;  %v7116_v25 = vld [vmem:[#allocation7 + $0x72c] sm:$0xf0]  ;;  %v7008_v41 = vld [vmem:[#allocation7 + $0x654] sm:$0xf0] }
 0x1b9   :  { %v2316_v63 = vadd.f32 %v2315_v9, %v2302_v28  ;;  %v7808_v9 = vld [vmem:[#allocation7 + $0x52c] sm:$0xf] }
 0x1ba   :  { %4730 = vmatpush.bf16.msrb.mxu0 %v6651_v29  ;;  %v6867_v14 = vor.u32 %v7808_v9, %v6864_v27  ;;  %v7868_v44 = vld [vmem:[#allocation7 + $0x70c] sm:$0xf]  ;;  %v6924_v9 = vld [vmem:[#allocation7 + $0x5ac] sm:$0xf0]  ;;  %v7841_v27 = vld [vmem:[#allocation7 + $0x634] sm:$0xf] }
 0x1bb   :  { %4744 = vmatpush.bf16.msrb.mxu1 %v6747_v36  ;;  %v2325_v15 = vpack.c.bf16 %v2316_v63, %v2274_v10  ;;  %v7056_v36 = vld [vmem:[#allocation7 + $0x6b4] sm:$0xf0]  ;;  %v7832_v63 = vld [vmem:[#allocation7 + $0x5ec] sm:$0xf] }
 0x1bc   :  { %v7059_v3 = vor.u32 %v7856_v42, %v7056_v36  ;;  %v7847_v42 = vld [vmem:[#allocation7 + $0x664] sm:$0xf] }
 0x1bd   :  { %v2455_v37 = vunpack.c.h.bf16 %v2325_v15  ;;  %v7871_v36 = vld [vmem:[#allocation7 + $0x724] sm:$0xf] }
 0x1be   :  { %4731 = vmatpush.bf16.msrb.mxu0 %v6639_v32  ;;  %v2303_v56 = vpop.f32.mrf.mxu2  ;;  %v6687_v32 = vor.u32 %v7763_v22, %v6684_v23  ;;  %v7131_v23 = vor.u32 %v7874_v1, %v7128_v30 }
 0x1bf   :  { %4745 = vmatpush.bf16.msrb.mxu1 %v6735_v58  ;;  %v2304_v29 = vadd.f32 %v2303_v56, %v2289_v24  ;;  %v2454_v58 = vunpack.c.l.bf16 %v2325_v15  ;;  %v2491_v55 = vadd.f32 %v2479_v35, %v2455_v37  ;;  %v7829_v24 = vld [vmem:[#allocation7 + $0x5d4] sm:$0xf]  ;;  %v6948_v56 = vld [vmem:[#allocation7 + $0x5dc] sm:$0xf0] }
 0x1c0   :  { %v2317_v6 = vpop.f32.mrf.mxu3 }
 0x1c1   :  { %v2318_v13 = vadd.f32 %v2317_v6, %v2304_v29  ;;  %v2551_v10 = vmax.f32 %v2491_v55, 0.0  ;;  %v7020_v29 = vld [vmem:[#allocation7 + $0x66c] sm:$0xf0]  ;;  %v6951_v6 = vor.u32 %v7829_v24, %v6948_v56  ;;  %v7838_v24 = vld [vmem:[#allocation7 + $0x61c] sm:$0xf] }
 0x1c2   :  { %4732 = vmatpush.bf16.msrb.mxu0 %v6627_v53  ;;  %v8409_v53 = vld [vmem:[%s8515_s4] sm:$0x7]  ;;  %v7023_v37 = vor.u32 %v7847_v42, %v7020_v29  ;;  %v6828_v55 = vld [vmem:[#allocation7 + $0x4ec] sm:$0xf0]  ;;  %v7793_v29 = vld [vmem:[#allocation7 + $0x4b4] sm:$0xf] }
 0x1c3   :  { %4746 = vmatpush.bf16.msrb.mxu1 %v6723_v54  ;;  %v2331_v38 = vpack.c.bf16 %v2318_v13, %v2276_v0  ;;  %v2490_v54 = vadd.f32 %v2478_v4, %v2454_v58  ;;  %v2962_v28 = vperm.slane %v8409_v53, 0  ;;  %v7119_v0 = vor.u32 %v7871_v36, %v7116_v25  ;;  %v7826_v13 = vld [vmem:[#allocation7 + $0x5bc] sm:$0xf]  ;;  %v6984_v56 = vld [vmem:[#allocation7 + $0x624] sm:$0xf0] }
 0x1c4   :  { %v7862_v53 = vld [vmem:[#allocation7 + $0x6dc] sm:$0xf]  ;;  %v6804_v36 = vld [vmem:[#allocation7 + $0x4bc] sm:$0xf0]  ;;  %v7817_v25 = vld [vmem:[#allocation7 + $0x574] sm:$0xf] }
 0x1c5   :  { %v2466_v59 = vunpack.c.l.bf16 %v2331_v38  ;;  %v2467_v8 = vunpack.c.h.bf16 %v2331_v38  ;;  %v2550_v2 = vmax.f32 %v2490_v54, 0.0  ;;  %v7104_v38 = vld [vmem:[#allocation7 + $0x714] sm:$0xf0]  ;;  %v7799_v54 = vld [vmem:[#allocation7 + $0x4e4] sm:$0xf] }
 0x1c6   :  { %4733 = vmatpush.bf16.msrb.mxu0 %v6615_v39  ;;  %v6960_v39 = vld [vmem:[#allocation7 + $0x5f4] sm:$0xf0] }
 0x1c7   :  { %4747 = vmatpush.bf16.msrb.mxu1 %v6711_v17  ;;  %v2502_v57 = vadd.f32 %v2478_v4, %v2466_v59  ;;  %v2503_v49 = vadd.f32 %v2479_v35, %v2467_v8  ;;  %v7850_v17 = vld [vmem:[#allocation7 + $0x67c] sm:$0xf]  ;;  %v6963_v15 = vor.u32 %v7832_v63, %v6960_v39  ;;  %v6996_v39 = vld [vmem:[#allocation7 + $0x63c] sm:$0xf0] }
 0x1c8   :  { %v7035_v22 = vor.u32 %v7850_v17, %v7032_v7  ;;  %v7865_v17 = vld [vmem:[#allocation7 + $0x6f4] sm:$0xf]  ;;  %v7092_v7 = vld [vmem:[#allocation7 + $0x6fc] sm:$0xf0] }
 0x1c9   :  { %v2562_v11 = vmax.f32 %v2502_v57, 0.0  ;;  %v2563_v12 = vmax.f32 %v2503_v49, 0.0 }
 0x1ca   :  { %4734 = vmatpush.bf16.msrb.mxu0 %v6603_v16  ;;  %v6852_v16 = vld [vmem:[#allocation7 + $0x51c] sm:$0xf0] }
 0x1cb   :  { %4748 = vmatpush.bf16.msrb.mxu1 %v6699_v18  ;;  %v8414_v18 = vpack.c.bf16 %v2562_v11, %v2550_v2  ;;  %v8416_v19 = vpack.c.bf16 %v2563_v12, %v2551_v10  ;;  %v6855_v35 = vor.u32 %v7805_v47, %v6852_v16  ;;  %v6831_v10 = vor.u32 %v7799_v54, %v6828_v55  ;;  %v7796_v12 = vld [vmem:[#allocation7 + $0x4cc] sm:$0xf]  ;;  %v7790_v54 = vld [vmem:[#allocation7 + $0x49c] sm:$0xf] }
 0x1cc   :  { %v6999_v47 = vor.u32 %v7841_v27, %v6996_v39  ;;  %v7095_v16 = vor.u32 %v7865_v17, %v7092_v7  ;;  %v7687_v39 = vld [vmem:[#allocation7 + $0x160] sm:$0xf0] }
 0x1cd   :  { %4652 = vmatmul.bf16.vlgmr.msrb.gmra.mxu2 %v8414_v18  ;;  %4666 = vmatmul.bf16.vlgmr.msrb.gmra.mxu3 %v8416_v19 }
 0x1ce   :  { %4735 = vmatpush.bf16.msrb.mxu0 %v6591_v26  ;;  %v4513_v61 = vpop.f32.mrf.mxu0  ;;  %4756 = vmatpush.bf16.msrb.mxu2 %v6867_v14  ;;  %v7802_v26 = vld [vmem:[#allocation7 + $0x4fc] sm:$0xf]  ;;  %v6816_v14 = vld [vmem:[#allocation7 + $0x4d4] sm:$0xf0] }
 0x1cf   :  { %4749 = vmatpush.bf16.msrb.mxu1 %v6687_v32  ;;  %v4514_v34 = vadd.f32 %v4513_v61, %v2962_v28  ;;  %v4527_v4 = vpop.f32.mrf.mxu1  ;;  %4770 = vmatpush.bf16.msrb.mxu3 %v6963_v15  ;;  %v6840_v32 = vld [vmem:[#allocation7 + $0x504] sm:$0xf0]  ;;  %v6819_v42 = vor.u32 %v7796_v12, %v6816_v14  ;;  %v7904_v12 = vld [vmem:[#allocation7 + $0x82c] sm:$0xf]  ;;  %v7248_v14 = vld [vmem:[#allocation7 + $0x834] sm:$0xf0] }
 0x1d0   :  { %v6843_v21 = vor.u32 %v7802_v26, %v6840_v32  ;;  %v7835_v26 = vld [vmem:[#allocation7 + $0x604] sm:$0xf]  ;;  %v6972_v32 = vld [vmem:[#allocation7 + $0x60c] sm:$0xf0] }
 0x1d1   :  { %4736 = vmatmul.bf16.vlgmr.msrb.gmra.mxu0 %v8353_v48  ;;  %v4528_v58 = vadd.f32 %v4527_v4, %v4514_v34  ;;  %v6987_v4 = vor.u32 %v7838_v24, %v6984_v56  ;;  %v6975_v55 = vor.u32 %v7835_v26, %v6972_v32  ;;  %v7660_v24 = vld [vmem:[#allocation7 + $0x88] sm:$0xf0]  ;;  %v6366_v56 = vld [vmem:[#allocation7 + $0x140] sm:$0xf]  ;;  %v6258_v26 = vld [vmem:[#allocation7 + $0x68] sm:$0xf] }
 0x1d2   :  { %4784 = vmatpush.bf16.msra.mxu0 %v7059_v3  ;;  %4750 = vmatmul.bf16.vlgmr.msrb.gmra.mxu1 %v8355_v62  ;;  %v6936_v3 = vld [vmem:[#allocation7 + $0x5c4] sm:$0xf0]  ;;  %v7657_v32 = vld [vmem:[#allocation7 + $0x70] sm:$0xf0] }
 0x1d3   :  { %4798 = vmatpush.bf16.msra.mxu1 %v7155_v43  ;;  %v7844_v43 = vld [vmem:[#allocation7 + $0x64c] sm:$0xf]  ;;  %4757 = vmatpush.bf16.msrb.mxu2 %v6855_v35  ;;  %v6939_v46 = vor.u32 %v7826_v13, %v6936_v3  ;;  %v6294_v13 = vld [vmem:[#allocation7 + $0xb0] sm:$0xf] }
 0x1d4   :  { %4771 = vmatpush.bf16.msrb.mxu3 %v6951_v6  ;;  %v7011_v8 = vor.u32 %v7844_v43, %v7008_v41  ;;  %v6900_v6 = vld [vmem:[#allocation7 + $0x57c] sm:$0xf0]  ;;  %v7666_v43 = vld [vmem:[#allocation7 + $0xb8] sm:$0xf0]  ;;  %v6390_v41 = vld [vmem:[#allocation7 + $0x170] sm:$0xf] }
 0x1d6   :  { %4785 = vmatpush.bf16.msra.mxu0 %v7047_v50  ;;  %v4541_v59 = vpop.f32.mrf.mxu2  ;;  %v7107_v50 = vor.u32 %v7868_v44, %v7104_v38  ;;  %v4515_v63 = vpop.f32.mrf.mxu0  ;;  %v7690_v44 = vld [vmem:[#allocation7 + $0x178] sm:$0xf0] }
 0x1d7   :  { %4799 = vmatpush.bf16.msra.mxu1 %v7143_v51  ;;  %v7823_v51 = vld [vmem:[#allocation7 + $0x5a4] sm:$0xf]  ;;  %v4542_v57 = vadd.f32 %v4541_v59, %v4528_v58  ;;  %v4555_v49 = vpop.f32.mrf.mxu3  ;;  %v4516_v1 = vadd.f32 %v4515_v63, %v2962_v28  ;;  %v4529_v2 = vpop.f32.mrf.mxu1  ;;  %4758 = vmatpush.bf16.msrb.mxu2 %v6843_v21  ;;  %v7080_v28 = vld [vmem:[#allocation7 + $0x6e4] sm:$0xf0]  ;;  %v6807_v21 = vor.u32 %v7793_v29, %v6804_v36  ;;  %v6378_v63 = vld [vmem:[#allocation7 + $0x158] sm:$0xf] }
 0x1d8   :  { %4772 = vmatpush.bf16.msrb.mxu3 %v6939_v46  ;;  %v6927_v11 = vor.u32 %v7823_v51, %v6924_v9  ;;  %v7083_v35 = vor.u32 %v7862_v53, %v7080_v28  ;;  %v6903_v46 = vor.u32 %v7817_v25, %v6900_v6  ;;  %v6888_v51 = vld [vmem:[#allocation7 + $0x564] sm:$0xf0]  ;;  %v6295_v9 = vor.u32 %v7666_v43, %v6294_v13  ;;  %v7684_v53 = vld [vmem:[#allocation7 + $0x148] sm:$0xf0]  ;;  %v7901_v36 = vld [vmem:[#allocation7 + $0x814] sm:$0xf] }
 0x1d9   :  { %v8424_v30 = vadd.f32 %v4555_v49, %v4542_v57  ;;  %v4530_v15 = vadd.f32 %v4529_v2, %v4516_v1  ;;  %v6391_v27 = vor.u32 %v7690_v44, %v6390_v41  ;;  %v6282_v57 = vld [vmem:[#allocation7 + $0x98] sm:$0xf]  ;;  %v7663_v49 = vld [vmem:[#allocation7 + $0xa0] sm:$0xf0]  ;;  %v6780_v2 = vld [vmem:[#allocation7 + $0x48c] sm:$0xf0]  ;;  %v6259_v41 = vor.u32 %v7657_v32, %v6258_v26 }
 0x1da   :  { %4786 = vmatpush.bf16.msra.mxu0 %v7035_v22  ;;  %v7820_v22 = vld [vmem:[#allocation7 + $0x58c] sm:$0xf]  ;;  %v7787_v1 = vld [vmem:[#allocation7 + $0x484] sm:$0xf]  ;;  %v7236_v25 = vld [vmem:[#allocation7 + $0x81c] sm:$0xf0] }
 0x1db   :  { %4800 = vmatpush.bf16.msra.mxu1 %v7131_v23  ;;  %v6912_v23 = vld [vmem:[#allocation7 + $0x594] sm:$0xf0]  ;;  %4759 = vmatpush.bf16.msrb.mxu2 %v6831_v10  ;;  %v7811_v10 = vld [vmem:[#allocation7 + $0x544] sm:$0xf]  ;;  %v6783_v28 = vor.u32 %v7787_v1, %v6780_v2  ;;  %v7332_v6 = vld [vmem:[#allocation7 + $0x8dc] sm:$0xf0] }
 0x1dc   :  { %4773 = vmatpush.bf16.msrb.mxu3 %v6927_v11  ;;  %v6915_v61 = vor.u32 %v7820_v22, %v6912_v23  ;;  %v6876_v11 = vld [vmem:[#allocation7 + $0x54c] sm:$0xf0]  ;;  %v7344_v22 = vld [vmem:[#allocation7 + $0x8f4] sm:$0xf0]  ;;  %v6270_v23 = vld [vmem:[#allocation7 + $0x80] sm:$0xf] }
 0x1dd   :  { %4708 = vmatmul.bf16.vlgmr.msra.gmra.mxu2 %v8295_v33  ;;  %4722 = vmatmul.bf16.vlgmr.msra.gmra.mxu3 %v8298_v60  ;;  %v7224_v43 = vld [vmem:[#allocation7 + $0x804] sm:$0xf0]  ;;  %v6330_v1 = vld [vmem:[#allocation7 + $0xf8] sm:$0xf]  ;;  %v7675_v2 = vld [vmem:[#allocation7 + $0x100] sm:$0xf0] }
 0x1de   :  { %4787 = vmatpush.bf16.msra.mxu0 %v7023_v37  ;;  %v4543_v34 = vpop.f32.mrf.mxu2  ;;  %v7859_v37 = vld [vmem:[#allocation7 + $0x6c4] sm:$0xf]  ;;  %v6306_v26 = vld [vmem:[#allocation7 + $0xc8] sm:$0xf]  ;;  %v7669_v32 = vld [vmem:[#allocation7 + $0xd0] sm:$0xf0] }
 0x1df   :  { %4801 = vmatpush.bf16.msra.mxu1 %v7119_v0  ;;  %v4544_v58 = vadd.f32 %v4543_v34, %v4530_v15  ;;  %v7068_v0 = vld [vmem:[#allocation7 + $0x6cc] sm:$0xf0]  ;;  %v4557_v3 = vpop.f32.mrf.mxu3  ;;  %4760 = vmatpush.bf16.msrb.mxu2 %v6819_v42  ;;  %v6283_v15 = vor.u32 %v7663_v49, %v6282_v57  ;;  %v6879_v42 = vor.u32 %v7811_v10, %v6876_v11 }
 0x1e0   :  { %4774 = vmatpush.bf16.msrb.mxu3 %v6915_v61  ;;  %v7071_v59 = vor.u32 %v7859_v37, %v7068_v0  ;;  %v7251_v61 = vor.u32 %v7904_v12, %v7248_v14  ;;  %v6271_v34 = vor.u32 %v7660_v24, %v6270_v23  ;;  %v7681_v37 = vld [vmem:[#allocation7 + $0x130] sm:$0xf0]  ;;  %v7239_v0 = vor.u32 %v7901_v36, %v7236_v25  ;;  %v7892_v12 = vld [vmem:[#allocation7 + $0x7cc] sm:$0xf]  ;;  %v7200_v14 = vld [vmem:[#allocation7 + $0x7d4] sm:$0xf0] }
 0x1e1   :  { %v8428_v38 = vadd.f32 %v4557_v3, %v4544_v58  ;;  %v6354_v58 = vld [vmem:[#allocation7 + $0x128] sm:$0xf]  ;;  %v7898_v3 = vld [vmem:[#allocation7 + $0x7fc] sm:$0xf]  ;;  %v6222_v23 = vld [vmem:[#allocation7 + $0x20] sm:$0xf] }
 0x1e2   :  { %4788 = vmatpush.bf16.msra.mxu0 %v7011_v8  ;;  %v6792_v8 = vld [vmem:[#allocation7 + $0x4a4] sm:$0xf0]  ;;  %v6355_v44 = vor.u32 %v7681_v37, %v6354_v58  ;;  %v7648_v24 = vld [vmem:[#allocation7 + $0x28] sm:$0xf0]  ;;  %v7913_v36 = vld [vmem:[#allocation7 + $0x874] sm:$0xf] }
 0x1e3   :  { %4802 = vmatpush.bf16.msra.mxu1 %v7107_v50  ;;  %v7814_v50 = vld [vmem:[#allocation7 + $0x55c] sm:$0xf]  ;;  %4761 = vmatpush.bf16.msrb.mxu2 %v6807_v21  ;;  %v6795_v17 = vor.u32 %v7790_v54, %v6792_v8  ;;  %v6246_v54 = vld [vmem:[#allocation7 + $0x50] sm:$0xf]  ;;  %v6223_v25 = vor.u32 %v7648_v24, %v6222_v23 }
 0x1e4   :  { %4775 = vmatpush.bf16.msrb.mxu3 %v6903_v46  ;;  %v6891_v7 = vor.u32 %v7814_v50, %v6888_v51  ;;  %v7922_v21 = vld [vmem:[#allocation7 + $0x8bc] sm:$0xf]  ;;  %v7320_v46 = vld [vmem:[#allocation7 + $0x8c4] sm:$0xf0]  ;;  %v7227_v50 = vor.u32 %v7898_v3, %v7224_v43  ;;  %v6678_v58 = vld [vmem:[#allocation7 + $0x3b0] sm:$0xf] }
 0x1e5   :  { %v7678_v8 = vld [vmem:[#allocation7 + $0x118] sm:$0xf0]  ;;  %v7323_v51 = vor.u32 %v7922_v21, %v7320_v46  ;;  %v6307_v21 = vor.u32 %v7669_v32, %v6306_v26  ;;  %v7176_v46 = vld [vmem:[#allocation7 + $0x7a4] sm:$0xf0]  ;;  %v6462_v26 = vld [vmem:[#allocation7 + $0x200] sm:$0xf] }
 0x1e6   :  { %4789 = vmatpush.bf16.msra.mxu0 %v6999_v47  ;;  %v6379_v47 = vor.u32 %v7687_v39, %v6378_v63  ;;  %v7919_v63 = vld [vmem:[#allocation7 + $0x8a4] sm:$0xf]  ;;  %v7308_v39 = vld [vmem:[#allocation7 + $0x8ac] sm:$0xf0]  ;;  %v7762_v37 = vld [vmem:[#allocation7 + $0x3b8] sm:$0xf0] }
 0x1e7   :  { %4803 = vmatpush.bf16.msra.mxu1 %v7095_v16  ;;  %v7928_v16 = vld [vmem:[#allocation7 + $0x8ec] sm:$0xf]  ;;  %4762 = vmatpush.bf16.msrb.mxu2 %v6795_v17  ;;  %v6234_v17 = vld [vmem:[#allocation7 + $0x38] sm:$0xf]  ;;  %v7311_v11 = vor.u32 %v7919_v63, %v7308_v39  ;;  %v7883_v63 = vld [vmem:[#allocation7 + $0x784] sm:$0xf] }
 0x1e8   :  { %4776 = vmatpush.bf16.msrb.mxu3 %v6891_v7  ;;  %v7347_v29 = vor.u32 %v7928_v16, %v7344_v22  ;;  %v7651_v7 = vld [vmem:[#allocation7 + $0x40] sm:$0xf0]  ;;  %v7916_v16 = vld [vmem:[#allocation7 + $0x88c] sm:$0xf]  ;;  %v7296_v22 = vld [vmem:[#allocation7 + $0x894] sm:$0xf0] }
 0x1e9   :  { %v7164_v39 = vld [vmem:[#allocation7 + $0x78c] sm:$0xf0]  ;;  %v7708_v32 = vld [vmem:[#allocation7 + $0x208] sm:$0xf0] }
 0x1ea   :  { %4790 = vmatpush.bf16.msra.mxu0 %v6987_v4  ;;  %v6367_v4 = vor.u32 %v7684_v53, %v6366_v56  ;;  %v6318_v56 = vld [vmem:[#allocation7 + $0xe0] sm:$0xf]  ;;  %v7672_v53 = vld [vmem:[#allocation7 + $0xe8] sm:$0xf0]  ;;  %v7167_v23 = vor.u32 %v7883_v63, %v7164_v39 }
 0x1eb   :  { %4804 = vmatpush.bf16.msra.mxu1 %v7083_v35  ;;  %v7925_v35 = vld [vmem:[#allocation7 + $0x8d4] sm:$0xf]  ;;  %4763 = vmatpush.bf16.msrb.mxu2 %v6783_v28  ;;  %v7203_v28 = vor.u32 %v7892_v12, %v7200_v14  ;;  %v6582_v12 = vld [vmem:[#allocation7 + $0x2f0] sm:$0xf]  ;;  %v7738_v14 = vld [vmem:[#allocation7 + $0x2f8] sm:$0xf0] }
 0x1ec   :  { %4777 = vmatpush.bf16.msrb.mxu3 %v6879_v42  ;;  %v7335_v13 = vor.u32 %v7925_v35, %v7332_v6  ;;  %v7299_v42 = vor.u32 %v7916_v16, %v7296_v22  ;;  %v6210_v35 = vld [vmem:[#allocation7 + $0x8] sm:$0xf]  ;;  %v7645_v6 = vld [vmem:[#allocation7 + $0x10] sm:$0xf0]  ;;  %v6750_v16 = vld [vmem:[#allocation7 + $0x440] sm:$0xf] }
 0x1ed   :  { %v7780_v22 = vld [vmem:[#allocation7 + $0x448] sm:$0xf0] }
 0x1ee   :  { %4791 = vmatpush.bf16.msra.mxu0 %v6975_v55  ;;  %4764 = vmatmul.bf16.vlgmr.msrb.gmra.mxu2 %v8359_v5  ;;  %v7654_v55 = vld [vmem:[#allocation7 + $0x58] sm:$0xf0] }
 0x1ef   :  { %4805 = vmatpush.bf16.msra.mxu1 %v7071_v59  ;;  %4812 = vmatpush.bf16.msra.mxu2 %v7251_v61  ;;  %v6342_v59 = vld [vmem:[#allocation7 + $0x110] sm:$0xf]  ;;  %v6247_v57 = vor.u32 %v7654_v55, %v6246_v54  ;;  %v7889_v61 = vld [vmem:[#allocation7 + $0x7b4] sm:$0xf]  ;;  %v7910_v54 = vld [vmem:[#allocation7 + $0x85c] sm:$0xf] }
 0x1f0   :  { %4826 = vmatpush.bf16.msra.mxu3 %v7347_v29  ;;  %v6343_v49 = vor.u32 %v7678_v8, %v6342_v59  ;;  %v7188_v29 = vld [vmem:[#allocation7 + $0x7bc] sm:$0xf0]  ;;  %v7272_v55 = vld [vmem:[#allocation7 + $0x864] sm:$0xf0]  ;;  %v6679_v59 = vor.u32 %v7762_v37, %v6678_v58 }
 0x1f1   :  { %4792 = vmatmul.bf16.vlgmr.msra.gmra.mxu0 %v8394_v20  ;;  %4778 = vmatmul.bf16.vlgmr.msrb.gmra.mxu3 %v8361_v52  ;;  %v7191_v3 = vor.u32 %v7889_v61, %v7188_v29  ;;  %v6751_v29 = vor.u32 %v7780_v22, %v6750_v16 }
 0x1f2   :  { %4840 = vmatpush.bf16.msrb.mxu0 %v6295_v9  ;;  %4806 = vmatmul.bf16.vlgmr.msra.gmra.mxu1 %v8396_v31  ;;  %v7895_v9 = vld [vmem:[#allocation7 + $0x7e4] sm:$0xf] }
 0x1f3   :  { %4854 = vmatpush.bf16.msrb.mxu1 %v6391_v27  ;;  %4813 = vmatpush.bf16.msra.mxu2 %v7239_v0  ;;  %v7212_v27 = vld [vmem:[#allocation7 + $0x7ec] sm:$0xf0] }
 0x1f4   :  { %4827 = vmatpush.bf16.msra.mxu3 %v7335_v13  ;;  %v7215_v10 = vor.u32 %v7895_v9, %v7212_v27  ;;  %v6774_v0 = vld [vmem:[#allocation7 + $0x470] sm:$0xf]  ;;  %v7786_v13 = vld [vmem:[#allocation7 + $0x478] sm:$0xf0]  ;;  %v6762_v9 = vld [vmem:[#allocation7 + $0x458] sm:$0xf] }
 0x1f5   :  { %v6775_v8 = vor.u32 %v7786_v13, %v6774_v0  ;;  %v7783_v27 = vld [vmem:[#allocation7 + $0x460] sm:$0xf0]  ;;  %v6558_v0 = vld [vmem:[#allocation7 + $0x2c0] sm:$0xf]  ;;  %v7732_v13 = vld [vmem:[#allocation7 + $0x2c8] sm:$0xf0] }
 0x1f6   :  { %4841 = vmatpush.bf16.msrb.mxu0 %v6283_v15  ;;  %v6235_v15 = vor.u32 %v7651_v7, %v6234_v17  ;;  %v7907_v17 = vld [vmem:[#allocation7 + $0x844] sm:$0xf]  ;;  %v7260_v7 = vld [vmem:[#allocation7 + $0x84c] sm:$0xf0] }
 0x1f7   :  { %4855 = vmatpush.bf16.msrb.mxu1 %v6379_v47  ;;  %4814 = vmatpush.bf16.msra.mxu2 %v7227_v50  ;;  %v6331_v47 = vor.u32 %v7675_v2, %v6330_v1  ;;  %v6666_v50 = vld [vmem:[#allocation7 + $0x398] sm:$0xf]  ;;  %v6486_v1 = vld [vmem:[#allocation7 + $0x230] sm:$0xf]  ;;  %v7714_v2 = vld [vmem:[#allocation7 + $0x238] sm:$0xf0]  ;;  %v7263_v24 = vor.u32 %v7907_v17, %v7260_v7 }
 0x1f8   :  { %4828 = vmatpush.bf16.msra.mxu3 %v7323_v51  ;;  %v7759_v51 = vld [vmem:[#allocation7 + $0x3a0] sm:$0xf0]  ;;  %v6438_v17 = vld [vmem:[#allocation7 + $0x1d0] sm:$0xf]  ;;  %v7702_v7 = vld [vmem:[#allocation7 + $0x1d8] sm:$0xf0] }
 0x1f9   :  { %v6439_v16 = vor.u32 %v7702_v7, %v6438_v17  ;;  %v7038_v17 = vld [vmem:[#allocation7 + $0x680] sm:$0xf]  ;;  %v7852_v7 = vld [vmem:[#allocation7 + $0x688] sm:$0xf0] }
 0x1fa   :  { %4842 = vmatpush.bf16.msrb.mxu0 %v6271_v34  ;;  %v6319_v34 = vor.u32 %v7672_v53, %v6318_v56  ;;  %v6487_v56 = vor.u32 %v7714_v2, %v6486_v1  ;;  %v6583_v53 = vor.u32 %v7738_v14, %v6582_v12  ;;  %v6606_v12 = vld [vmem:[#allocation7 + $0x320] sm:$0xf]  ;;  %v7744_v14 = vld [vmem:[#allocation7 + $0x328] sm:$0xf0] }
 0x1fb   :  { %4856 = vmatpush.bf16.msrb.mxu1 %v6367_v4  ;;  %4815 = vmatpush.bf16.msra.mxu2 %v7215_v10  ;;  %v7284_v4 = vld [vmem:[#allocation7 + $0x87c] sm:$0xf0]  ;;  %v6667_v10 = vor.u32 %v7759_v51, %v6666_v50  ;;  %v6546_v50 = vld [vmem:[#allocation7 + $0x2a8] sm:$0xf]  ;;  %v7729_v51 = vld [vmem:[#allocation7 + $0x2b0] sm:$0xf0] }
 0x1fc   :  { %4829 = vmatpush.bf16.msra.mxu3 %v7311_v11  ;;  %v7287_v43 = vor.u32 %v7913_v36, %v7284_v4  ;;  %v6763_v11 = vor.u32 %v7783_v27, %v6762_v9  ;;  %v6570_v36 = vld [vmem:[#allocation7 + $0x2d8] sm:$0xf]  ;;  %v7753_v4 = vld [vmem:[#allocation7 + $0x370] sm:$0xf0]  ;;  %v7747_v27 = vld [vmem:[#allocation7 + $0x340] sm:$0xf0]  ;;  %v6547_v39 = vor.u32 %v7729_v51, %v6546_v50 }
 0x1fd   :  { %v6618_v9 = vld [vmem:[#allocation7 + $0x338] sm:$0xf]  ;;  %v6498_v50 = vld [vmem:[#allocation7 + $0x248] sm:$0xf]  ;;  %v7717_v51 = vld [vmem:[#allocation7 + $0x250] sm:$0xf0] }
 0x1fe   :  { %4843 = vmatpush.bf16.msrb.mxu0 %v6259_v41  ;;  %v7886_v41 = vld [vmem:[#allocation7 + $0x79c] sm:$0xf]  ;;  %v6619_v1 = vor.u32 %v7747_v27, %v6618_v9  ;;  %v6870_v9 = vld [vmem:[#allocation7 + $0x530] sm:$0xf] }
 0x1ff   :  { %4857 = vmatpush.bf16.msrb.mxu1 %v6355_v44  ;;  %4816 = vmatpush.bf16.msra.mxu2 %v7203_v28  ;;  %v6211_v44 = vor.u32 %v7645_v6, %v6210_v35  ;;  %v6474_v28 = vld [vmem:[#allocation7 + $0x218] sm:$0xf]  ;;  %v6738_v35 = vld [vmem:[#allocation7 + $0x428] sm:$0xf]  ;;  %v7777_v6 = vld [vmem:[#allocation7 + $0x430] sm:$0xf0] }
 0x200   :  { %4830 = vmatpush.bf16.msra.mxu3 %v7299_v42  ;;  %v7711_v42 = vld [vmem:[#allocation7 + $0x220] sm:$0xf0]  ;;  %v6739_v37 = vor.u32 %v7777_v6, %v6738_v35  ;;  %v7158_v35 = vld [vmem:[#allocation7 + $0x770] sm:$0xf]  ;;  %v7882_v6 = vld [vmem:[#allocation7 + $0x778] sm:$0xf0] }
 0x201   :  { %v7810_v27 = vld [vmem:[#allocation7 + $0x538] sm:$0xf0] }
 0x202   :  { %4844 = vmatpush.bf16.msrb.mxu0 %v6247_v57  ;;  %v7179_v57 = vor.u32 %v7886_v41, %v7176_v46  ;;  %v6726_v41 = vld [vmem:[#allocation7 + $0x410] sm:$0xf]  ;;  %v6559_v46 = vor.u32 %v7732_v13, %v6558_v0  ;;  %v6510_v0 = vld [vmem:[#allocation7 + $0x260] sm:$0xf]  ;;  %v7720_v13 = vld [vmem:[#allocation7 + $0x268] sm:$0xf0] }
 0x203   :  { %4858 = vmatpush.bf16.msrb.mxu1 %v6343_v49  ;;  %4817 = vmatpush.bf16.msra.mxu2 %v7191_v3  ;;  %v7275_v49 = vor.u32 %v7910_v54, %v7272_v55  ;;  %v6630_v3 = vld [vmem:[#allocation7 + $0x350] sm:$0xf]  ;;  %v6450_v54 = vld [vmem:[#allocation7 + $0x1e8] sm:$0xf]  ;;  %v7705_v55 = vld [vmem:[#allocation7 + $0x1f0] sm:$0xf0] }
 0x204   :  { %4831 = vmatpush.bf16.msra.mxu3 %v7287_v43  ;;  %v7750_v43 = vld [vmem:[#allocation7 + $0x358] sm:$0xf0]  ;;  %v6451_v63 = vor.u32 %v7705_v55, %v6450_v54  ;;  %v6511_v55 = vor.u32 %v7720_v13, %v6510_v0 }
 0x206   :  { %4845 = vmatpush.bf16.msrb.mxu0 %v6235_v15  ;;  %v6654_v15 = vld [vmem:[#allocation7 + $0x380] sm:$0xf] }
 0x207   :  { %4859 = vmatpush.bf16.msrb.mxu1 %v6331_v47  ;;  %v7756_v47 = vld [vmem:[#allocation7 + $0x388] sm:$0xf0]  ;;  %4818 = vmatpush.bf16.msra.mxu2 %v7179_v57  ;;  %v6714_v57 = vld [vmem:[#allocation7 + $0x3f8] sm:$0xf] }
 0x208   :  { %4832 = vmatpush.bf16.msra.mxu3 %v7275_v49  ;;  %v6655_v61 = vor.u32 %v7756_v47, %v6654_v15  ;;  %v7771_v49 = vld [vmem:[#allocation7 + $0x400] sm:$0xf0]  ;;  %v6702_v15 = vld [vmem:[#allocation7 + $0x3e0] sm:$0xf]  ;;  %v7768_v47 = vld [vmem:[#allocation7 + $0x3e8] sm:$0xf0] }
 0x209   :  { %v6715_v2 = vor.u32 %v7771_v49, %v6714_v57 }
 0x20a   :  { %4846 = vmatpush.bf16.msrb.mxu0 %v6223_v25  ;;  %v7735_v25 = vld [vmem:[#allocation7 + $0x2e0] sm:$0xf0] }
 0x20b   :  { %4860 = vmatpush.bf16.msrb.mxu1 %v6319_v34  ;;  %v6642_v34 = vld [vmem:[#allocation7 + $0x368] sm:$0xf]  ;;  %4819 = vmatpush.bf16.msra.mxu2 %v7167_v23  ;;  %v6426_v23 = vld [vmem:[#allocation7 + $0x1b8] sm:$0xf] }
 0x20c   :  { %4833 = vmatpush.bf16.msra.mxu3 %v7263_v24  ;;  %v6643_v58 = vor.u32 %v7753_v4, %v6642_v34  ;;  %v7699_v24 = vld [vmem:[#allocation7 + $0x1c0] sm:$0xf0]  ;;  %v7062_v34 = vld [vmem:[#allocation7 + $0x6b0] sm:$0xf]  ;;  %v7858_v4 = vld [vmem:[#allocation7 + $0x6b8] sm:$0xf0] }
 0x20e   :  { %4847 = vmatpush.bf16.msrb.mxu0 %v6211_v44  ;;  %4820 = vmatmul.bf16.vlgmr.msra.gmra.mxu2 %v8414_v18  ;;  %v7774_v44 = vld [vmem:[#allocation7 + $0x418] sm:$0xf0] }
 0x20f   :  { %4861 = vmatpush.bf16.msrb.mxu1 %v6307_v21  ;;  %4868 = vmatpush.bf16.msrb.mxu2 %v6487_v56  ;;  %v6463_v21 = vor.u32 %v7708_v32, %v6462_v26  ;;  %v6522_v56 = vld [vmem:[#allocation7 + $0x278] sm:$0xf]  ;;  %v6414_v26 = vld [vmem:[#allocation7 + $0x1a0] sm:$0xf] }
 0x210   :  { %4882 = vmatpush.bf16.msrb.mxu3 %v6583_v53  ;;  %v6607_v53 = vor.u32 %v7744_v14, %v6606_v12  ;;  %v6871_v12 = vor.u32 %v7810_v27, %v6870_v9  ;;  %v6990_v9 = vld [vmem:[#allocation7 + $0x620] sm:$0xf]  ;;  %v7840_v27 = vld [vmem:[#allocation7 + $0x628] sm:$0xf0] }
 0x211   :  { %4848 = vmatmul.bf16.vlgmr.msrb.gmra.mxu0 %v8285_v45  ;;  %v6475_v45 = vor.u32 %v7711_v42, %v6474_v28  ;;  %4834 = vmatmul.bf16.vlgmr.msra.gmra.mxu3 %v8416_v19  ;;  %v6703_v28 = vor.u32 %v7768_v47, %v6702_v15  ;;  %v7723_v42 = vld [vmem:[#allocation7 + $0x280] sm:$0xf0]  ;;  %v6858_v15 = vld [vmem:[#allocation7 + $0x518] sm:$0xf] }
 0x212   :  { %4896 = vmatpush.bf16.msra.mxu0 %v6679_v59  ;;  %4862 = vmatmul.bf16.vlgmr.msrb.gmra.mxu1 %v8293_v40  ;;  %v6571_v40 = vor.u32 %v7735_v25, %v6570_v36  ;;  %v6631_v59 = vor.u32 %v7750_v43, %v6630_v3  ;;  %v6690_v36 = vld [vmem:[#allocation7 + $0x3c8] sm:$0xf]  ;;  %v7765_v25 = vld [vmem:[#allocation7 + $0x3d0] sm:$0xf0]  ;;  %v7063_v3 = vor.u32 %v7858_v4, %v7062_v34  ;;  %v7807_v47 = vld [vmem:[#allocation7 + $0x520] sm:$0xf0] }
 0x213   :  { %4910 = vmatpush.bf16.msra.mxu1 %v6775_v8  ;;  %4869 = vmatpush.bf16.msrb.mxu2 %v6475_v45  ;;  %v6727_v8 = vor.u32 %v7774_v44, %v6726_v41  ;;  %v6427_v45 = vor.u32 %v7699_v24, %v6426_v23  ;;  %v7159_v43 = vor.u32 %v7882_v6, %v7158_v35  ;;  %v7050_v41 = vld [vmem:[#allocation7 + $0x698] sm:$0xf]  ;;  %v7855_v44 = vld [vmem:[#allocation7 + $0x6a0] sm:$0xf0]  ;;  %v6942_v34 = vld [vmem:[#allocation7 + $0x5c0] sm:$0xf] }
 0x214   :  { %4883 = vmatpush.bf16.msrb.mxu3 %v6571_v40  ;;  %v6523_v40 = vor.u32 %v7723_v42, %v6522_v56  ;;  %v7051_v57 = vor.u32 %v7855_v44, %v7050_v41  ;;  %v6954_v23 = vld [vmem:[#allocation7 + $0x5d8] sm:$0xf]  ;;  %v7831_v24 = vld [vmem:[#allocation7 + $0x5e0] sm:$0xf0]  ;;  %v7026_v56 = vld [vmem:[#allocation7 + $0x668] sm:$0xf] }
 0x215   :  { %v7873_v42 = vld [vmem:[#allocation7 + $0x730] sm:$0xf0]  ;;  %v7828_v4 = vld [vmem:[#allocation7 + $0x5c8] sm:$0xf0]  ;;  %v7014_v35 = vld [vmem:[#allocation7 + $0x650] sm:$0xf] }
 0x216   :  { %4897 = vmatpush.bf16.msra.mxu0 %v6667_v10  ;;  %v6534_v10 = vld [vmem:[#allocation7 + $0x290] sm:$0xf]  ;;  %v7846_v6 = vld [vmem:[#allocation7 + $0x658] sm:$0xf0]  ;;  %v7002_v41 = vld [vmem:[#allocation7 + $0x638] sm:$0xf] }
 0x217   :  { %4911 = vmatpush.bf16.msra.mxu1 %v6763_v11  ;;  %4870 = vmatpush.bf16.msrb.mxu2 %v6463_v21  ;;  %v7726_v11 = vld [vmem:[#allocation7 + $0x298] sm:$0xf0]  ;;  %v7146_v21 = vld [vmem:[#allocation7 + $0x758] sm:$0xf]  ;;  %v7015_v0 = vor.u32 %v7846_v6, %v7014_v35  ;;  %v7843_v44 = vld [vmem:[#allocation7 + $0x640] sm:$0xf0] }
 0x218   :  { %4884 = vmatpush.bf16.msrb.mxu3 %v6559_v46  ;;  %v6535_v22 = vor.u32 %v7726_v11, %v6534_v10  ;;  %v7879_v46 = vld [vmem:[#allocation7 + $0x760] sm:$0xf0]  ;;  %v6499_v11 = vor.u32 %v7717_v51, %v6498_v50  ;;  %v6918_v50 = vld [vmem:[#allocation7 + $0x590] sm:$0xf]  ;;  %v7822_v51 = vld [vmem:[#allocation7 + $0x598] sm:$0xf0] }
 0x219   :  { %v7147_v49 = vor.u32 %v7879_v46, %v7146_v21  ;;  %v7867_v21 = vld [vmem:[#allocation7 + $0x700] sm:$0xf0]  ;;  %v7906_v35 = vld [vmem:[#allocation7 + $0x838] sm:$0xf0]  ;;  %v7350_v6 = vld [vmem:[#allocation7 + $0x8f0] sm:$0xf] }
 0x21a   :  { %4898 = vmatpush.bf16.msra.mxu0 %v6655_v61  ;;  %v6594_v61 = vld [vmem:[#allocation7 + $0x308] sm:$0xf] }
 0x21b   :  { %4912 = vmatpush.bf16.msra.mxu1 %v6751_v29  ;;  %4871 = vmatpush.bf16.msrb.mxu2 %v6451_v63  ;;  %v7741_v29 = vld [vmem:[#allocation7 + $0x310] sm:$0xf0]  ;;  %v6966_v63 = vld [vmem:[#allocation7 + $0x5f0] sm:$0xf] }
 0x21c   :  { %4885 = vmatpush.bf16.msrb.mxu3 %v6547_v39  ;;  %v6595_v32 = vor.u32 %v7741_v29, %v6594_v61  ;;  %v7834_v39 = vld [vmem:[#allocation7 + $0x5f8] sm:$0xf0]  ;;  %v6846_v61 = vld [vmem:[#allocation7 + $0x500] sm:$0xf]  ;;  %v7804_v29 = vld [vmem:[#allocation7 + $0x508] sm:$0xf0] }
 0x21d   :  { %v6967_v14 = vor.u32 %v7834_v39, %v6966_v63  ;;  %v6919_v39 = vor.u32 %v7822_v51, %v6918_v50  ;;  %v7897_v51 = vld [vmem:[#allocation7 + $0x7f0] sm:$0xf0] }
 0x21e   :  { %4899 = vmatpush.bf16.msra.mxu0 %v6643_v58  ;;  %v6691_v58 = vor.u32 %v7765_v25, %v6690_v36 }
 0x21f   :  { %4913 = vmatpush.bf16.msra.mxu1 %v6739_v37  ;;  %4872 = vmatpush.bf16.msrb.mxu2 %v6439_v16  ;;  %v7696_v37 = vld [vmem:[#allocation7 + $0x1a8] sm:$0xf0]  ;;  %v7039_v16 = vor.u32 %v7852_v7, %v7038_v17  ;;  %v6810_v17 = vld [vmem:[#allocation7 + $0x4b8] sm:$0xf]  ;;  %v7795_v7 = vld [vmem:[#allocation7 + $0x4c0] sm:$0xf0] }
 0x220   :  { %4886 = vmatpush.bf16.msrb.mxu3 %v6535_v22  ;;  %v6415_v54 = vor.u32 %v7696_v37, %v6414_v26  ;;  %v6847_v26 = vor.u32 %v7804_v29, %v6846_v61  ;;  %v7801_v37 = vld [vmem:[#allocation7 + $0x4f0] sm:$0xf0]  ;;  %v6786_v29 = vld [vmem:[#allocation7 + $0x488] sm:$0xf] }
 0x222   :  { %4900 = vmatpush.bf16.msra.mxu0 %v6631_v59  ;;  %v6402_v59 = vld [vmem:[#allocation7 + $0x188] sm:$0xf] }
 0x223   :  { %4914 = vmatpush.bf16.msra.mxu1 %v6727_v8  ;;  %4873 = vmatpush.bf16.msrb.mxu2 %v6427_v45  ;;  %v7693_v8 = vld [vmem:[#allocation7 + $0x190] sm:$0xf0]  ;;  %v7110_v45 = vld [vmem:[#allocation7 + $0x710] sm:$0xf] }
 0x224   :  { %4887 = vmatpush.bf16.msrb.mxu3 %v6523_v40  ;;  %v6403_v10 = vor.u32 %v7693_v8, %v6402_v59  ;;  %v7870_v40 = vld [vmem:[#allocation7 + $0x718] sm:$0xf0]  ;;  %v7003_v59 = vor.u32 %v7843_v44, %v7002_v41  ;;  %v8448_v41 = vpop.f32.mrf.mxu2  ;;  %v8450_v44 = vpop.f32.mrf.mxu3 }
 0x225   :  { %v7111_v13 = vor.u32 %v7870_v40, %v7110_v45  ;;  %v7930_v45 = vld [vmem:[#allocation7 + $0x8f8] sm:$0xf0]  ;;  %v8444_v40 = vpop.f32.mrf.mxu1 }
 0x226   :  { %4901 = vmatpush.bf16.msra.mxu0 %v6619_v1  ;;  %v7134_v1 = vld [vmem:[#allocation7 + $0x740] sm:$0xf] }
 0x227   :  { %4915 = vmatpush.bf16.msra.mxu1 %v6715_v2  ;;  %v7876_v2 = vld [vmem:[#allocation7 + $0x748] sm:$0xf0]  ;;  %4874 = vmatpush.bf16.msrb.mxu2 %v6415_v54  ;;  %v6822_v54 = vld [vmem:[#allocation7 + $0x4d0] sm:$0xf] }
 0x228   :  { %4888 = vmatpush.bf16.msrb.mxu3 %v6511_v55  ;;  %v7135_v22 = vor.u32 %v7876_v2, %v7134_v1  ;;  %v7798_v55 = vld [vmem:[#allocation7 + $0x4d8] sm:$0xf0]  ;;  %v6991_v1 = vor.u32 %v7840_v27, %v6990_v9  ;;  %v7314_v9 = vld [vmem:[#allocation7 + $0x8a8] sm:$0xf]  ;;  %v7921_v27 = vld [vmem:[#allocation7 + $0x8b0] sm:$0xf0] }
 0x229   :  { %v6823_v63 = vor.u32 %v7798_v55, %v6822_v54  ;;  %v7924_v54 = vld [vmem:[#allocation7 + $0x8c8] sm:$0xf0] }
 0x22a   :  { %4902 = vmatpush.bf16.msra.mxu0 %v6607_v53  ;;  %v7849_v53 = vld [vmem:[#allocation7 + $0x670] sm:$0xf0] }
 0x22b   :  { %4916 = vmatpush.bf16.msra.mxu1 %v6703_v28  ;;  %v7122_v28 = vld [vmem:[#allocation7 + $0x728] sm:$0xf]  ;;  %4875 = vmatpush.bf16.msrb.mxu2 %v6403_v10  ;;  %v7027_v36 = vor.u32 %v7849_v53, %v7026_v56  ;;  %v6906_v10 = vld [vmem:[#allocation7 + $0x578] sm:$0xf]  ;;  %v7792_v53 = vld [vmem:[#allocation7 + $0x4a8] sm:$0xf0] }
 0x22c   :  { %4889 = vmatpush.bf16.msrb.mxu3 %v6499_v11  ;;  %v7123_v25 = vor.u32 %v7873_v42, %v7122_v28  ;;  %v7819_v11 = vld [vmem:[#allocation7 + $0x580] sm:$0xf0]  ;;  %v6894_v28 = vld [vmem:[#allocation7 + $0x560] sm:$0xf]  ;;  %v7816_v42 = vld [vmem:[#allocation7 + $0x568] sm:$0xf0] }
 0x22d   :  { %v6895_v61 = vor.u32 %v7816_v42, %v6894_v28  ;;  %v8456_v50 = vpop.f32.mrf.mxu1  ;;  %v7278_v28 = vld [vmem:[#allocation7 + $0x860] sm:$0xf]  ;;  %v7912_v42 = vld [vmem:[#allocation7 + $0x868] sm:$0xf0] }
 0x22e   :  { %4903 = vmatpush.bf16.msra.mxu0 %v6595_v32  ;;  %4876 = vmatmul.bf16.vlgmr.msrb.gmra.mxu2 %v8295_v33  ;;  %v6943_v32 = vor.u32 %v7828_v4, %v6942_v34  ;;  %v7098_v33 = vld [vmem:[#allocation7 + $0x6f8] sm:$0xf]  ;;  %v7813_v34 = vld [vmem:[#allocation7 + $0x550] sm:$0xf0]  ;;  %v7254_v4 = vld [vmem:[#allocation7 + $0x830] sm:$0xf] }
 0x22f   :  { %4917 = vmatpush.bf16.msra.mxu1 %v6691_v58  ;;  %4924 = vmatpush.bf16.msra.mxu2 %v6871_v12  ;;  %v6834_v58 = vld [vmem:[#allocation7 + $0x4e8] sm:$0xf]  ;;  %v7099_v8 = vor.u32 %v7867_v21, %v7098_v33 }
 0x230   :  { %4938 = vmatpush.bf16.msra.mxu3 %v6967_v14  ;;  %v6978_v12 = vld [vmem:[#allocation7 + $0x608] sm:$0xf]  ;;  %v7837_v14 = vld [vmem:[#allocation7 + $0x610] sm:$0xf0] }
 0x231   :  { %4904 = vmatmul.bf16.vlgmr.msra.gmra.mxu0 %v8353_v48  ;;  %v6859_v48 = vor.u32 %v7807_v47, %v6858_v15  ;;  %4890 = vmatmul.bf16.vlgmr.msrb.gmra.mxu3 %v8298_v60  ;;  %v6835_v60 = vor.u32 %v7801_v37, %v6834_v58  ;;  %v7074_v15 = vld [vmem:[#allocation7 + $0x6c8] sm:$0xf]  ;;  %v7861_v47 = vld [vmem:[#allocation7 + $0x6d0] sm:$0xf0]  ;;  %v7255_v58 = vor.u32 %v7906_v35, %v7254_v4 }
 0x232   :  { %4952 = vmatpush.bf16.msrb.mxu0 %v7063_v3  ;;  %4918 = vmatmul.bf16.vlgmr.msra.gmra.mxu1 %v8355_v62  ;;  %v6955_v62 = vor.u32 %v7831_v24, %v6954_v23  ;;  %v6930_v3 = vld [vmem:[#allocation7 + $0x5a8] sm:$0xf]  ;;  %v6798_v23 = vld [vmem:[#allocation7 + $0x4a0] sm:$0xf]  ;;  %v6979_v24 = vor.u32 %v7837_v14, %v6978_v12  ;;  %v7075_v56 = vor.u32 %v7861_v47, %v7074_v15  ;;  %v7891_v14 = vld [vmem:[#allocation7 + $0x7c0] sm:$0xf0] }
 0x233   :  { %4966 = vmatpush.bf16.msrb.mxu1 %v7159_v43  ;;  %4925 = vmatpush.bf16.msra.mxu2 %v6859_v48  ;;  %v7825_v43 = vld [vmem:[#allocation7 + $0x5b0] sm:$0xf0]  ;;  %v8442_v48 = vpop.f32.mrf.mxu0  ;;  %v7351_v37 = vor.u32 %v7930_v45, %v7350_v6  ;;  %v7290_v15 = vld [vmem:[#allocation7 + $0x878] sm:$0xf]  ;;  %v7915_v47 = vld [vmem:[#allocation7 + $0x880] sm:$0xf0] }
 0x234   :  { %4939 = vmatpush.bf16.msra.mxu3 %v6955_v62  ;;  %v6931_v46 = vor.u32 %v7825_v43, %v6930_v3  ;;  %v6799_v62 = vor.u32 %v7792_v53, %v6798_v23  ;;  %v7338_v3 = vld [vmem:[#allocation7 + $0x8d8] sm:$0xf]  ;;  %v7927_v43 = vld [vmem:[#allocation7 + $0x8e0] sm:$0xf0]  ;;  %v7182_v23 = vld [vmem:[#allocation7 + $0x7a0] sm:$0xf] }
 0x235   :  { %v8464_v12 = vpop.f32.mrf.mxu1  ;;  %v7888_v53 = vld [vmem:[#allocation7 + $0x7a8] sm:$0xf0]  ;;  %v7909_v4 = vld [vmem:[#allocation7 + $0x850] sm:$0xf0] }
 0x236   :  { %4953 = vmatpush.bf16.msrb.mxu0 %v7051_v57  ;;  %v7086_v57 = vld [vmem:[#allocation7 + $0x6e0] sm:$0xf] }
 0x237   :  { %4967 = vmatpush.bf16.msrb.mxu1 %v7147_v49  ;;  %4926 = vmatpush.bf16.msra.mxu2 %v6847_v26  ;;  %v7864_v49 = vld [vmem:[#allocation7 + $0x6e8] sm:$0xf0] }
 0x238   :  { %4940 = vmatpush.bf16.msra.mxu3 %v6943_v32  ;;  %v7087_v2 = vor.u32 %v7864_v49, %v7086_v57 }
 0x23a   :  { %4954 = vmatpush.bf16.msrb.mxu0 %v7039_v16  ;;  %v6811_v16 = vor.u32 %v7795_v7, %v6810_v17  ;;  %v7894_v17 = vld [vmem:[#allocation7 + $0x7d8] sm:$0xf0]  ;;  %v7302_v7 = vld [vmem:[#allocation7 + $0x890] sm:$0xf] }
 0x23b   :  { %4968 = vmatpush.bf16.msrb.mxu1 %v7135_v22  ;;  %4927 = vmatpush.bf16.msra.mxu2 %v6835_v60  ;;  %v6907_v22 = vor.u32 %v7819_v11, %v6906_v10  ;;  %v8452_v33 = vpop.f32.mrf.mxu0  ;;  %v7230_v60 = vld [vmem:[#allocation7 + $0x800] sm:$0xf]  ;;  %v7194_v11 = vld [vmem:[#allocation7 + $0x7b8] sm:$0xf] }
 0x23c   :  { %4941 = vmatpush.bf16.msra.mxu3 %v6931_v46  ;;  %v7326_v46 = vld [vmem:[#allocation7 + $0x8c0] sm:$0xf] }
 0x23d   :  { %v8472_v35 = vpop.f32.mrf.mxu1 }
 0x23e   :  { %4955 = vmatpush.bf16.msrb.mxu0 %v7027_v36  ;;  %v7789_v36 = vld [vmem:[#allocation7 + $0x490] sm:$0xf0] }
 0x23f   :  { %4969 = vmatpush.bf16.msrb.mxu1 %v7123_v25  ;;  %4928 = vmatpush.bf16.msra.mxu2 %v6823_v63  ;;  %v6882_v25 = vld [vmem:[#allocation7 + $0x548] sm:$0xf]  ;;  %v6787_v26 = vor.u32 %v7789_v36, %v6786_v29  ;;  %v7315_v63 = vor.u32 %v7921_v27, %v7314_v9  ;;  %v7279_v29 = vor.u32 %v7912_v42, %v7278_v28 }
 0x240   :  { %4942 = vmatpush.bf16.msra.mxu3 %v6919_v39  ;;  %v6883_v32 = vor.u32 %v7813_v34, %v6882_v25  ;;  %v7206_v39 = vld [vmem:[#allocation7 + $0x7d0] sm:$0xf]  ;;  %v7170_v36 = vld [vmem:[#allocation7 + $0x788] sm:$0xf]  ;;  %v7885_v25 = vld [vmem:[#allocation7 + $0x790] sm:$0xf0]  ;;  %v4570_v9 = vadd.f32 %v8442_v48, %v8424_v30 }
 0x241   :  { %v7266_v34 = vld [vmem:[#allocation7 + $0x848] sm:$0xf]  ;;  %v7171_v6 = vor.u32 %v7885_v25, %v7170_v36 }
 0x242   :  { %4956 = vmatpush.bf16.msrb.mxu0 %v7015_v0  ;;  %v7242_v0 = vld [vmem:[#allocation7 + $0x818] sm:$0xf]  ;;  %v7267_v45 = vor.u32 %v7909_v4, %v7266_v34 }
 0x243   :  { %4970 = vmatpush.bf16.msrb.mxu1 %v7111_v13  ;;  %4929 = vmatpush.bf16.msra.mxu2 %v6811_v16  ;;  %v7903_v13 = vld [vmem:[#allocation7 + $0x820] sm:$0xf0]  ;;  %v8458_v57 = vpop.f32.mrf.mxu0  ;;  %v7195_v16 = vor.u32 %v7891_v14, %v7194_v11 }
 0x244   :  { %4943 = vmatpush.bf16.msra.mxu3 %v6907_v22  ;;  %v7243_v21 = vor.u32 %v7903_v13, %v7242_v0  ;;  %v7291_v22 = vor.u32 %v7915_v47, %v7290_v15  ;;  %v4572_v15 = vadd.f32 %v8452_v33, %v8428_v38 }
 0x246   :  { %4957 = vmatpush.bf16.msrb.mxu0 %v7003_v59  ;;  %v7327_v59 = vor.u32 %v7924_v54, %v7326_v46 }
 0x247   :  { %4971 = vmatpush.bf16.msrb.mxu1 %v7099_v8  ;;  %4930 = vmatpush.bf16.msra.mxu2 %v6799_v62  ;;  %v7218_v8 = vld [vmem:[#allocation7 + $0x7e8] sm:$0xf] }
 0x248   :  { %4944 = vmatpush.bf16.msra.mxu3 %v6895_v61  ;;  %v7219_v49 = vor.u32 %v7897_v51, %v7218_v8  ;;  %v7183_v61 = vor.u32 %v7888_v53, %v7182_v23  ;;  %v4586_v53 = vadd.f32 %v8456_v50, %v4572_v15 }
 0x24a   :  { %4958 = vmatpush.bf16.msrb.mxu0 %v6991_v1  ;;  %v7918_v1 = vld [vmem:[#allocation7 + $0x898] sm:$0xf0] }
 0x24b   :  { %4972 = vmatpush.bf16.msrb.mxu1 %v7087_v2  ;;  %4931 = vmatpush.bf16.msra.mxu2 %v6787_v26  ;;  %v7207_v2 = vor.u32 %v7894_v17, %v7206_v39  ;;  %v7303_v10 = vor.u32 %v7918_v1, %v7302_v7  ;;  %v8470_v62 = vpop.f32.mrf.mxu0  ;;  %v4584_v7 = vadd.f32 %v8444_v40, %v4570_v9 }
 0x24c   :  { %4945 = vmatpush.bf16.msra.mxu3 %v6883_v32 }
 0x24e   :  { %4959 = vmatpush.bf16.msrb.mxu0 %v6979_v24  ;;  %4932 = vmatmul.bf16.vlgmr.msra.gmra.mxu2 %v8359_v5  ;;  %v8460_v5 = vpop.f32.mrf.mxu2 }
 0x24f   :  { %4973 = vmatpush.bf16.msrb.mxu1 %v7075_v56  ;;  %4980 = vmatpush.bf16.msrb.mxu2 %v7255_v58  ;;  %v4600_v42 = vadd.f32 %v8460_v5, %v4586_v53 }
 0x250   :  { %4994 = vmatpush.bf16.msrb.mxu3 %v7351_v37  ;;  %v4695_v37 = vpop.f32.mrf.mxu1 }
 0x251   :  { %4960 = vmatmul.bf16.vlgmr.msrb.gmra.mxu0 %v8394_v20  ;;  %v7339_v20 = vor.u32 %v7927_v43, %v7338_v3  ;;  %4946 = vmatmul.bf16.vlgmr.msra.gmra.mxu3 %v8361_v52  ;;  %v8462_v52 = vpop.f32.mrf.mxu3  ;;  %v8483_v3 = vld [vmem:[%s8515_s4] sm:$0x7]  ;;  %s8049_s4 = smov [#allocation8]  }
 0x252   :  { %4974 = vmatmul.bf16.vlgmr.msrb.gmra.mxu1 %v8396_v31  ;;  %v7900_v31 = vld [vmem:[#allocation7 + $0x808] sm:$0xf0]  ;;  %v2963_v43 = vperm.slane %v8483_v3, 1  ;;  %v4614_v38 = vadd.f32 %v8462_v52, %v4600_v42  ;;  %s5020_s16 = sshll.u32 %s8049_s4, 4  ;;  %s5021_s16 = int_to_ptr.vmem [resolvable:$true] %s5020_s16 }
 0x253   :  { %4981 = vmatpush.bf16.msrb.mxu2 %v7243_v21  ;;  %v7231_v55 = vor.u32 %v7900_v31, %v7230_v60  ;;  %v4681_v58 = vpop.f32.mrf.mxu0 }
 0x254   :  { %4995 = vmatpush.bf16.msrb.mxu3 %v7339_v20  ;;  %v4682_v20 = vadd.f32 %v4681_v58, %v2963_v43  ;;  %v4628_v50 = vadd.f32 %v8470_v62, %v4614_v38 }
 0x256   :  { %v8466_v24 = vpop.f32.mrf.mxu2  ;;  %v4696_v31 = vadd.f32 %v4695_v37, %v4682_v20  ;;  %v4642_v37 = vadd.f32 %v8472_v35, %v4628_v50 }
 0x257   :  { %4982 = vmatpush.bf16.msrb.mxu2 %v7231_v55 }
 0x258   :  { %4996 = vmatpush.bf16.msrb.mxu3 %v7327_v59  ;;  %v4697_v60 = vpop.f32.mrf.mxu1 }
 0x259   :  { %v8468_v56 = vpop.f32.mrf.mxu3 }
 0x25b   :  { %4983 = vmatpush.bf16.msrb.mxu2 %v7219_v49  ;;  %v4683_v21 = vpop.f32.mrf.mxu0 }
 0x25c   :  { %4997 = vmatpush.bf16.msrb.mxu3 %v7315_v63  ;;  %v4684_v59 = vadd.f32 %v4683_v21, %v2963_v43 }
 0x25e   :  { %v8474_v26 = vpop.f32.mrf.mxu2  ;;  %v4698_v51 = vadd.f32 %v4697_v60, %v4684_v59 }
 0x25f   :  { %4984 = vmatpush.bf16.msrb.mxu2 %v7207_v2  ;;  %v4656_v52 = vadd.f32 %v8474_v26, %v4642_v37 }
 0x260   :  { %4998 = vmatpush.bf16.msrb.mxu3 %v7303_v10  ;;  %v4751_v8 = vpop.f32.mrf.mxu1  ;;  %v4598_v10 = vadd.f32 %v8448_v41, %v4584_v7 }
 0x261   :  { %v8476_v32 = vpop.f32.mrf.mxu3 }
 0x262   :  { %v4670_v20 = vadd.f32 %v8476_v32, %v4656_v52 }
 0x263   :  { %4985 = vmatpush.bf16.msrb.mxu2 %v7195_v16  ;;  %v4737_v55 = vpop.f32.mrf.mxu0  ;;  %v4612_v16 = vadd.f32 %v8450_v44, %v4598_v10 }
 0x264   :  { %4999 = vmatpush.bf16.msrb.mxu3 %v7291_v22 }
 0x265   :  { %v4626_v40 = vadd.f32 %v8458_v57, %v4612_v16 }
 0x266   :  { %v4709_v0 = vpop.f32.mrf.mxu2 }
 0x267   :  { %4986 = vmatpush.bf16.msrb.mxu2 %v7183_v61  ;;  %v4640_v36 = vadd.f32 %v8464_v12, %v4626_v40 }
 0x268   :  { %5000 = vmatpush.bf16.msrb.mxu3 %v7279_v29  ;;  %v4753_v14 = vpop.f32.mrf.mxu1 }
 0x269   :  { %v4723_v13 = vpop.f32.mrf.mxu3  ;;  %v4654_v44 = vadd.f32 %v8466_v24, %v4640_v36 }
 0x26b   :  { %4987 = vmatpush.bf16.msrb.mxu2 %v7171_v6  ;;  %v4739_v17 = vpop.f32.mrf.mxu0 }
 0x26c   :  { %5001 = vmatpush.bf16.msrb.mxu3 %v7267_v45  ;;  %v4668_v45 = vadd.f32 %v8468_v56, %v4654_v44 }
 0x26e   :  { %4988 = vmatmul.bf16.vlgmr.msrb.gmra.mxu2 %v8414_v18  ;;  %v4711_v46 = vpop.f32.mrf.mxu2  ;;  %v4710_v18 = vadd.f32 %v4709_v0, %v4696_v31 }
 0x26f   :  { %5002 = vmatmul.bf16.vlgmr.msrb.gmra.mxu3 %v8416_v19  ;;  %v4712_v49 = vadd.f32 %v4711_v46, %v4698_v51  ;;  %v2964_v46 = vperm.slane %v8483_v3, 2 }
 0x270   :  { %v4724_v19 = vadd.f32 %v4723_v13, %v4710_v18  ;;  %v4807_v29 = vpop.f32.mrf.mxu1 }
 0x271   :  { %v4725_v54 = vpop.f32.mrf.mxu3 }
 0x272   :  { %v4738_v27 = vadd.f32 %v4737_v55, %v4724_v19  ;;  %v4726_v1 = vadd.f32 %v4725_v54, %v4712_v49 }
 0x273   :  { %v4793_v30 = vpop.f32.mrf.mxu0 }
 0x274   :  { %v4752_v2 = vadd.f32 %v4751_v8, %v4738_v27  ;;  %v4740_v47 = vadd.f32 %v4739_v17, %v4726_v1 }
 0x276   :  { %v4765_v63 = vpop.f32.mrf.mxu2  ;;  %v4754_v28 = vadd.f32 %v4753_v14, %v4740_v47 }
 0x277   :  { %v4766_v11 = vadd.f32 %v4765_v63, %v4752_v2 }
 0x278   :  { %v4809_v12 = vpop.f32.mrf.mxu1 }
 0x279   :  { %v4779_v39 = vpop.f32.mrf.mxu3 }
 0x27a   :  { %v4780_v48 = vadd.f32 %v4779_v39, %v4766_v11 }
 0x27b   :  { %v4795_v57 = vpop.f32.mrf.mxu0 }
 0x27c   :  { %v4794_v41 = vadd.f32 %v4793_v30, %v4780_v48 }
 0x27e   :  { %v4767_v22 = vpop.f32.mrf.mxu2  ;;  %v4808_v25 = vadd.f32 %v4807_v29, %v4794_v41 }
 0x27f   :  { %v4768_v61 = vadd.f32 %v4767_v22, %v4754_v28 }
 0x281   :  { %v4781_v23 = vpop.f32.mrf.mxu3 }
 0x282   :  { %v4782_v33 = vadd.f32 %v4781_v23, %v4768_v61 }
 0x284   :  { %v4796_v5 = vadd.f32 %v4795_v57, %v4782_v33 }
 0x286   :  { %v4810_v24 = vadd.f32 %v4809_v12, %v4796_v5 }
 0x28e   :  { %v4849_v31 = vpop.f32.mrf.mxu0 }
 0x28f   :  { %v4863_v56 = vpop.f32.mrf.mxu1  ;;  %v4850_v18 = vadd.f32 %v4849_v31, %v2964_v46 }
 0x291   :  { %v4821_v34 = vpop.f32.mrf.mxu2  ;;  %v4864_v26 = vadd.f32 %v4863_v56, %v4850_v18 }
 0x292   :  { %v4822_v6 = vadd.f32 %v4821_v34, %v4808_v25 }
 0x294   :  { %v4835_v4 = vpop.f32.mrf.mxu3 }
 0x295   :  { %v4836_v58 = vadd.f32 %v4835_v4, %v4822_v6 }
 0x296   :  { %v4851_v55 = vpop.f32.mrf.mxu0 }
 0x297   :  { %v5008_v0 = vpack.c.bf16 %v4836_v58, %v4668_v45  ;;  %v4865_v59 = vpop.f32.mrf.mxu1  ;;  %v4852_v27 = vadd.f32 %v4851_v55, %v2964_v46 }
 0x299   :  { %5012 = vst [vmem:[#allocation8] sm:$0xff] %v5008_v0  ;;  %v4823_v13 = vpop.f32.mrf.mxu2  ;;  %v4866_v63 = vadd.f32 %v4865_v59, %v4852_v27 }
 0x29a   :  { %v4824_v43 = vadd.f32 %v4823_v13, %v4810_v24 }
 0x29c   :  { %v4837_v21 = vpop.f32.mrf.mxu3 }
 0x29d   :  { %v4838_v62 = vadd.f32 %v4837_v21, %v4824_v43 }
 0x29f   :  { %v5010_v60 = vpack.c.bf16 %v4838_v62, %v4670_v20 }
 0x2a1   :  { %5014 = vst [vmem:[#allocation8 + $0xc] sm:$0xff] %v5010_v60 }
 0x2ae   :  { %v4905_v19 = vpop.f32.mrf.mxu0 }
 0x2af   :  { %v4919_v32 = vpop.f32.mrf.mxu1 }
 0x2b1   :  { %v4877_v54 = vpop.f32.mrf.mxu2 }
 0x2b2   :  { %v4878_v8 = vadd.f32 %v4877_v54, %v4864_v26 }
 0x2b4   :  { %v4891_v35 = vpop.f32.mrf.mxu3 }
 0x2b5   :  { %v4892_v49 = vadd.f32 %v4891_v35, %v4878_v8 }
 0x2b6   :  { %v4907_v2 = vpop.f32.mrf.mxu0 }
 0x2b7   :  { %v4906_v39 = vadd.f32 %v4905_v19, %v4892_v49  ;;  %v4921_v14 = vpop.f32.mrf.mxu1 }
 0x2b9   :  { %v4879_v51 = vpop.f32.mrf.mxu2  ;;  %v4920_v10 = vadd.f32 %v4919_v32, %v4906_v39 }
 0x2ba   :  { %v4880_v17 = vadd.f32 %v4879_v51, %v4866_v63 }
 0x2bc   :  { %v4893_v9 = vpop.f32.mrf.mxu3 }
 0x2bd   :  { %v4894_v3 = vadd.f32 %v4893_v9, %v4880_v17 }
 0x2bf   :  { %v4908_v15 = vadd.f32 %v4907_v2, %v4894_v3 }
 0x2c1   :  { %v4922_v22 = vadd.f32 %v4921_v14, %v4908_v15 }
 0x2ce   :  { %v4961_v47 = vpop.f32.mrf.mxu0 }
 0x2cf   :  { %v4975_v40 = vpop.f32.mrf.mxu1 }
 0x2d1   :  { %v4933_v7 = vpop.f32.mrf.mxu2 }
 0x2d2   :  { %v4934_v11 = vadd.f32 %v4933_v7, %v4920_v10 }
 0x2d4   :  { %v4947_v1 = vpop.f32.mrf.mxu3 }
 0x2d5   :  { %v4948_v16 = vadd.f32 %v4947_v1, %v4934_v11 }
 0x2d6   :  { %v4963_v36 = vpop.f32.mrf.mxu0 }
 0x2d7   :  { %v4962_v23 = vadd.f32 %v4961_v47, %v4948_v16  ;;  %v4977_v25 = vpop.f32.mrf.mxu1 }
 0x2d9   :  { %v4935_v30 = vpop.f32.mrf.mxu2  ;;  %v4976_v42 = vadd.f32 %v4975_v40, %v4962_v23 }
 0x2da   :  { %v4936_v53 = vadd.f32 %v4935_v30, %v4922_v22 }
 0x2dc   :  { %v4949_v48 = vpop.f32.mrf.mxu3 }
 0x2dd   :  { %v4950_v28 = vadd.f32 %v4949_v48, %v4936_v53 }
 0x2df   :  { %v4964_v38 = vadd.f32 %v4963_v36, %v4950_v28 }
 0x2e1   :  { %v4978_v34 = vadd.f32 %v4977_v25, %v4964_v38 }
 0x2f1   :  { %v4989_v41 = vpop.f32.mrf.mxu2 }
 0x2f2   :  { %v5003_v61 = vpop.f32.mrf.mxu3  ;;  %v4990_v29 = vadd.f32 %v4989_v41, %v4976_v42 }
 0x2f4   :  { %v5004_v44 = vadd.f32 %v5003_v61, %v4990_v29 }
 0x2f6   :  { %v5009_v33 = vpack.c.bf16 %v5004_v44, %v5004_v44 }
 0x2f8   :  { %5013 = vst [vmem:[#allocation8 + $0x8] sm:$0xf] %v5009_v33 }
 0x2f9   :  { %v4991_v4 = vpop.f32.mrf.mxu2 }
 0x2fa   :  { %v4992_v50 = vadd.f32 %v4991_v4, %v4978_v34  ;;  %v5005_v6 = vpop.f32.mrf.mxu3 }
 0x2fc   :  { %v5006_v57 = vadd.f32 %v5005_v6, %v4992_v50 }
 0x2fe   :  { %v5011_v45 = vpack.c.bf16 %v5006_v57, %v5006_v57 }
 0x300   :  { %5015 = vst [vmem:[#allocation8 + $0x14] sm:$0xf] %v5011_v45 }
 0x301   :  { %5028 = dma.vmem_to_hbm [thread:$0]  %s5021_s16, 384, %s5023_s19, [#allocation4], %s8046_s30, %s8046_s30, %s8047_s6  }
 0x302   :  { %8040 = dma.done.wait [#allocation4], 384  }
 0x303   :  { %8041 = vsyncadd [#allocation4], 4294966912 }
 0x304   :  { %5033 = vsyncpa [#allocation3], 1 }
 0x305   :  { %5034 = vsyncpa [#allocation6], 1 }
 0x306   :  { %5035 = vsyncpa [#allocation4], 1 }

</bundles_post_ra>
